<compile_context>
chip_gen: v6e
topology: v6e:2x2x1
jax: 0.10.0
libtpu: 0.0.40
codegen_flags: <defaults>
</compile_context>

<pallas_src>
import functools

import jax
import jax.numpy as jnp
from jax import lax
from jax.experimental import pallas as pl
from jax.experimental.pallas import tpu as pltpu


_LANES = 128
_CPAD = 128          # padded lane width of the coord / trans block


def _round_up(x, m):
    return (x + m - 1) // m * m


def _default_sizes():
    """Generation-aware (edge_tile, vmem_limit_bytes)."""
    try:
        cap = getattr(pltpu.get_tpu_info(), "vmem_capacity_bytes", None)
    except Exception:
        cap = None
    if cap is None:
        cap = 64 * 1024 * 1024            # conservative (v7x-sized)
    if cap >= 100 * 1024 * 1024:          # v5e / v6e: 128 MiB per core
        return 1024, 96 * 1024 * 1024
    return 512, 48 * 1024 * 1024          # v7x: 64 MiB per core


def _egcl_vel_kernel(row_s_ref, col_s_ref, row_l_ref, g_ref, hpad_ref,
                     coordp_ref, velp_ref,
                     we1_ref, wer_ref, be1_ref, we2_ref, be2_ref,
                     wc1_ref, bc1_ref, wc2_ref,
                     wn1_ref, bn1_ref, wn2_ref, bn2_ref,
                     wv1_ref, bv1_ref, wv2_ref, bv2_ref,
                     out_ref, acc_ref, *, mxu_dtype):
    f32 = jnp.float32
    relu = lambda x: jnp.maximum(x, 0.0)

    t = pl.program_id(0)
    N = g_ref.shape[0]
    TE = row_s_ref.shape[0]
    HP = acc_ref.shape[1] - _CPAD        # padded hidden width

    @pl.when(t == 0)
    def _init():
        acc_ref[...] = jnp.zeros_like(acc_ref)

    # ---- gather one-hots: single compare -> MXU-dtype cast.  Padded edges
    # carry index -1 -> all-zero rows -> their contributions vanish.
    node_iota = lax.broadcasted_iota(jnp.int32, (TE, N), 1)
    row_oh = (row_s_ref[...] == node_iota).astype(mxu_dtype)
    col_oh = (col_s_ref[...] == node_iota).astype(mxu_dtype)

    g = g_ref[...]                                              # (N, GP)
    g_row = jnp.dot(row_oh, g, preferred_element_type=f32)      # (TE, GP)
    g_col = jnp.dot(col_oh, g, preferred_element_type=f32)

    # ---- coord2radial (coord lives in lanes 0..2 of the first 128 lanes)
    cmask = (lax.broadcasted_iota(jnp.int32, (1, _CPAD), 1) < 3).astype(f32)
    diff = (g_row[:, :_CPAD] - g_col[:, :_CPAD]) * cmask        # (TE, 128)
    radial = jnp.sum(diff * diff, axis=-1, keepdims=True)       # (TE, 1)
    norm = jnp.sqrt(radial + 1e-8)
    coord_diff = diff / (norm + 1.0)                            # norm_diff=True

    # ---- edge MLP: fused first layer over [g_row | g_col] (128-aligned concat)
    gg = jnp.concatenate([g_row, g_col], axis=-1).astype(mxu_dtype)
    e1 = relu(jnp.dot(gg, we1_ref[...], preferred_element_type=f32)
              + radial * wer_ref[...] + be1_ref[...])
    edge_feat = relu(jnp.dot(e1.astype(mxu_dtype), we2_ref[...],
                             preferred_element_type=f32) + be2_ref[...])

    # ---- coord MLP: final H->1 projection as VPU multiply + lane reduce
    c1 = relu(jnp.dot(edge_feat.astype(mxu_dtype), wc1_ref[...],
                      preferred_element_type=f32) + bc1_ref[...])
    phi = jnp.sum(c1 * wc2_ref[...], axis=-1, keepdims=True)    # (TE, 1)
    trans = coord_diff * phi                                    # (TE, 128)

    # ---- fused segment-sum: scatter one-hot built directly in (N, TE) layout
    # just before use, so this is a plain (N,TE)@(TE,HP+128) MXU matmul.
    payload = jnp.concatenate([edge_feat, trans], axis=-1).astype(mxu_dtype)
    seg_iota = lax.broadcasted_iota(jnp.int32, (N, TE), 0)
    scat_oh = (row_l_ref[0] == seg_iota).astype(mxu_dtype)      # (N, TE)
    acc_ref[...] += jnp.dot(scat_oh, payload, preferred_element_type=f32)

    # ---- per-node finalization, once, on the last edge tile
    @pl.when(t == pl.num_programs(0) - 1)
    def _finalize():
        agg = acc_ref[...]
        agg_edge = agg[:, :HP]                     # (N, HP)   (pad lanes = 0)
        agg_coord = agg[:, HP:]                    # (N, 128)  coord in lanes 0..2
        h = hpad_ref[...]                          # (N, FP) exact f32 residual

        n_in = jnp.concatenate([h, agg_edge], axis=-1).astype(mxu_dtype)
        n1 = relu(jnp.dot(n_in, wn1_ref[...], preferred_element_type=f32)
                  + bn1_ref[...])
        h_new = h + (jnp.dot(n1.astype(mxu_dtype), wn2_ref[...],
                             preferred_element_type=f32) + bn2_ref[...])

        v1 = relu(jnp.dot(h.astype(mxu_dtype), wv1_ref[...],
                          preferred_element_type=f32) + bv1_ref[...])
        vscale = jnp.sum(v1 * wv2_ref[...], axis=-1, keepdims=True) + bv2_ref[...]
        coord_new = coordp_ref[...] + agg_coord + vscale * velp_ref[...]

        # single packed, lane-dense output slab [h_new | coord_new]
        out_ref[...] = jnp.concatenate([h_new, coord_new], axis=-1)


def e_gcl_vel_forward(h, coord, vel, edge_index, params, *,
                      edge_tile=None, mxu_dtype=jnp.bfloat16,
                      vmem_limit_bytes=None):
    """Forward pass of E_GCL_vel. Returns (h_new, coord_new, edge_attr=None)."""
    (we_s, we_t, we_r, be1, we2, be2,
     wn_x, wn_a, bn1, wn2, bn2,
     wc1, bc1, wc2,
     wv1, bv1, wv2, bv2) = params
    f32 = jnp.float32
    row, col = edge_index
    N, F = h.shape
    H = we2.shape[0]
    O = wn2.shape[1]                  # output_nf (== F for the recurrent residual)
    E = row.shape[0]

    GP = _round_up(F + 3, _LANES)     # gather slab width  [coord | h | 0]
    HP = _round_up(H, _LANES)         # padded hidden width
    FP = _round_up(F, _LANES)         # padded node-feature width

    if edge_tile is None or vmem_limit_bytes is None:
        d_tile, d_vmem = _default_sizes()
        edge_tile = edge_tile if edge_tile is not None else d_tile
        vmem_limit_bytes = (vmem_limit_bytes if vmem_limit_bytes is not None
                            else d_vmem)

    TE = _round_up(min(int(edge_tile), _round_up(max(E, 1), 16)), 16)
    E_pad = _round_up(E, TE)
    num_tiles = E_pad // TE
    pad = E_pad - E

    h = h.astype(f32)
    coord = coord.astype(f32)
    vel = vel.astype(f32)

    # edge indices, padded with -1 (=> all-zero one-hot rows / columns)
    row_p = jnp.concatenate([row.astype(jnp.int32),
                             jnp.full((pad,), -1, jnp.int32)])
    col_p = jnp.concatenate([col.astype(jnp.int32),
                             jnp.full((pad,), -1, jnp.int32)])
    row_sub = row_p.reshape(E_pad, 1)            # sublane layout (gather)
    col_sub = col_p.reshape(E_pad, 1)
    row_lane = row_p.reshape(num_tiles, 1, TE)   # lane layout (scatter)

    # lane-padded resident operands
    g = jnp.zeros((N, GP), f32).at[:, :3].set(coord).at[:, 3:3 + F].set(h)
    g = g.astype(mxu_dtype)
    h_pad = jnp.zeros((N, FP), f32).at[:, :F].set(h)
    coord_pad = jnp.zeros((N, _CPAD), f32).at[:, :3].set(coord)
    vel_pad = jnp.zeros((N, _CPAD), f32).at[:, :3].set(vel)

    # lane/row-padded weights; zero pad rows/cols keep padded lanes exactly 0
    blk_s = jnp.zeros((GP, HP), f32).at[3:3 + F, :H].set(we_s)
    blk_t = jnp.zeros((GP, HP), f32).at[3:3 + F, :H].set(we_t)
    we1_p = jnp.concatenate([blk_s, blk_t], axis=0).astype(mxu_dtype)  # (2GP, HP)
    wer_p = jnp.zeros((1, HP), f32).at[:, :H].set(we_r)
    be1_p = jnp.zeros((1, HP), f32).at[:, :H].set(be1)
    we2_p = jnp.zeros((HP, HP), f32).at[:H, :H].set(we2).astype(mxu_dtype)
    be2_p = jnp.zeros((1, HP), f32).at[:, :H].set(be2)
    wc1_p = jnp.zeros((HP, HP), f32).at[:H, :H].set(wc1).astype(mxu_dtype)
    bc1_p = jnp.zeros((1, HP), f32).at[:, :H].set(bc1)
    wc2_p = jnp.zeros((1, HP), f32).at[:, :H].set(wc2.reshape(1, H))
    wn1_p = (jnp.zeros((FP + HP, HP), f32)
             .at[:F, :H].set(wn_x).at[FP:FP + H, :H].set(wn_a)
             .astype(mxu_dtype))
    bn1_p = jnp.zeros((1, HP), f32).at[:, :H].set(bn1)
    wn2_p = jnp.zeros((HP, FP), f32).at[:H, :O].set(wn2).astype(mxu_dtype)
    bn2_p = jnp.zeros((1, FP), f32).at[:, :O].set(bn2)
    wv1_p = jnp.zeros((FP, HP), f32).at[:F, :H].set(wv1).astype(mxu_dtype)
    bv1_p = jnp.zeros((1, HP), f32).at[:, :H].set(bv1)
    wv2_p = jnp.zeros((1, HP), f32).at[:, :H].set(wv2.reshape(1, H))
    bv2_p = bv2.reshape(1, 1).astype(f32)

    args = (row_sub, col_sub, row_lane, g, h_pad, coord_pad, vel_pad,
            we1_p, wer_p, be1_p, we2_p, be2_p,
            wc1_p, bc1_p, wc2_p,
            wn1_p, bn1_p, wn2_p, bn2_p,
            wv1_p, bv1_p, wv2_p, bv2_p)

    row_spec = pl.BlockSpec((TE, 1), lambda t: (t, 0))
    lane_spec = pl.BlockSpec((1, 1, TE), lambda t: (t, 0, 0))
    out_spec = pl.BlockSpec((N, FP + _CPAD), lambda t: (0, 0))

    def make_in_specs(single_buffer):
        if single_buffer:
            def res(a):
                return pl.BlockSpec(a.shape, lambda t: (0,) * a.ndim,
                                    pipeline_mode=pl.Buffered(1))
        else:
            def res(a):
                return pl.BlockSpec(a.shape, lambda t: (0,) * a.ndim)
        return [row_spec, row_spec, lane_spec] + [res(a) for a in args[3:]]

    # rough cost hint for the XLA scheduler (padded dims)
    flops = 2 * E_pad * N * (2 * GP + HP + _CPAD)            # gathers + scatter
    flops += 2 * E_pad * (2 * GP * HP + 2 * HP * HP)         # edge / coord MLPs
    flops += 2 * N * ((FP + HP) * HP + HP * FP + FP * HP)    # node / vel MLPs
    bytes_accessed = sum(int(a.size) * a.dtype.itemsize for a in args)
    bytes_accessed += N * (FP + _CPAD) * 4
    cost = pl.CostEstimate(flops=int(flops), transcendentals=int(E_pad),
                           bytes_accessed=int(bytes_accessed))

    kernel = functools.partial(_egcl_vel_kernel, mxu_dtype=mxu_dtype)

    def run(single_buffer_residents):
        return pl.pallas_call(
            kernel,
            out_shape=jax.ShapeDtypeStruct((N, FP + _CPAD), f32),
            grid_spec=pltpu.PrefetchScalarGridSpec(
                num_scalar_prefetch=0,
                grid=(num_tiles,),
                in_specs=make_in_specs(single_buffer_residents),
                out_specs=out_spec,
                scratch_shapes=[pltpu.VMEM((N, HP + _CPAD), f32)]),
            compiler_params=pltpu.CompilerParams(
                # the edge axis is a reduction into the VMEM accumulator
                dimension_semantics=("arbitrary",),
                vmem_limit_bytes=int(vmem_limit_bytes)),
            cost_estimate=cost,
        )(*args)

    try:
        # grid-invariant residents single-buffered (halves resident VMEM)
        slab = run(True)
    except Exception:
        # fall back to default (double) buffering if Buffered(1) is rejected
        slab = run(False)

    h_out = slab[:, :F]
    coord_out = slab[:, FP:FP + 3]
    # TODO(synk): v7x dual-TensorCore split - add a leading size-2 "parallel"
    # grid axis writing per-core partial (2, N, HP+128) aggregates and run the
    # tiny node/vel finalize on the combined sum; the fused finalize needs the
    # full edge reduction so it cannot stay inside the per-core edge loop.
    # TODO(synk): for N >~ 2K, tile the node axis of the one-hot gather/scatter
    # (or switch the gather side to DMA row gathers) to avoid O(E*N) work.
    return h_out, coord_out, None


# ---------------- parameter setup (deterministic, PyTorch-style init) ----------------
def _linear_init(key, fan_in, fan_out, bias=True):
    kw, kb = jax.random.split(key)
    bound = 1.0 / jnp.sqrt(fan_in)
    w = jax.random.uniform(kw, (fan_in, fan_out), jnp.float32, -bound, bound)
    if bias:
        b = jax.random.uniform(kb, (1, fan_out), jnp.float32, -bound, bound)
        return w, b
    return w, None


def make_params(key, input_nf, output_nf, hidden_nf):
    F, H = input_nf, hidden_nf
    keys = jax.random.split(key, 12)
    # edge_mlp: Linear(2F+1 -> H), ReLU, Linear(H -> H), ReLU
    w_e1_full, be1 = _linear_init(keys[0], 2 * F + 1, H)
    we_s = w_e1_full[:F]
    we_t = w_e1_full[F:2 * F]
    we_r = w_e1_full[2 * F:2 * F + 1]
    we2, be2 = _linear_init(keys[1], H, H)
    # node_mlp: Linear(H+F -> H), ReLU, Linear(H -> output_nf)
    w_n1_full, bn1 = _linear_init(keys[2], H + F, H)
    wn_x = w_n1_full[:F]
    wn_a = w_n1_full[F:]
    wn2, bn2 = _linear_init(keys[3], H, output_nf)
    # coord_mlp: Linear(H -> H), ReLU, Linear(H -> 1, bias=False, xavier gain 0.001)
    wc1, bc1 = _linear_init(keys[4], H, H)
    xav_bound = 0.001 * jnp.sqrt(6.0 / (H + 1))
    wc2 = jax.random.uniform(keys[5], (H, 1), jnp.float32, -xav_bound, xav_bound)
    # coord_mlp_vel: Linear(F -> H), ReLU, Linear(H -> 1)
    wv1, bv1 = _linear_init(keys[6], F, H)
    wv2, bv2 = _linear_init(keys[7], H, 1)
    return (we_s, we_t, we_r, be1, we2, be2,
            wn_x, wn_a, bn1, wn2, bn2,
            wc1, bc1, wc2,
            wv1, bv1, wv2, bv2)


# ---------------- pure-JAX reference for verification ----------------
def reference(h, coord, vel, edge_index, p):
    (we_s, we_t, we_r, be1, we2, be2,
     wn_x, wn_a, bn1, wn2, bn2,
     wc1, bc1, wc2,
     wv1, bv1, wv2, bv2) = p
    relu = lambda x: jnp.maximum(x, 0.0)
    row, col = edge_index
    N = h.shape[0]
    coord_diff = coord[row] - coord[col]
    radial = jnp.sum(coord_diff ** 2, axis=1, keepdims=True)
    norm = jnp.sqrt(radial + 1e-8)
    coord_diff = coord_diff / (norm + 1.0)
    e1 = relu(h[row] @ we_s + h[col] @ we_t + radial * we_r + be1)
    edge_feat = relu(e1 @ we2 + be2)
    c1 = relu(edge_feat @ wc1 + bc1)
    phi = c1 @ wc2
    trans = coord_diff * phi
    agg_c = jnp.zeros((N, 3), jnp.float32).at[row].add(trans)
    v1 = relu(h @ wv1 + bv1)
    vscale = v1 @ wv2 + bv2
    coord_new = coord + agg_c + vscale * vel
    agg_e = jnp.zeros((N, edge_feat.shape[1]), jnp.float32).at[row].add(edge_feat)
    n1 = relu(h @ wn_x + agg_e @ wn_a + bn1)
    h_new = h + (n1 @ wn2 + bn2)
    return h_new, coord_new


if __name__ == "__main__":
    N = 8            # nodes
    F = 32           # input_nf == output_nf (recurrent residual)
    H = 32           # hidden_nf
    D = 3            # spatial dims

    key = jax.random.PRNGKey(0)
    k_h, k_c, k_v, k_p = jax.random.split(key, 4)
    h = jax.random.normal(k_h, (N, F), jnp.float32)
    coord = jax.random.normal(k_c, (N, D), jnp.float32)
    vel = jax.random.normal(k_v, (N, D), jnp.float32)

    # fully connected graph, no self-loops: E = N*(N-1) = 56
    rows, cols = [], []
    for i in range(N):
        for j in range(N):
            if i != j:
                rows.append(i)
                cols.append(j)
    row = jnp.array(rows, jnp.int32)
    col = jnp.array(cols, jnp.int32)

    params = make_params(k_p, F, F, H)
    h_ref, c_ref = reference(h, coord, vel, (row, col), params)

    # 1) f32 MXU-operand path with small edge tiles: E=56 pads to 64 and runs
    #    4 grid steps, exercising init / accumulate / finalize and padded edges.
    h_a, c_a, _ = e_gcl_vel_forward(h, coord, vel, (row, col), params,
                                    edge_tile=16, mxu_dtype=jnp.float32)
    h_a = jax.block_until_ready(h_a)
    c_a = jax.block_until_ready(c_a)
    assert jnp.allclose(h_a, h_ref, atol=5e-2, rtol=5e-2), "h mismatch (f32)"
    assert jnp.allclose(c_a, c_ref, atol=5e-2, rtol=5e-2), "coord mismatch (f32)"

    # 2) default fast path: bf16 MXU operands (f32 accumulation / VPU math),
    #    generation-aware edge_tile / vmem_limit.
    h_b, c_b, _ = e_gcl_vel_forward(h, coord, vel, (row, col), params)
    h_b = jax.block_until_ready(h_b)
    c_b = jax.block_until_ready(c_b)
    assert jnp.allclose(h_b, h_ref, atol=1e-1, rtol=1e-1), "h mismatch (bf16)"
    assert jnp.allclose(c_b, c_ref, atol=1e-1, rtol=1e-1), "coord mismatch (bf16)"

    print("KERNEL_OK")
</pallas_src>

<mosaic_0001>
module attributes {stable_mosaic.version = 11 : i64} {
  func.func @_egcl_vel_kernel(%arg0: i32, %arg1: memref<16x1xi32, #tpu.memory_space<vmem>>, %arg2: memref<16x1xi32, #tpu.memory_space<vmem>>, %arg3: memref<1x1x16xi32, #tpu.memory_space<vmem>>, %arg4: memref<8x128xf32, #tpu.memory_space<vmem>>, %arg5: memref<8x128xf32, #tpu.memory_space<vmem>>, %arg6: memref<8x128xf32, #tpu.memory_space<vmem>>, %arg7: memref<8x128xf32, #tpu.memory_space<vmem>>, %arg8: memref<256x128xf32, #tpu.memory_space<vmem>>, %arg9: memref<1x128xf32, #tpu.memory_space<vmem>>, %arg10: memref<1x128xf32, #tpu.memory_space<vmem>>, %arg11: memref<128x128xf32, #tpu.memory_space<vmem>>, %arg12: memref<1x128xf32, #tpu.memory_space<vmem>>, %arg13: memref<128x128xf32, #tpu.memory_space<vmem>>, %arg14: memref<1x128xf32, #tpu.memory_space<vmem>>, %arg15: memref<1x128xf32, #tpu.memory_space<vmem>>, %arg16: memref<256x128xf32, #tpu.memory_space<vmem>>, %arg17: memref<1x128xf32, #tpu.memory_space<vmem>>, %arg18: memref<128x128xf32, #tpu.memory_space<vmem>>, %arg19: memref<1x128xf32, #tpu.memory_space<vmem>>, %arg20: memref<128x128xf32, #tpu.memory_space<vmem>>, %arg21: memref<1x128xf32, #tpu.memory_space<vmem>>, %arg22: memref<1x128xf32, #tpu.memory_space<vmem>>, %arg23: memref<1x1xf32, #tpu.memory_space<vmem>>, %arg24: memref<8x256xf32, #tpu.memory_space<vmem>>, %arg25: memref<8x256xf32, #tpu.memory_space<vmem>>) attributes {dimension_semantics = [#tpu.dimension_semantics<arbitrary>], iteration_bounds = array<i64: 4>, scalar_prefetch = 0 : i64, scratch_operands = 1 : i64, tpu.core_type = #tpu.core_type<tc>, window_params = [{transform_indices = @transform_0, window_bounds = array<i64: 16, 1>}, {transform_indices = @transform_1, window_bounds = array<i64: 16, 1>}, {transform_indices = @transform_2, window_bounds = array<i64: 1, 1, 16>}, {pipeline_mode = #tpu.pipeline_mode<synchronous>, transform_indices = @transform_3, window_bounds = array<i64: 8, 128>}, {pipeline_mode = #tpu.pipeline_mode<synchronous>, transform_indices = @transform_4, window_bounds = array<i64: 8, 128>}, {pipeline_mode = #tpu.pipeline_mode<synchronous>, transform_indices = @transform_5, window_bounds = array<i64: 8, 128>}, {pipeline_mode = #tpu.pipeline_mode<synchronous>, transform_indices = @transform_6, window_bounds = array<i64: 8, 128>}, {pipeline_mode = #tpu.pipeline_mode<synchronous>, transform_indices = @transform_7, window_bounds = array<i64: 256, 128>}, {pipeline_mode = #tpu.pipeline_mode<synchronous>, transform_indices = @transform_8, window_bounds = array<i64: 1, 128>}, {pipeline_mode = #tpu.pipeline_mode<synchronous>, transform_indices = @transform_9, window_bounds = array<i64: 1, 128>}, {pipeline_mode = #tpu.pipeline_mode<synchronous>, transform_indices = @transform_10, window_bounds = array<i64: 128, 128>}, {pipeline_mode = #tpu.pipeline_mode<synchronous>, transform_indices = @transform_11, window_bounds = array<i64: 1, 128>}, {pipeline_mode = #tpu.pipeline_mode<synchronous>, transform_indices = @transform_12, window_bounds = array<i64: 128, 128>}, {pipeline_mode = #tpu.pipeline_mode<synchronous>, transform_indices = @transform_13, window_bounds = array<i64: 1, 128>}, {pipeline_mode = #tpu.pipeline_mode<synchronous>, transform_indices = @transform_14, window_bounds = array<i64: 1, 128>}, {pipeline_mode = #tpu.pipeline_mode<synchronous>, transform_indices = @transform_15, window_bounds = array<i64: 256, 128>}, {pipeline_mode = #tpu.pipeline_mode<synchronous>, transform_indices = @transform_16, window_bounds = array<i64: 1, 128>}, {pipeline_mode = #tpu.pipeline_mode<synchronous>, transform_indices = @transform_17, window_bounds = array<i64: 128, 128>}, {pipeline_mode = #tpu.pipeline_mode<synchronous>, transform_indices = @transform_18, window_bounds = array<i64: 1, 128>}, {pipeline_mode = #tpu.pipeline_mode<synchronous>, transform_indices = @transform_19, window_bounds = array<i64: 128, 128>}, {pipeline_mode = #tpu.pipeline_mode<synchronous>, transform_indices = @transform_20, window_bounds = array<i64: 1, 128>}, {pipeline_mode = #tpu.pipeline_mode<synchronous>, transform_indices = @transform_21, window_bounds = array<i64: 1, 128>}, {pipeline_mode = #tpu.pipeline_mode<synchronous>, transform_indices = @transform_22, window_bounds = array<i64: 1, 1>}, {pipeline_mode = #tpu.pipeline_mode<synchronous>, transform_indices = @transform_23, window_bounds = array<i64: 8, 256>}]} {
    %c0_i32 = arith.constant 0 : i32
    %0 = arith.cmpi eq, %arg0, %c0_i32 : i32
    %1 = arith.extui %0 : i1 to i32
    %c0_i32_0 = arith.constant 0 : i32
    %2 = arith.cmpi ne, %1, %c0_i32_0 : i32
    scf.if %2 {
      %cst_43 = arith.constant 0.000000e+00 : f32
      %84 = vector.broadcast %cst_43 : f32 to vector<8x256xf32>
      %c0_44 = arith.constant 0 : index
      %c0_45 = arith.constant 0 : index
      %85 = vector.load %arg25[%c0_44, %c0_45] : memref<8x256xf32, #tpu.memory_space<vmem>>, vector<8x256xf32>
      tpu.vector_store %arg25[%c0_44, %c0_45], %84 {strides = array<i32>} : memref<8x256xf32, #tpu.memory_space<vmem>>, vector<8x256xf32>,
    } else {
    }
    %3 = tpu.iota {dimensions = array<i32: 1>} : vector<16x8xi32>
    %c0 = arith.constant 0 : index
    %c0_1 = arith.constant 0 : index
    %4 = vector.load %arg1[%c0, %c0_1] : memref<16x1xi32, #tpu.memory_space<vmem>>, vector<16x1xi32>
    %5 = vector.broadcast %4 : vector<16x1xi32> to vector<16x8xi32>
    %6 = arith.cmpi eq, %5, %3 : vector<16x8xi32>
    %7 = arith.extui %6 : vector<16x8xi1> to vector<16x8xi32>
    %8 = arith.sitofp %7 : vector<16x8xi32> to vector<16x8xf32>
    %c0_2 = arith.constant 0 : index
    %c0_3 = arith.constant 0 : index
    %9 = vector.load %arg2[%c0_2, %c0_3] : memref<16x1xi32, #tpu.memory_space<vmem>>, vector<16x1xi32>
    %10 = vector.broadcast %9 : vector<16x1xi32> to vector<16x8xi32>
    %11 = arith.cmpi eq, %10, %3 : vector<16x8xi32>
    %12 = arith.extui %11 : vector<16x8xi1> to vector<16x8xi32>
    %13 = arith.sitofp %12 : vector<16x8xi32> to vector<16x8xf32>
    %c0_4 = arith.constant 0 : index
    %c0_5 = arith.constant 0 : index
    %14 = vector.load %arg4[%c0_4, %c0_5] : memref<8x128xf32, #tpu.memory_space<vmem>>, vector<8x128xf32>
    %cst = arith.constant dense<0.000000e+00> : vector<16x128xf32>
    %15 = tpu.matmul %8, %14, %cst {dimension_numbers = #tpu.dot_dimension_numbers<[1], [0], [0], [1], [0, 0, 1, 1], [], []>} : vector<16x8xf32>, vector<8x128xf32>, vector<16x128xf32> -> vector<16x128xf32>
    %cst_6 = arith.constant dense<0.000000e+00> : vector<16x128xf32>
    %16 = tpu.matmul %13, %14, %cst_6 {dimension_numbers = #tpu.dot_dimension_numbers<[1], [0], [0], [1], [0, 0, 1, 1], [], []>} : vector<16x8xf32>, vector<8x128xf32>, vector<16x128xf32> -> vector<16x128xf32>
    %17 = tpu.iota {dimensions = array<i32: 1>} : vector<1x128xi32>
    %c3_i32 = arith.constant 3 : i32
    %18 = vector.broadcast %c3_i32 : i32 to vector<1x128xi32>
    %19 = arith.cmpi slt, %17, %18 : vector<1x128xi32>
    %20 = arith.extui %19 : vector<1x128xi1> to vector<1x128xi32>
    %21 = arith.sitofp %20 : vector<1x128xi32> to vector<1x128xf32>
    %22 = arith.subf %15, %16 : vector<16x128xf32>
    %23 = vector.broadcast %21 : vector<1x128xf32> to vector<16x128xf32>
    %24 = arith.mulf %22, %23 : vector<16x128xf32>
    %25 = arith.mulf %24, %24 : vector<16x128xf32>
    %cst_7 = arith.constant dense<0.000000e+00> : vector<16xf32>
    %26 = vector.multi_reduction <add>, %25, %cst_7 [1] : vector<16x128xf32> to vector<16xf32>
    %27 = vector.shape_cast %26 : vector<16xf32> to vector<16x1xf32>
    %cst_8 = arith.constant 9.99999993E-9 : f32
    %28 = vector.broadcast %cst_8 : f32 to vector<16x1xf32>
    %29 = arith.addf %27, %28 : vector<16x1xf32>
    %30 = math.sqrt %29 : vector<16x1xf32>
    %cst_9 = arith.constant 1.000000e+00 : f32
    %31 = vector.broadcast %cst_9 : f32 to vector<16x1xf32>
    %32 = arith.addf %30, %31 : vector<16x1xf32>
    %33 = vector.broadcast %32 : vector<16x1xf32> to vector<16x128xf32>
    %34 = arith.divf %24, %33 : vector<16x128xf32>
    %35 = tpu.concatenate %15, %16 in 1 : vector<16x128xf32>, vector<16x128xf32> -> vector<16x256xf32>
    %c0_10 = arith.constant 0 : index
    %c0_11 = arith.constant 0 : index
    %36 = vector.load %arg8[%c0_10, %c0_11] : memref<256x128xf32, #tpu.memory_space<vmem>>, vector<256x128xf32>
    %cst_12 = arith.constant dense<0.000000e+00> : vector<16x128xf32>
    %37 = tpu.matmul %35, %36, %cst_12 {dimension_numbers = #tpu.dot_dimension_numbers<[1], [0], [0], [1], [0, 0, 1, 1], [], []>} : vector<16x256xf32>, vector<256x128xf32>, vector<16x128xf32> -> vector<16x128xf32>
    %c0_13 = arith.constant 0 : index
    %c0_14 = arith.constant 0 : index
    %38 = vector.load %arg9[%c0_13, %c0_14] : memref<1x128xf32, #tpu.memory_space<vmem>>, vector<1x128xf32>
    %39 = vector.broadcast %27 : vector<16x1xf32> to vector<16x128xf32>
    %40 = vector.broadcast %38 : vector<1x128xf32> to vector<16x128xf32>
    %41 = arith.mulf %39, %40 : vector<16x128xf32>
    %42 = arith.addf %37, %41 : vector<16x128xf32>
    %c0_15 = arith.constant 0 : index
    %c0_16 = arith.constant 0 : index
    %43 = vector.load %arg10[%c0_15, %c0_16] : memref<1x128xf32, #tpu.memory_space<vmem>>, vector<1x128xf32>
    %44 = vector.broadcast %43 : vector<1x128xf32> to vector<16x128xf32>
    %45 = arith.addf %42, %44 : vector<16x128xf32>
    %cst_17 = arith.constant 0.000000e+00 : f32
    %46 = vector.broadcast %cst_17 : f32 to vector<16x128xf32>
    %47 = arith.maximumf %45, %46 : vector<16x128xf32>
    %c0_18 = arith.constant 0 : index
    %c0_19 = arith.constant 0 : index
    %48 = vector.load %arg11[%c0_18, %c0_19] : memref<128x128xf32, #tpu.memory_space<vmem>>, vector<128x128xf32>
    %cst_20 = arith.constant dense<0.000000e+00> : vector<16x128xf32>
    %49 = tpu.matmul %47, %48, %cst_20 {dimension_numbers = #tpu.dot_dimension_numbers<[1], [0], [0], [1], [0, 0, 1, 1], [], []>} : vector<16x128xf32>, vector<128x128xf32>, vector<16x128xf32> -> vector<16x128xf32>
    %c0_21 = arith.constant 0 : index
    %c0_22 = arith.constant 0 : index
    %50 = vector.load %arg12[%c0_21, %c0_22] : memref<1x128xf32, #tpu.memory_space<vmem>>, vector<1x128xf32>
    %51 = vector.broadcast %50 : vector<1x128xf32> to vector<16x128xf32>
    %52 = arith.addf %49, %51 : vector<16x128xf32>
    %cst_23 = arith.constant 0.000000e+00 : f32
    %53 = vector.broadcast %cst_23 : f32 to vector<16x128xf32>
    %54 = arith.maximumf %52, %53 : vector<16x128xf32>
    %c0_24 = arith.constant 0 : index
    %c0_25 = arith.constant 0 : index
    %55 = vector.load %arg13[%c0_24, %c0_25] : memref<128x128xf32, #tpu.memory_space<vmem>>, vector<128x128xf32>
    %cst_26 = arith.constant dense<0.000000e+00> : vector<16x128xf32>
    %56 = tpu.matmul %54, %55, %cst_26 {dimension_numbers = #tpu.dot_dimension_numbers<[1], [0], [0], [1], [0, 0, 1, 1], [], []>} : vector<16x128xf32>, vector<128x128xf32>, vector<16x128xf32> -> vector<16x128xf32>
    %c0_27 = arith.constant 0 : index
    %c0_28 = arith.constant 0 : index
    %57 = vector.load %arg14[%c0_27, %c0_28] : memref<1x128xf32, #tpu.memory_space<vmem>>, vector<1x128xf32>
    %58 = vector.broadcast %57 : vector<1x128xf32> to vector<16x128xf32>
    %59 = arith.addf %56, %58 : vector<16x128xf32>
    %cst_29 = arith.constant 0.000000e+00 : f32
    %60 = vector.broadcast %cst_29 : f32 to vector<16x128xf32>
    %61 = arith.maximumf %59, %60 : vector<16x128xf32>
    %c0_30 = arith.constant 0 : index
    %c0_31 = arith.constant 0 : index
    %62 = vector.load %arg15[%c0_30, %c0_31] : memref<1x128xf32, #tpu.memory_space<vmem>>, vector<1x128xf32>
    %63 = vector.broadcast %62 : vector<1x128xf32> to vector<16x128xf32>
    %64 = arith.mulf %61, %63 : vector<16x128xf32>
    %cst_32 = arith.constant dense<0.000000e+00> : vector<16xf32>
    %65 = vector.multi_reduction <add>, %64, %cst_32 [1] : vector<16x128xf32> to vector<16xf32>
    %66 = vector.shape_cast %65 : vector<16xf32> to vector<16x1xf32>
    %67 = vector.broadcast %66 : vector<16x1xf32> to vector<16x128xf32>
    %68 = arith.mulf %34, %67 : vector<16x128xf32>
    %69 = tpu.concatenate %54, %68 in 1 : vector<16x128xf32>, vector<16x128xf32> -> vector<16x256xf32>
    %70 = tpu.iota {dimensions = array<i32: 0>} : vector<8x16xi32>
    %c0_33 = arith.constant 0 : index
    %c0_34 = arith.constant 0 : index
    %c0_35 = arith.constant 0 : index
    %71 = vector.load %arg3[%c0_33, %c0_34, %c0_35] : memref<1x1x16xi32, #tpu.memory_space<vmem>>, vector<1x1x16xi32>
    %72 = vector.shape_cast %71 : vector<1x1x16xi32> to vector<1x16xi32>
    %73 = vector.broadcast %72 : vector<1x16xi32> to vector<8x16xi32>
    %74 = arith.cmpi eq, %73, %70 : vector<8x16xi32>
    %75 = arith.extui %74 : vector<8x16xi1> to vector<8x16xi32>
    %76 = arith.sitofp %75 : vector<8x16xi32> to vector<8x16xf32>
    %c0_36 = arith.constant 0 : index
    %c0_37 = arith.constant 0 : index
    %77 = vector.load %arg25[%c0_36, %c0_37] : memref<8x256xf32, #tpu.memory_space<vmem>>, vector<8x256xf32>
    %cst_38 = arith.constant dense<0.000000e+00> : vector<8x256xf32>
    %78 = tpu.matmul %76, %69, %cst_38 {dimension_numbers = #tpu.dot_dimension_numbers<[1], [0], [0], [1], [0, 0, 1, 1], [], []>} : vector<8x16xf32>, vector<16x256xf32>, vector<8x256xf32> -> vector<8x256xf32>
    %79 = arith.addf %77, %78 : vector<8x256xf32>
    %c0_39 = arith.constant 0 : index
    %c0_40 = arith.constant 0 : index
    %80 = vector.load %arg25[%c0_39, %c0_40] : memref<8x256xf32, #tpu.memory_space<vmem>>, vector<8x256xf32>
    tpu.vector_store %arg25[%c0_39, %c0_40], %79 {strides = array<i32>} : memref<8x256xf32, #tpu.memory_space<vmem>>, vector<8x256xf32>,
    %c3_i32_41 = arith.constant 3 : i32
    %81 = arith.cmpi eq, %arg0, %c3_i32_41 : i32
    %82 = arith.extui %81 : i1 to i32
    %c0_i32_42 = arith.constant 0 : i32
    %83 = arith.cmpi ne, %82, %c0_i32_42 : i32
    scf.if %83 {
      %c0_43 = arith.constant 0 : index
      %c0_44 = arith.constant 0 : index
      %84 = vector.load %arg25[%c0_43, %c0_44] : memref<8x256xf32, #tpu.memory_space<vmem>>, vector<8x256xf32>
      %85 = vector.extract_strided_slice %84 {offsets = [0, 0], sizes = [8, 128], strides = [1, 1]} : vector<8x256xf32> to vector<8x128xf32>
      %86 = vector.extract_strided_slice %84 {offsets = [0, 128], sizes = [8, 128], strides = [1, 1]} : vector<8x256xf32> to vector<8x128xf32>
      %c0_45 = arith.constant 0 : index
      %c0_46 = arith.constant 0 : index
      %87 = vector.load %arg5[%c0_45, %c0_46] : memref<8x128xf32, #tpu.memory_space<vmem>>, vector<8x128xf32>
      %88 = tpu.concatenate %87, %85 in 1 : vector<8x128xf32>, vector<8x128xf32> -> vector<8x256xf32>
      %c0_47 = arith.constant 0 : index
      %c0_48 = arith.constant 0 : index
      %89 = vector.load %arg16[%c0_47, %c0_48] : memref<256x128xf32, #tpu.memory_space<vmem>>, vector<256x128xf32>
      %cst_49 = arith.constant dense<0.000000e+00> : vector<8x128xf32>
      %90 = tpu.matmul %88, %89, %cst_49 {dimension_numbers = #tpu.dot_dimension_numbers<[1], [0], [0], [1], [0, 0, 1, 1], [], []>} : vector<8x256xf32>, vector<256x128xf32>, vector<8x128xf32> -> vector<8x128xf32>
      %c0_50 = arith.constant 0 : index
      %c0_51 = arith.constant 0 : index
      %91 = vector.load %arg17[%c0_50, %c0_51] : memref<1x128xf32, #tpu.memory_space<vmem>>, vector<1x128xf32>
      %92 = vector.broadcast %91 : vector<1x128xf32> to vector<8x128xf32>
      %93 = arith.addf %90, %92 : vector<8x128xf32>
      %cst_52 = arith.constant 0.000000e+00 : f32
      %94 = vector.broadcast %cst_52 : f32 to vector<8x128xf32>
      %95 = arith.maximumf %93, %94 : vector<8x128xf32>
      %c0_53 = arith.constant 0 : index
      %c0_54 = arith.constant 0 : index
      %96 = vector.load %arg18[%c0_53, %c0_54] : memref<128x128xf32, #tpu.memory_space<vmem>>, vector<128x128xf32>
      %cst_55 = arith.constant dense<0.000000e+00> : vector<8x128xf32>
      %97 = tpu.matmul %95, %96, %cst_55 {dimension_numbers = #tpu.dot_dimension_numbers<[1], [0], [0], [1], [0, 0, 1, 1], [], []>} : vector<8x128xf32>, vector<128x128xf32>, vector<8x128xf32> -> vector<8x128xf32>
      %c0_56 = arith.constant 0 : index
      %c0_57 = arith.constant 0 : index
      %98 = vector.load %arg19[%c0_56, %c0_57] : memref<1x128xf32, #tpu.memory_space<vmem>>, vector<1x128xf32>
      %99 = vector.broadcast %98 : vector<1x128xf32> to vector<8x128xf32>
      %100 = arith.addf %97, %99 : vector<8x128xf32>
      %101 = arith.addf %87, %100 : vector<8x128xf32>
      %c0_58 = arith.constant 0 : index
      %c0_59 = arith.constant 0 : index
      %102 = vector.load %arg20[%c0_58, %c0_59] : memref<128x128xf32, #tpu.memory_space<vmem>>, vector<128x128xf32>
      %cst_60 = arith.constant dense<0.000000e+00> : vector<8x128xf32>
      %103 = tpu.matmul %87, %102, %cst_60 {dimension_numbers = #tpu.dot_dimension_numbers<[1], [0], [0], [1], [0, 0, 1, 1], [], []>} : vector<8x128xf32>, vector<128x128xf32>, vector<8x128xf32> -> vector<8x128xf32>
      %c0_61 = arith.constant 0 : index
      %c0_62 = arith.constant 0 : index
      %104 = vector.load %arg21[%c0_61, %c0_62] : memref<1x128xf32, #tpu.memory_space<vmem>>, vector<1x128xf32>
      %105 = vector.broadcast %104 : vector<1x128xf32> to vector<8x128xf32>
      %106 = arith.addf %103, %105 : vector<8x128xf32>
      %cst_63 = arith.constant 0.000000e+00 : f32
      %107 = vector.broadcast %cst_63 : f32 to vector<8x128xf32>
      %108 = arith.maximumf %106, %107 : vector<8x128xf32>
      %c0_64 = arith.constant 0 : index
      %c0_65 = arith.constant 0 : index
      %109 = vector.load %arg22[%c0_64, %c0_65] : memref<1x128xf32, #tpu.memory_space<vmem>>, vector<1x128xf32>
      %110 = vector.broadcast %109 : vector<1x128xf32> to vector<8x128xf32>
      %111 = arith.mulf %108, %110 : vector<8x128xf32>
      %cst_66 = arith.constant dense<0.000000e+00> : vector<8xf32>
      %112 = vector.multi_reduction <add>, %111, %cst_66 [1] : vector<8x128xf32> to vector<8xf32>
      %113 = vector.shape_cast %112 : vector<8xf32> to vector<8x1xf32>
      %c0_67 = arith.constant 0 : index
      %c0_68 = arith.constant 0 : index
      %114 = vector.load %arg23[%c0_67, %c0_68] : memref<1x1xf32, #tpu.memory_space<vmem>>, vector<1x1xf32>
      %115 = vector.broadcast %114 : vector<1x1xf32> to vector<8x1xf32>
      %116 = arith.addf %113, %115 : vector<8x1xf32>
      %c0_69 = arith.constant 0 : index
      %c0_70 = arith.constant 0 : index
      %117 = vector.load %arg6[%c0_69, %c0_70] : memref<8x128xf32, #tpu.memory_space<vmem>>, vector<8x128xf32>
      %118 = arith.addf %117, %86 : vector<8x128xf32>
      %c0_71 = arith.constant 0 : index
      %c0_72 = arith.constant 0 : index
      %119 = vector.load %arg7[%c0_71, %c0_72] : memref<8x128xf32, #tpu.memory_space<vmem>>, vector<8x128xf32>
      %120 = vector.broadcast %116 : vector<8x1xf32> to vector<8x128xf32>
      %121 = arith.mulf %120, %119 : vector<8x128xf32>
      %122 = arith.addf %118, %121 : vector<8x128xf32>
      %123 = tpu.concatenate %101, %122 in 1 : vector<8x128xf32>, vector<8x128xf32> -> vector<8x256xf32>
      %c0_73 = arith.constant 0 : index
      %c0_74 = arith.constant 0 : index
      %124 = vector.load %arg24[%c0_73, %c0_74] : memref<8x256xf32, #tpu.memory_space<vmem>>, vector<8x256xf32>
      tpu.vector_store %arg24[%c0_73, %c0_74], %123 {strides = array<i32>} : memref<8x256xf32, #tpu.memory_space<vmem>>, vector<8x256xf32>,
    } else {
    }
    return
  }
  func.func @transform_0(%arg0: i32) -> (i32, i32) {
    %c0_i32 = arith.constant 0 : i32
    %c0_i32_0 = arith.constant 0 : i32
    return %arg0, %c0_i32 : i32, i32
  }
  func.func @transform_1(%arg0: i32) -> (i32, i32) {
    %c0_i32 = arith.constant 0 : i32
    %c0_i32_0 = arith.constant 0 : i32
    return %arg0, %c0_i32 : i32, i32
  }
  func.func @transform_2(%arg0: i32) -> (i32, i32, i32) {
    %c0_i32 = arith.constant 0 : i32
    %c0_i32_0 = arith.constant 0 : i32
    %c0_i32_1 = arith.constant 0 : i32
    return %arg0, %c0_i32, %c0_i32_0 : i32, i32, i32
  }
  func.func @transform_3(%arg0: i32) -> (i32, i32) {
    %c0_i32 = arith.constant 0 : i32
    %c0_i32_0 = arith.constant 0 : i32
    %c0_i32_1 = arith.constant 0 : i32
    return %c0_i32, %c0_i32_0 : i32, i32
  }
  func.func @transform_4(%arg0: i32) -> (i32, i32) {
    %c0_i32 = arith.constant 0 : i32
    %c0_i32_0 = arith.constant 0 : i32
    %c0_i32_1 = arith.constant 0 : i32
    return %c0_i32, %c0_i32_0 : i32, i32
  }
  func.func @transform_5(%arg0: i32) -> (i32, i32) {
    %c0_i32 = arith.constant 0 : i32
    %c0_i32_0 = arith.constant 0 : i32
    %c0_i32_1 = arith.constant 0 : i32
    return %c0_i32, %c0_i32_0 : i32, i32
  }
  func.func @transform_6(%arg0: i32) -> (i32, i32) {
    %c0_i32 = arith.constant 0 : i32
    %c0_i32_0 = arith.constant 0 : i32
    %c0_i32_1 = arith.constant 0 : i32
    return %c0_i32, %c0_i32_0 : i32, i32
  }
  func.func @transform_7(%arg0: i32) -> (i32, i32) {
    %c0_i32 = arith.constant 0 : i32
    %c0_i32_0 = arith.constant 0 : i32
    %c0_i32_1 = arith.constant 0 : i32
    return %c0_i32, %c0_i32_0 : i32, i32
  }
  func.func @transform_8(%arg0: i32) -> (i32, i32) {
    %c0_i32 = arith.constant 0 : i32
    %c0_i32_0 = arith.constant 0 : i32
    %c0_i32_1 = arith.constant 0 : i32
    return %c0_i32, %c0_i32_0 : i32, i32
  }
  func.func @transform_9(%arg0: i32) -> (i32, i32) {
    %c0_i32 = arith.constant 0 : i32
    %c0_i32_0 = arith.constant 0 : i32
    %c0_i32_1 = arith.constant 0 : i32
    return %c0_i32, %c0_i32_0 : i32, i32
  }
  func.func @transform_10(%arg0: i32) -> (i32, i32) {
    %c0_i32 = arith.constant 0 : i32
    %c0_i32_0 = arith.constant 0 : i32
    %c0_i32_1 = arith.constant 0 : i32
    return %c0_i32, %c0_i32_0 : i32, i32
  }
  func.func @transform_11(%arg0: i32) -> (i32, i32) {
    %c0_i32 = arith.constant 0 : i32
    %c0_i32_0 = arith.constant 0 : i32
    %c0_i32_1 = arith.constant 0 : i32
    return %c0_i32, %c0_i32_0 : i32, i32
  }
  func.func @transform_12(%arg0: i32) -> (i32, i32) {
    %c0_i32 = arith.constant 0 : i32
    %c0_i32_0 = arith.constant 0 : i32
    %c0_i32_1 = arith.constant 0 : i32
    return %c0_i32, %c0_i32_0 : i32, i32
  }
  func.func @transform_13(%arg0: i32) -> (i32, i32) {
    %c0_i32 = arith.constant 0 : i32
    %c0_i32_0 = arith.constant 0 : i32
    %c0_i32_1 = arith.constant 0 : i32
    return %c0_i32, %c0_i32_0 : i32, i32
  }
  func.func @transform_14(%arg0: i32) -> (i32, i32) {
    %c0_i32 = arith.constant 0 : i32
    %c0_i32_0 = arith.constant 0 : i32
    %c0_i32_1 = arith.constant 0 : i32
    return %c0_i32, %c0_i32_0 : i32, i32
  }
  func.func @transform_15(%arg0: i32) -> (i32, i32) {
    %c0_i32 = arith.constant 0 : i32
    %c0_i32_0 = arith.constant 0 : i32
    %c0_i32_1 = arith.constant 0 : i32
    return %c0_i32, %c0_i32_0 : i32, i32
  }
  func.func @transform_16(%arg0: i32) -> (i32, i32) {
    %c0_i32 = arith.constant 0 : i32
    %c0_i32_0 = arith.constant 0 : i32
    %c0_i32_1 = arith.constant 0 : i32
    return %c0_i32, %c0_i32_0 : i32, i32
  }
  func.func @transform_17(%arg0: i32) -> (i32, i32) {
    %c0_i32 = arith.constant 0 : i32
    %c0_i32_0 = arith.constant 0 : i32
    %c0_i32_1 = arith.constant 0 : i32
    return %c0_i32, %c0_i32_0 : i32, i32
  }
  func.func @transform_18(%arg0: i32) -> (i32, i32) {
    %c0_i32 = arith.constant 0 : i32
    %c0_i32_0 = arith.constant 0 : i32
    %c0_i32_1 = arith.constant 0 : i32
    return %c0_i32, %c0_i32_0 : i32, i32
  }
  func.func @transform_19(%arg0: i32) -> (i32, i32) {
    %c0_i32 = arith.constant 0 : i32
    %c0_i32_0 = arith.constant 0 : i32
    %c0_i32_1 = arith.constant 0 : i32
    return %c0_i32, %c0_i32_0 : i32, i32
  }
  func.func @transform_20(%arg0: i32) -> (i32, i32) {
    %c0_i32 = arith.constant 0 : i32
    %c0_i32_0 = arith.constant 0 : i32
    %c0_i32_1 = arith.constant 0 : i32
    return %c0_i32, %c0_i32_0 : i32, i32
  }
  func.func @transform_21(%arg0: i32) -> (i32, i32) {
    %c0_i32 = arith.constant 0 : i32
    %c0_i32_0 = arith.constant 0 : i32
    %c0_i32_1 = arith.constant 0 : i32
    return %c0_i32, %c0_i32_0 : i32, i32
  }
  func.func @transform_22(%arg0: i32) -> (i32, i32) {
    %c0_i32 = arith.constant 0 : i32
    %c0_i32_0 = arith.constant 0 : i32
    %c0_i32_1 = arith.constant 0 : i32
    return %c0_i32, %c0_i32_0 : i32, i32
  }
  func.func @transform_23(%arg0: i32) -> (i32, i32) {
    %c0_i32 = arith.constant 0 : i32
    %c0_i32_0 = arith.constant 0 : i32
    %c0_i32_1 = arith.constant 0 : i32
    return %c0_i32, %c0_i32_0 : i32, i32
  }
}

module attributes {stable_mosaic.version = 11 : i64} {
  func.func @_egcl_vel_kernel(%arg0: i32, %arg1: memref<16x1xi32, #tpu.memory_space<vmem>>, %arg2: memref<16x1xi32, #tpu.memory_space<vmem>>, %arg3: memref<1x1x16xi32, #tpu.memory_space<vmem>>, %arg4: memref<8x128xf32, #tpu.memory_space<vmem>>, %arg5: memref<8x128xf32, #tpu.memory_space<vmem>>, %arg6: memref<8x128xf32, #tpu.memory_space<vmem>>, %arg7: memref<8x128xf32, #tpu.memory_space<vmem>>, %arg8: memref<256x128xf32, #tpu.memory_space<vmem>>, %arg9: memref<1x128xf32, #tpu.memory_space<vmem>>, %arg10: memref<1x128xf32, #tpu.memory_space<vmem>>, %arg11: memref<128x128xf32, #tpu.memory_space<vmem>>, %arg12: memref<1x128xf32, #tpu.memory_space<vmem>>, %arg13: memref<128x128xf32, #tpu.memory_space<vmem>>, %arg14: memref<1x128xf32, #tpu.memory_space<vmem>>, %arg15: memref<1x128xf32, #tpu.memory_space<vmem>>, %arg16: memref<256x128xf32, #tpu.memory_space<vmem>>, %arg17: memref<1x128xf32, #tpu.memory_space<vmem>>, %arg18: memref<128x128xf32, #tpu.memory_space<vmem>>, %arg19: memref<1x128xf32, #tpu.memory_space<vmem>>, %arg20: memref<128x128xf32, #tpu.memory_space<vmem>>, %arg21: memref<1x128xf32, #tpu.memory_space<vmem>>, %arg22: memref<1x128xf32, #tpu.memory_space<vmem>>, %arg23: memref<1x1xf32, #tpu.memory_space<vmem>>, %arg24: memref<8x256xf32, #tpu.memory_space<vmem>>, %arg25: memref<8x256xf32, #tpu.memory_space<vmem>>) attributes {dimension_semantics = [#tpu.dimension_semantics<arbitrary>], iteration_bounds = array<i64: 4>, scalar_prefetch = 0 : i64, scratch_operands = 1 : i64, tpu.core_type = #tpu.core_type<tc>, window_params = [{transform_indices = @transform_0, window_bounds = array<i64: 16, 1>}, {transform_indices = @transform_1, window_bounds = array<i64: 16, 1>}, {transform_indices = @transform_2, window_bounds = array<i64: 1, 1, 16>}, {pipeline_mode = #tpu.pipeline_mode<synchronous>, transform_indices = @transform_3, window_bounds = array<i64: 8, 128>}, {pipeline_mode = #tpu.pipeline_mode<synchronous>, transform_indices = @transform_4, window_bounds = array<i64: 8, 128>}, {pipeline_mode = #tpu.pipeline_mode<synchronous>, transform_indices = @transform_5, window_bounds = array<i64: 8, 128>}, {pipeline_mode = #tpu.pipeline_mode<synchronous>, transform_indices = @transform_6, window_bounds = array<i64: 8, 128>}, {pipeline_mode = #tpu.pipeline_mode<synchronous>, transform_indices = @transform_7, window_bounds = array<i64: 256, 128>}, {pipeline_mode = #tpu.pipeline_mode<synchronous>, transform_indices = @transform_8, window_bounds = array<i64: 1, 128>}, {pipeline_mode = #tpu.pipeline_mode<synchronous>, transform_indices = @transform_9, window_bounds = array<i64: 1, 128>}, {pipeline_mode = #tpu.pipeline_mode<synchronous>, transform_indices = @transform_10, window_bounds = array<i64: 128, 128>}, {pipeline_mode = #tpu.pipeline_mode<synchronous>, transform_indices = @transform_11, window_bounds = array<i64: 1, 128>}, {pipeline_mode = #tpu.pipeline_mode<synchronous>, transform_indices = @transform_12, window_bounds = array<i64: 128, 128>}, {pipeline_mode = #tpu.pipeline_mode<synchronous>, transform_indices = @transform_13, window_bounds = array<i64: 1, 128>}, {pipeline_mode = #tpu.pipeline_mode<synchronous>, transform_indices = @transform_14, window_bounds = array<i64: 1, 128>}, {pipeline_mode = #tpu.pipeline_mode<synchronous>, transform_indices = @transform_15, window_bounds = array<i64: 256, 128>}, {pipeline_mode = #tpu.pipeline_mode<synchronous>, transform_indices = @transform_16, window_bounds = array<i64: 1, 128>}, {pipeline_mode = #tpu.pipeline_mode<synchronous>, transform_indices = @transform_17, window_bounds = array<i64: 128, 128>}, {pipeline_mode = #tpu.pipeline_mode<synchronous>, transform_indices = @transform_18, window_bounds = array<i64: 1, 128>}, {pipeline_mode = #tpu.pipeline_mode<synchronous>, transform_indices = @transform_19, window_bounds = array<i64: 128, 128>}, {pipeline_mode = #tpu.pipeline_mode<synchronous>, transform_indices = @transform_20, window_bounds = array<i64: 1, 128>}, {pipeline_mode = #tpu.pipeline_mode<synchronous>, transform_indices = @transform_21, window_bounds = array<i64: 1, 128>}, {pipeline_mode = #tpu.pipeline_mode<synchronous>, transform_indices = @transform_22, window_bounds = array<i64: 1, 1>}, {pipeline_mode = #tpu.pipeline_mode<synchronous>, transform_indices = @transform_23, window_bounds = array<i64: 8, 256>}]} {
    %c0_i32 = arith.constant 0 : i32
    %0 = arith.cmpi eq, %arg0, %c0_i32 : i32
    %1 = arith.extui %0 : i1 to i32
    %c0_i32_0 = arith.constant 0 : i32
    %2 = arith.cmpi ne, %1, %c0_i32_0 : i32
    scf.if %2 {
      %cst_43 = arith.constant 0.000000e+00 : f32
      %84 = vector.broadcast %cst_43 : f32 to vector<8x256xf32>
      %c0_44 = arith.constant 0 : index
      %c0_45 = arith.constant 0 : index
      %85 = vector.load %arg25[%c0_44, %c0_45] : memref<8x256xf32, #tpu.memory_space<vmem>>, vector<8x256xf32>
      tpu.vector_store %arg25[%c0_44, %c0_45], %84 {strides = array<i32>} : memref<8x256xf32, #tpu.memory_space<vmem>>, vector<8x256xf32>,
    } else {
    }
    %3 = tpu.iota {dimensions = array<i32: 1>} : vector<16x8xi32>
    %c0 = arith.constant 0 : index
    %c0_1 = arith.constant 0 : index
    %4 = vector.load %arg1[%c0, %c0_1] : memref<16x1xi32, #tpu.memory_space<vmem>>, vector<16x1xi32>
    %5 = vector.broadcast %4 : vector<16x1xi32> to vector<16x8xi32>
    %6 = arith.cmpi eq, %5, %3 : vector<16x8xi32>
    %7 = arith.extui %6 : vector<16x8xi1> to vector<16x8xi32>
    %8 = arith.sitofp %7 : vector<16x8xi32> to vector<16x8xf32>
    %c0_2 = arith.constant 0 : index
    %c0_3 = arith.constant 0 : index
    %9 = vector.load %arg2[%c0_2, %c0_3] : memref<16x1xi32, #tpu.memory_space<vmem>>, vector<16x1xi32>
    %10 = vector.broadcast %9 : vector<16x1xi32> to vector<16x8xi32>
    %11 = arith.cmpi eq, %10, %3 : vector<16x8xi32>
    %12 = arith.extui %11 : vector<16x8xi1> to vector<16x8xi32>
    %13 = arith.sitofp %12 : vector<16x8xi32> to vector<16x8xf32>
    %c0_4 = arith.constant 0 : index
    %c0_5 = arith.constant 0 : index
    %14 = vector.load %arg4[%c0_4, %c0_5] : memref<8x128xf32, #tpu.memory_space<vmem>>, vector<8x128xf32>
    %cst = arith.constant dense<0.000000e+00> : vector<16x128xf32>
    %15 = tpu.matmul %8, %14, %cst {dimension_numbers = #tpu.dot_dimension_numbers<[1], [0], [0], [1], [0, 0, 1, 1], [], []>} : vector<16x8xf32>, vector<8x128xf32>, vector<16x128xf32> -> vector<16x128xf32>
    %cst_6 = arith.constant dense<0.000000e+00> : vector<16x128xf32>
    %16 = tpu.matmul %13, %14, %cst_6 {dimension_numbers = #tpu.dot_dimension_numbers<[1], [0], [0], [1], [0, 0, 1, 1], [], []>} : vector<16x8xf32>, vector<8x128xf32>, vector<16x128xf32> -> vector<16x128xf32>
    %17 = tpu.iota {dimensions = array<i32: 1>} : vector<1x128xi32>
    %c3_i32 = arith.constant 3 : i32
    %18 = vector.broadcast %c3_i32 : i32 to vector<1x128xi32>
    %19 = arith.cmpi slt, %17, %18 : vector<1x128xi32>
    %20 = arith.extui %19 : vector<1x128xi1> to vector<1x128xi32>
    %21 = arith.sitofp %20 : vector<1x128xi32> to vector<1x128xf32>
    %22 = arith.subf %15, %16 : vector<16x128xf32>
    %23 = vector.broadcast %21 : vector<1x128xf32> to vector<16x128xf32>
    %24 = arith.mulf %22, %23 : vector<16x128xf32>
    %25 = arith.mulf %24, %24 : vector<16x128xf32>
    %cst_7 = arith.constant dense<0.000000e+00> : vector<16xf32>
    %26 = vector.multi_reduction <add>, %25, %cst_7 [1] : vector<16x128xf32> to vector<16xf32>
    %27 = vector.shape_cast %26 : vector<16xf32> to vector<16x1xf32>
    %cst_8 = arith.constant 9.99999993E-9 : f32
    %28 = vector.broadcast %cst_8 : f32 to vector<16x1xf32>
    %29 = arith.addf %27, %28 : vector<16x1xf32>
    %30 = math.sqrt %29 : vector<16x1xf32>
    %cst_9 = arith.constant 1.000000e+00 : f32
    %31 = vector.broadcast %cst_9 : f32 to vector<16x1xf32>
    %32 = arith.addf %30, %31 : vector<16x1xf32>
    %33 = vector.broadcast %32 : vector<16x1xf32> to vector<16x128xf32>
    %34 = arith.divf %24, %33 : vector<16x128xf32>
    %35 = tpu.concatenate %15, %16 in 1 : vector<16x128xf32>, vector<16x128xf32> -> vector<16x256xf32>
    %c0_10 = arith.constant 0 : index
    %c0_11 = arith.constant 0 : index
    %36 = vector.load %arg8[%c0_10, %c0_11] : memref<256x128xf32, #tpu.memory_space<vmem>>, vector<256x128xf32>
    %cst_12 = arith.constant dense<0.000000e+00> : vector<16x128xf32>
    %37 = tpu.matmul %35, %36, %cst_12 {dimension_numbers = #tpu.dot_dimension_numbers<[1], [0], [0], [1], [0, 0, 1, 1], [], []>} : vector<16x256xf32>, vector<256x128xf32>, vector<16x128xf32> -> vector<16x128xf32>
    %c0_13 = arith.constant 0 : index
    %c0_14 = arith.constant 0 : index
    %38 = vector.load %arg9[%c0_13, %c0_14] : memref<1x128xf32, #tpu.memory_space<vmem>>, vector<1x128xf32>
    %39 = vector.broadcast %27 : vector<16x1xf32> to vector<16x128xf32>
    %40 = vector.broadcast %38 : vector<1x128xf32> to vector<16x128xf32>
    %41 = arith.mulf %39, %40 : vector<16x128xf32>
    %42 = arith.addf %37, %41 : vector<16x128xf32>
    %c0_15 = arith.constant 0 : index
    %c0_16 = arith.constant 0 : index
    %43 = vector.load %arg10[%c0_15, %c0_16] : memref<1x128xf32, #tpu.memory_space<vmem>>, vector<1x128xf32>
    %44 = vector.broadcast %43 : vector<1x128xf32> to vector<16x128xf32>
    %45 = arith.addf %42, %44 : vector<16x128xf32>
    %cst_17 = arith.constant 0.000000e+00 : f32
    %46 = vector.broadcast %cst_17 : f32 to vector<16x128xf32>
    %47 = arith.maximumf %45, %46 : vector<16x128xf32>
    %c0_18 = arith.constant 0 : index
    %c0_19 = arith.constant 0 : index
    %48 = vector.load %arg11[%c0_18, %c0_19] : memref<128x128xf32, #tpu.memory_space<vmem>>, vector<128x128xf32>
    %cst_20 = arith.constant dense<0.000000e+00> : vector<16x128xf32>
    %49 = tpu.matmul %47, %48, %cst_20 {dimension_numbers = #tpu.dot_dimension_numbers<[1], [0], [0], [1], [0, 0, 1, 1], [], []>} : vector<16x128xf32>, vector<128x128xf32>, vector<16x128xf32> -> vector<16x128xf32>
    %c0_21 = arith.constant 0 : index
    %c0_22 = arith.constant 0 : index
    %50 = vector.load %arg12[%c0_21, %c0_22] : memref<1x128xf32, #tpu.memory_space<vmem>>, vector<1x128xf32>
    %51 = vector.broadcast %50 : vector<1x128xf32> to vector<16x128xf32>
    %52 = arith.addf %49, %51 : vector<16x128xf32>
    %cst_23 = arith.constant 0.000000e+00 : f32
    %53 = vector.broadcast %cst_23 : f32 to vector<16x128xf32>
    %54 = arith.maximumf %52, %53 : vector<16x128xf32>
    %c0_24 = arith.constant 0 : index
    %c0_25 = arith.constant 0 : index
    %55 = vector.load %arg13[%c0_24, %c0_25] : memref<128x128xf32, #tpu.memory_space<vmem>>, vector<128x128xf32>
    %cst_26 = arith.constant dense<0.000000e+00> : vector<16x128xf32>
    %56 = tpu.matmul %54, %55, %cst_26 {dimension_numbers = #tpu.dot_dimension_numbers<[1], [0], [0], [1], [0, 0, 1, 1], [], []>} : vector<16x128xf32>, vector<128x128xf32>, vector<16x128xf32> -> vector<16x128xf32>
    %c0_27 = arith.constant 0 : index
    %c0_28 = arith.constant 0 : index
    %57 = vector.load %arg14[%c0_27, %c0_28] : memref<1x128xf32, #tpu.memory_space<vmem>>, vector<1x128xf32>
    %58 = vector.broadcast %57 : vector<1x128xf32> to vector<16x128xf32>
    %59 = arith.addf %56, %58 : vector<16x128xf32>
    %cst_29 = arith.constant 0.000000e+00 : f32
    %60 = vector.broadcast %cst_29 : f32 to vector<16x128xf32>
    %61 = arith.maximumf %59, %60 : vector<16x128xf32>
    %c0_30 = arith.constant 0 : index
    %c0_31 = arith.constant 0 : index
    %62 = vector.load %arg15[%c0_30, %c0_31] : memref<1x128xf32, #tpu.memory_space<vmem>>, vector<1x128xf32>
    %63 = vector.broadcast %62 : vector<1x128xf32> to vector<16x128xf32>
    %64 = arith.mulf %61, %63 : vector<16x128xf32>
    %cst_32 = arith.constant dense<0.000000e+00> : vector<16xf32>
    %65 = vector.multi_reduction <add>, %64, %cst_32 [1] : vector<16x128xf32> to vector<16xf32>
    %66 = vector.shape_cast %65 : vector<16xf32> to vector<16x1xf32>
    %67 = vector.broadcast %66 : vector<16x1xf32> to vector<16x128xf32>
    %68 = arith.mulf %34, %67 : vector<16x128xf32>
    %69 = tpu.concatenate %54, %68 in 1 : vector<16x128xf32>, vector<16x128xf32> -> vector<16x256xf32>
    %70 = tpu.iota {dimensions = array<i32: 0>} : vector<8x16xi32>
    %c0_33 = arith.constant 0 : index
    %c0_34 = arith.constant 0 : index
    %c0_35 = arith.constant 0 : index
    %71 = vector.load %arg3[%c0_33, %c0_34, %c0_35] : memref<1x1x16xi32, #tpu.memory_space<vmem>>, vector<1x1x16xi32>
    %72 = vector.shape_cast %71 : vector<1x1x16xi32> to vector<1x16xi32>
    %73 = vector.broadcast %72 : vector<1x16xi32> to vector<8x16xi32>
    %74 = arith.cmpi eq, %73, %70 : vector<8x16xi32>
    %75 = arith.extui %74 : vector<8x16xi1> to vector<8x16xi32>
    %76 = arith.sitofp %75 : vector<8x16xi32> to vector<8x16xf32>
    %c0_36 = arith.constant 0 : index
    %c0_37 = arith.constant 0 : index
    %77 = vector.load %arg25[%c0_36, %c0_37] : memref<8x256xf32, #tpu.memory_space<vmem>>, vector<8x256xf32>
    %cst_38 = arith.constant dense<0.000000e+00> : vector<8x256xf32>
    %78 = tpu.matmul %76, %69, %cst_38 {dimension_numbers = #tpu.dot_dimension_numbers<[1], [0], [0], [1], [0, 0, 1, 1], [], []>} : vector<8x16xf32>, vector<16x256xf32>, vector<8x256xf32> -> vector<8x256xf32>
    %79 = arith.addf %77, %78 : vector<8x256xf32>
    %c0_39 = arith.constant 0 : index
    %c0_40 = arith.constant 0 : index
    %80 = vector.load %arg25[%c0_39, %c0_40] : memref<8x256xf32, #tpu.memory_space<vmem>>, vector<8x256xf32>
    tpu.vector_store %arg25[%c0_39, %c0_40], %79 {strides = array<i32>} : memref<8x256xf32, #tpu.memory_space<vmem>>, vector<8x256xf32>,
    %c3_i32_41 = arith.constant 3 : i32
    %81 = arith.cmpi eq, %arg0, %c3_i32_41 : i32
    %82 = arith.extui %81 : i1 to i32
    %c0_i32_42 = arith.constant 0 : i32
    %83 = arith.cmpi ne, %82, %c0_i32_42 : i32
    scf.if %83 {
      %c0_43 = arith.constant 0 : index
      %c0_44 = arith.constant 0 : index
      %84 = vector.load %arg25[%c0_43, %c0_44] : memref<8x256xf32, #tpu.memory_space<vmem>>, vector<8x256xf32>
      %85 = vector.extract_strided_slice %84 {offsets = [0, 0], sizes = [8, 128], strides = [1, 1]} : vector<8x256xf32> to vector<8x128xf32>
      %86 = vector.extract_strided_slice %84 {offsets = [0, 128], sizes = [8, 128], strides = [1, 1]} : vector<8x256xf32> to vector<8x128xf32>
      %c0_45 = arith.constant 0 : index
      %c0_46 = arith.constant 0 : index
      %87 = vector.load %arg5[%c0_45, %c0_46] : memref<8x128xf32, #tpu.memory_space<vmem>>, vector<8x128xf32>
      %88 = tpu.concatenate %87, %85 in 1 : vector<8x128xf32>, vector<8x128xf32> -> vector<8x256xf32>
      %c0_47 = arith.constant 0 : index
      %c0_48 = arith.constant 0 : index
      %89 = vector.load %arg16[%c0_47, %c0_48] : memref<256x128xf32, #tpu.memory_space<vmem>>, vector<256x128xf32>
      %cst_49 = arith.constant dense<0.000000e+00> : vector<8x128xf32>
      %90 = tpu.matmul %88, %89, %cst_49 {dimension_numbers = #tpu.dot_dimension_numbers<[1], [0], [0], [1], [0, 0, 1, 1], [], []>} : vector<8x256xf32>, vector<256x128xf32>, vector<8x128xf32> -> vector<8x128xf32>
      %c0_50 = arith.constant 0 : index
      %c0_51 = arith.constant 0 : index
      %91 = vector.load %arg17[%c0_50, %c0_51] : memref<1x128xf32, #tpu.memory_space<vmem>>, vector<1x128xf32>
      %92 = vector.broadcast %91 : vector<1x128xf32> to vector<8x128xf32>
      %93 = arith.addf %90, %92 : vector<8x128xf32>
      %cst_52 = arith.constant 0.000000e+00 : f32
      %94 = vector.broadcast %cst_52 : f32 to vector<8x128xf32>
      %95 = arith.maximumf %93, %94 : vector<8x128xf32>
      %c0_53 = arith.constant 0 : index
      %c0_54 = arith.constant 0 : index
      %96 = vector.load %arg18[%c0_53, %c0_54] : memref<128x128xf32, #tpu.memory_space<vmem>>, vector<128x128xf32>
      %cst_55 = arith.constant dense<0.000000e+00> : vector<8x128xf32>
      %97 = tpu.matmul %95, %96, %cst_55 {dimension_numbers = #tpu.dot_dimension_numbers<[1], [0], [0], [1], [0, 0, 1, 1], [], []>} : vector<8x128xf32>, vector<128x128xf32>, vector<8x128xf32> -> vector<8x128xf32>
      %c0_56 = arith.constant 0 : index
      %c0_57 = arith.constant 0 : index
      %98 = vector.load %arg19[%c0_56, %c0_57] : memref<1x128xf32, #tpu.memory_space<vmem>>, vector<1x128xf32>
      %99 = vector.broadcast %98 : vector<1x128xf32> to vector<8x128xf32>
      %100 = arith.addf %97, %99 : vector<8x128xf32>
      %101 = arith.addf %87, %100 : vector<8x128xf32>
      %c0_58 = arith.constant 0 : index
      %c0_59 = arith.constant 0 : index
      %102 = vector.load %arg20[%c0_58, %c0_59] : memref<128x128xf32, #tpu.memory_space<vmem>>, vector<128x128xf32>
      %cst_60 = arith.constant dense<0.000000e+00> : vector<8x128xf32>
      %103 = tpu.matmul %87, %102, %cst_60 {dimension_numbers = #tpu.dot_dimension_numbers<[1], [0], [0], [1], [0, 0, 1, 1], [], []>} : vector<8x128xf32>, vector<128x128xf32>, vector<8x128xf32> -> vector<8x128xf32>
      %c0_61 = arith.constant 0 : index
      %c0_62 = arith.constant 0 : index
      %104 = vector.load %arg21[%c0_61, %c0_62] : memref<1x128xf32, #tpu.memory_space<vmem>>, vector<1x128xf32>
      %105 = vector.broadcast %104 : vector<1x128xf32> to vector<8x128xf32>
      %106 = arith.addf %103, %105 : vector<8x128xf32>
      %cst_63 = arith.constant 0.000000e+00 : f32
      %107 = vector.broadcast %cst_63 : f32 to vector<8x128xf32>
      %108 = arith.maximumf %106, %107 : vector<8x128xf32>
      %c0_64 = arith.constant 0 : index
      %c0_65 = arith.constant 0 : index
      %109 = vector.load %arg22[%c0_64, %c0_65] : memref<1x128xf32, #tpu.memory_space<vmem>>, vector<1x128xf32>
      %110 = vector.broadcast %109 : vector<1x128xf32> to vector<8x128xf32>
      %111 = arith.mulf %108, %110 : vector<8x128xf32>
      %cst_66 = arith.constant dense<0.000000e+00> : vector<8xf32>
      %112 = vector.multi_reduction <add>, %111, %cst_66 [1] : vector<8x128xf32> to vector<8xf32>
      %113 = vector.shape_cast %112 : vector<8xf32> to vector<8x1xf32>
      %c0_67 = arith.constant 0 : index
      %c0_68 = arith.constant 0 : index
      %114 = vector.load %arg23[%c0_67, %c0_68] : memref<1x1xf32, #tpu.memory_space<vmem>>, vector<1x1xf32>
      %115 = vector.broadcast %114 : vector<1x1xf32> to vector<8x1xf32>
      %116 = arith.addf %113, %115 : vector<8x1xf32>
      %c0_69 = arith.constant 0 : index
      %c0_70 = arith.constant 0 : index
      %117 = vector.load %arg6[%c0_69, %c0_70] : memref<8x128xf32, #tpu.memory_space<vmem>>, vector<8x128xf32>
      %118 = arith.addf %117, %86 : vector<8x128xf32>
      %c0_71 = arith.constant 0 : index
      %c0_72 = arith.constant 0 : index
      %119 = vector.load %arg7[%c0_71, %c0_72] : memref<8x128xf32, #tpu.memory_space<vmem>>, vector<8x128xf32>
      %120 = vector.broadcast %116 : vector<8x1xf32> to vector<8x128xf32>
      %121 = arith.mulf %120, %119 : vector<8x128xf32>
      %122 = arith.addf %118, %121 : vector<8x128xf32>
      %123 = tpu.concatenate %101, %122 in 1 : vector<8x128xf32>, vector<8x128xf32> -> vector<8x256xf32>
      %c0_73 = arith.constant 0 : index
      %c0_74 = arith.constant 0 : index
      %124 = vector.load %arg24[%c0_73, %c0_74] : memref<8x256xf32, #tpu.memory_space<vmem>>, vector<8x256xf32>
      tpu.vector_store %arg24[%c0_73, %c0_74], %123 {strides = array<i32>} : memref<8x256xf32, #tpu.memory_space<vmem>>, vector<8x256xf32>,
    } else {
    }
    return
  }
  func.func @transform_0(%arg0: i32) -> (i32, i32) {
    %c0_i32 = arith.constant 0 : i32
    %c0_i32_0 = arith.constant 0 : i32
    return %arg0, %c0_i32 : i32, i32
  }
  func.func @transform_1(%arg0: i32) -> (i32, i32) {
    %c0_i32 = arith.constant 0 : i32
    %c0_i32_0 = arith.constant 0 : i32
    return %arg0, %c0_i32 : i32, i32
  }
  func.func @transform_2(%arg0: i32) -> (i32, i32, i32) {
    %c0_i32 = arith.constant 0 : i32
    %c0_i32_0 = arith.constant 0 : i32
    %c0_i32_1 = arith.constant 0 : i32
    return %arg0, %c0_i32, %c0_i32_0 : i32, i32, i32
  }
  func.func @transform_3(%arg0: i32) -> (i32, i32) {
    %c0_i32 = arith.constant 0 : i32
    %c0_i32_0 = arith.constant 0 : i32
    %c0_i32_1 = arith.constant 0 : i32
    return %c0_i32, %c0_i32_0 : i32, i32
  }
  func.func @transform_4(%arg0: i32) -> (i32, i32) {
    %c0_i32 = arith.constant 0 : i32
    %c0_i32_0 = arith.constant 0 : i32
    %c0_i32_1 = arith.constant 0 : i32
    return %c0_i32, %c0_i32_0 : i32, i32
  }
  func.func @transform_5(%arg0: i32) -> (i32, i32) {
    %c0_i32 = arith.constant 0 : i32
    %c0_i32_0 = arith.constant 0 : i32
    %c0_i32_1 = arith.constant 0 : i32
    return %c0_i32, %c0_i32_0 : i32, i32
  }
  func.func @transform_6(%arg0: i32) -> (i32, i32) {
    %c0_i32 = arith.constant 0 : i32
    %c0_i32_0 = arith.constant 0 : i32
    %c0_i32_1 = arith.constant 0 : i32
    return %c0_i32, %c0_i32_0 : i32, i32
  }
  func.func @transform_7(%arg0: i32) -> (i32, i32) {
    %c0_i32 = arith.constant 0 : i32
    %c0_i32_0 = arith.constant 0 : i32
    %c0_i32_1 = arith.constant 0 : i32
    return %c0_i32, %c0_i32_0 : i32, i32
  }
  func.func @transform_8(%arg0: i32) -> (i32, i32) {
    %c0_i32 = arith.constant 0 : i32
    %c0_i32_0 = arith.constant 0 : i32
    %c0_i32_1 = arith.constant 0 : i32
    return %c0_i32, %c0_i32_0 : i32, i32
  }
  func.func @transform_9(%arg0: i32) -> (i32, i32) {
    %c0_i32 = arith.constant 0 : i32
    %c0_i32_0 = arith.constant 0 : i32
    %c0_i32_1 = arith.constant 0 : i32
    return %c0_i32, %c0_i32_0 : i32, i32
  }
  func.func @transform_10(%arg0: i32) -> (i32, i32) {
    %c0_i32 = arith.constant 0 : i32
    %c0_i32_0 = arith.constant 0 : i32
    %c0_i32_1 = arith.constant 0 : i32
    return %c0_i32, %c0_i32_0 : i32, i32
  }
  func.func @transform_11(%arg0: i32) -> (i32, i32) {
    %c0_i32 = arith.constant 0 : i32
    %c0_i32_0 = arith.constant 0 : i32
    %c0_i32_1 = arith.constant 0 : i32
    return %c0_i32, %c0_i32_0 : i32, i32
  }
  func.func @transform_12(%arg0: i32) -> (i32, i32) {
    %c0_i32 = arith.constant 0 : i32
    %c0_i32_0 = arith.constant 0 : i32
    %c0_i32_1 = arith.constant 0 : i32
    return %c0_i32, %c0_i32_0 : i32, i32
  }
  func.func @transform_13(%arg0: i32) -> (i32, i32) {
    %c0_i32 = arith.constant 0 : i32
    %c0_i32_0 = arith.constant 0 : i32
    %c0_i32_1 = arith.constant 0 : i32
    return %c0_i32, %c0_i32_0 : i32, i32
  }
  func.func @transform_14(%arg0: i32) -> (i32, i32) {
    %c0_i32 = arith.constant 0 : i32
    %c0_i32_0 = arith.constant 0 : i32
    %c0_i32_1 = arith.constant 0 : i32
    return %c0_i32, %c0_i32_0 : i32, i32
  }
  func.func @transform_15(%arg0: i32) -> (i32, i32) {
    %c0_i32 = arith.constant 0 : i32
    %c0_i32_0 = arith.constant 0 : i32
    %c0_i32_1 = arith.constant 0 : i32
    return %c0_i32, %c0_i32_0 : i32, i32
  }
  func.func @transform_16(%arg0: i32) -> (i32, i32) {
    %c0_i32 = arith.constant 0 : i32
    %c0_i32_0 = arith.constant 0 : i32
    %c0_i32_1 = arith.constant 0 : i32
    return %c0_i32, %c0_i32_0 : i32, i32
  }
  func.func @transform_17(%arg0: i32) -> (i32, i32) {
    %c0_i32 = arith.constant 0 : i32
    %c0_i32_0 = arith.constant 0 : i32
    %c0_i32_1 = arith.constant 0 : i32
    return %c0_i32, %c0_i32_0 : i32, i32
  }
  func.func @transform_18(%arg0: i32) -> (i32, i32) {
    %c0_i32 = arith.constant 0 : i32
    %c0_i32_0 = arith.constant 0 : i32
    %c0_i32_1 = arith.constant 0 : i32
    return %c0_i32, %c0_i32_0 : i32, i32
  }
  func.func @transform_19(%arg0: i32) -> (i32, i32) {
    %c0_i32 = arith.constant 0 : i32
    %c0_i32_0 = arith.constant 0 : i32
    %c0_i32_1 = arith.constant 0 : i32
    return %c0_i32, %c0_i32_0 : i32, i32
  }
  func.func @transform_20(%arg0: i32) -> (i32, i32) {
    %c0_i32 = arith.constant 0 : i32
    %c0_i32_0 = arith.constant 0 : i32
    %c0_i32_1 = arith.constant 0 : i32
    return %c0_i32, %c0_i32_0 : i32, i32
  }
  func.func @transform_21(%arg0: i32) -> (i32, i32) {
    %c0_i32 = arith.constant 0 : i32
    %c0_i32_0 = arith.constant 0 : i32
    %c0_i32_1 = arith.constant 0 : i32
    return %c0_i32, %c0_i32_0 : i32, i32
  }
  func.func @transform_22(%arg0: i32) -> (i32, i32) {
    %c0_i32 = arith.constant 0 : i32
    %c0_i32_0 = arith.constant 0 : i32
    %c0_i32_1 = arith.constant 0 : i32
    return %c0_i32, %c0_i32_0 : i32, i32
  }
  func.func @transform_23(%arg0: i32) -> (i32, i32) {
    %c0_i32 = arith.constant 0 : i32
    %c0_i32_0 = arith.constant 0 : i32
    %c0_i32_1 = arith.constant 0 : i32
    return %c0_i32, %c0_i32_0 : i32, i32
  }
}

</mosaic_0001>

<bundles_post_ra>
// kernel: tpu_custom_call.1
= control target key start
LH: loop header
LB: loop body
LE: loop exit
PB: predicated region body
PF: predicated region fallthrough
CT: control target
= control target key end

     0   :  { %s3119_s0 = inlined_call_operand.vmem [shape: s32[64,1], index: 0, kind: input, shape index: {}]   ;;  %s3120_s1 = inlined_call_operand.vmem [shape: s32[64,1], index: 1, kind: input, shape index: {}]   ;;  %s3121_s2 = inlined_call_operand.vmem [shape: s32[4,1,16], index: 2, kind: input, shape index: {}]   ;;  %s3122_s3 = inlined_call_operand.vmem [shape: f32[8,128], index: 3, kind: input, shape index: {}]   ;;  %s3123_s4 = inlined_call_operand.vmem [shape: f32[8,128], index: 4, kind: input, shape index: {}]   ;;  %s3124_s5 = inlined_call_operand.hbm [shape: f32[8,128], index: 5, kind: input, shape index: {}]   ;;  %s3125_s6 = inlined_call_operand.hbm [shape: f32[8,128], index: 6, kind: input, shape index: {}]   ;;  %s3126_s7 = inlined_call_operand.hbm [shape: f32[256,128], index: 7, kind: input, shape index: {}]   ;;  %s3127_s8 = inlined_call_operand.vmem [shape: f32[1,128], index: 8, kind: input, shape index: {}]   ;;  %s3128_s9 = inlined_call_operand.vmem [shape: f32[1,128], index: 9, kind: input, shape index: {}]   ;;  %s3129_s10 = inlined_call_operand.vmem [shape: f32[128,128], index: 10, kind: input, shape index: {}]   ;;  %s3130_s11 = inlined_call_operand.vmem [shape: f32[1,128], index: 11, kind: input, shape index: {}]   ;;  %s3131_s12 = inlined_call_operand.hbm [shape: f32[128,128], index: 12, kind: input, shape index: {}]   ;;  %s3132_s13 = inlined_call_operand.vmem [shape: f32[1,128], index: 13, kind: input, shape index: {}]   ;;  %s3133_s14 = inlined_call_operand.vmem [shape: f32[1,128], index: 14, kind: input, shape index: {}]   ;;  %s3134_s15 = inlined_call_operand.hbm [shape: f32[256,128], index: 15, kind: input, shape index: {}]   ;;  %s3135_s16 = inlined_call_operand.vmem [shape: f32[1,128], index: 16, kind: input, shape index: {}]   ;;  %s3136_s17 = inlined_call_operand.hbm [shape: f32[128,128], index: 17, kind: input, shape index: {}]   ;;  %s3137_s18 = inlined_call_operand.vmem [shape: f32[1,128], index: 18, kind: input, shape index: {}]   ;;  %s3138_s19 = inlined_call_operand.hbm [shape: f32[128,128], index: 19, kind: input, shape index: {}]   ;;  %s3139_s20 = inlined_call_operand.vmem [shape: f32[1,128], index: 20, kind: input, shape index: {}]   ;;  %s3140_s21 = inlined_call_operand.vmem [shape: f32[1,128], index: 21, kind: input, shape index: {}]   ;;  %s3141_s22 = inlined_call_operand.<no memory space> [shape: f32[1,1], index: 22, kind: input, shape index: {}]   ;;  %s3142_s23 = inlined_call_operand.hbm [shape: f32[8,256], index: 23, kind: output, shape index: {}]  }
   0x1   :  { %3145 = sst [smem:[#allocation22_spill]] %s3119_s0  ;;  %v28_v0 = vstv %s3141_s22 }
   0x2   :  { %3146 = sst [smem:[#allocation23_spill]] %s3120_s1  ;;  %29 = vst [vmem:[#allocation3] sm:$0x1] %v28_v0 }
   0x3   :  { %3147 = sst [smem:[#allocation24_spill]] %s3121_s2 }
   0x4   :  { %3148 = sst [smem:[#allocation25_spill]] %s3122_s3 }
   0x5   :  { %3149 = sst [smem:[#allocation26_spill]] %s3123_s4 }
   0x6   :  { %3150 = sst [smem:[#allocation27_spill]] %s3124_s5 }
   0x7   :  { %3151 = sst [smem:[#allocation28_spill]] %s3125_s6 }
   0x8   :  { %3152 = sst [smem:[#allocation29_spill]] %s3126_s7 }
   0x9   :  { %3153 = sst [smem:[#allocation30_spill]] %s3131_s12 }
   0xa   :  { %30 = vsyncpa [#allocation5], 0 }
   0xb   :  { %31 = vsyncpa [#allocation8], 0 }
   0xc   :  { %32 = vsyncpa [#allocation11], 0 }
   0xd   :  { %33 = vsyncpa [#allocation14], 0 }
   0xe   :  { %34 = vsyncpa [#allocation6], 0  ;;  %s2801_s24 = smov 0  }
   0xf LB: > { %s2662_s25 = smov [#allocation7]   ;;  %s2807_s1 = sadd.s32 4294967295, %s2660_s24   ;;  %s2660_s24 = sphi %s2801_s24, %s40_s24  }
  0x10   : > { %s594_s5 = sshll.u32 %s2662_s25, 4  ;;  %p1975_p0 = scmp.ge.s32.totalorder %s2660_s24, 1  ;;  %s595_s5 = int_to_ptr.vmem [resolvable:$true] %s594_s5 }
  0x11   : > { %p564_p1 = scmp.lt.s32.totalorder %s2660_s24, 5  ;;  %p1976_p2 = scmp.ne.s32.totalorder %s2807_s1, 0 }
  0x12   : > { %p2377_p3 = scmp.eq.s32.totalorder %s2807_s1, 0  ;;  %s2663_s26 = smov [#allocation10]  }
  0x13   : > { %p2813_p4 = pnand %p1975_p0, %p564_p1  ;;  %s629_s2 = sshll.u32 %s2663_s26, 4  ;;  %s2819_s2 = int_to_ptr.vmem [resolvable:$true] %s629_s2 }
  0x14   : > { %s2664_s27 = smov [#allocation13]   ;;  %s2665_s28 = smov [#allocation4]  }
  0x15   : > { %p2355_p5 = pneg %p2813_p4  ;;  %s664_s7 = sshll.u32 %s2664_s27, 4  ;;  %s2827_s7 = int_to_ptr.vmem [resolvable:$true] %s664_s7 }
  0x16   : > { %s2829_s29 = sshll.u32 %s2665_s28, 4  ;;  %s2439_s0 = scalar_lea.vmem %s595_s5, 128  ;;  %s584_s29 = int_to_ptr.vmem [resolvable:$true] %s2829_s29 }
  0x17   : > { %p2823_p6 = pnand %p2377_p3, %p2355_p5  ;;  %p2440_p8 = scmp.ne.s32.totalorder %s595_s5, %s2439_s0 }
  0x18   : > { %p2447_p11 = scmp.lt.s32.totalorder %s595_s5, %s595_s5  ;;  %p2448_p12 = scmp.lt.s32.totalorder %s2439_s0, %s2439_s0 }
  0x19   : > { %p2833_p7 = pneg %p2823_p6 }
  0x1a   : > { %p2449_p13 = por %p2448_p12, %p2447_p11 }
  0x1b   : > { %p2442_p9 = pnand %p2440_p8, %p2833_p7 }
  0x1d   : > { %p2443_p10 = pneg %p2442_p9 }
  0x1f   : > { %p2450_p0 = pnand %p2449_p13, %p2443_p10 }
  0x21   : > { %2453 = shalt.err (!%p2450_p0)
}
  0x22   : > { %s3157_s25 = sld [smem:[#allocation28_spill]]  ;;  %s2465_s26 = scalar_lea.vmem %s2819_s2, 2048 }
  0x23   : > { %p2466_p1 = scmp.ne.s32.totalorder %s2819_s2, %s2465_s26  ;;  %p2473_p9 = scmp.lt.s32.totalorder %s2819_s2, %s2819_s2 }
  0x24   : > { %p2474_p11 = scmp.lt.s32.totalorder %s2465_s26, %s2465_s26 }
  0x25   : > { %p2468_p5 = pnand %p2466_p1, %p2833_p7 }
  0x26   : > { %p2475_p10 = por %p2474_p11, %p2473_p9 }
  0x27   : > { %p2469_p8 = pneg %p2468_p5 }
  0x28   : > { %2361 = dma.hbm_to_vmem [thread:$0]  (!%p2823_p6), %s3157_s25, 128, %s595_s5, [#allocation8]  }
  0x29   : > { %p2476_p12 = pnand %p2475_p10, %p2469_p8 }
  0x2b   : > { %2479 = shalt.err (!%p2476_p12)
}
  0x2c   : > { %s3143_s27 = smov 128   ;;  %s2667_s28 = smov 8  }
  0x2d   : > { %s3158_s12 = sld [smem:[#allocation30_spill]]  ;;  %s2491_s4 = scalar_lea.vmem %s2827_s7, 2048 }
  0x2e   : > { %p2492_p13 = scmp.ne.s32.totalorder %s2827_s7, %s2491_s4  ;;  %p2499_p5 = scmp.lt.s32.totalorder %s2827_s7, %s2827_s7 }
  0x2f   : > { %p2500_p8 = scmp.lt.s32.totalorder %s2491_s4, %s2491_s4 }
  0x30   : > { %p2494_p0 = pnand %p2492_p13, %p2833_p7 }
  0x31   : > { %p2501_p9 = por %p2500_p8, %p2499_p5 }
  0x32   : > { %p2495_p1 = pneg %p2494_p0 }
  0x33   : > { %2367 = dma.hbm_to_vmem [thread:$0]  (!%p2823_p6), %s3158_s12, 2048, %s2819_s2, [#allocation11], %s3143_s27, %s3143_s27, %s2667_s28  }
  0x34   : > { %p2502_p11 = pnand %p2501_p9, %p2495_p1 }
  0x36   : > { %2505 = shalt.err (!%p2502_p11)
}
  0x37   : > { %2373 = dma.hbm_to_vmem [thread:$0]  (!%p2823_p6), %s3136_s17, 2048, %s2827_s7, [#allocation14], %s3143_s27, %s3143_s27, %s2667_s28  }
  0x38   : > { %s2517_s2 = scalar_lea.vmem %s584_s29, 128  ;;  %p2525_p0 = scmp.lt.s32.totalorder %s584_s29, %s584_s29 }
  0x39   : > { %p2518_p10 = scmp.ne.s32.totalorder %s584_s29, %s2517_s2  ;;  %p2526_p1 = scmp.lt.s32.totalorder %s2517_s2, %s2517_s2 }
  0x3b   : > { %p2520_p12 = pnand %p2518_p10, %p2833_p7  ;;  %p2527_p5 = por %p2526_p1, %p2525_p0 }
  0x3d   : > { %p2521_p13 = pneg %p2520_p12 }
  0x3f   : > { %p2528_p8 = pnand %p2527_p5, %p2521_p13 }
  0x41   : > { %2531 = shalt.err (!%p2528_p8)
}
  0x42   : > { %s3159_s0 = sld [smem:[#allocation27_spill]]  ;;  %s2668_s4 = smov [#allocation9]  }
  0x43   : > { %s604_s7 = sshll.u32 %s2668_s4, 4  ;;  %s2669_s30 = smov [#allocation12]   ;;  %s605_s7 = int_to_ptr.vmem [resolvable:$true] %s604_s7 }
  0x44   : > { %s648_s25 = sshll.u32 %s2669_s30, 4  ;;  %s2543_s27 = scalar_lea.vmem %s605_s7, 4096  ;;  %s649_s25 = int_to_ptr.vmem [resolvable:$true] %s648_s25 }
  0x45   : > { %p2544_p9 = scmp.ne.s32.totalorder %s605_s7, %s2543_s27  ;;  %p2551_p12 = scmp.lt.s32.totalorder %s605_s7, %s605_s7 }
  0x46   : > { %p2552_p13 = scmp.lt.s32.totalorder %s2543_s27, %s2543_s27 }
  0x47   : > { %p2546_p11 = pnand %p2544_p9, %p2833_p7 }
  0x48   : > { %2358 = dma.hbm_to_vmem [thread:$0]  (!%p2823_p6), %s3159_s0, 128, %s584_s29, [#allocation5]  }
  0x49   : > { %p2547_p10 = pneg %p2546_p11  ;;  %p2553_p0 = por %p2552_p13, %p2551_p12 }
  0x4b   : > { %p2554_p1 = pnand %p2553_p0, %p2547_p10 }
  0x4d   : > { %2557 = shalt.err (!%p2554_p1)
}
  0x4e   : > { %s3160_s2 = smov 128   ;;  %s3161_s5 = sld [smem:[#allocation29_spill]] }
  0x4f   : > { %s2569_s0 = scalar_lea.vmem %s649_s25, 4096  ;;  %p2577_p11 = scmp.lt.s32.totalorder %s649_s25, %s649_s25 }
  0x50   : > { %p2570_p5 = scmp.ne.s32.totalorder %s649_s25, %s2569_s0  ;;  %p2578_p12 = scmp.lt.s32.totalorder %s2569_s0, %s2569_s0 }
  0x52   : > { %p2572_p8 = pnand %p2570_p5, %p2833_p7  ;;  %p2579_p10 = por %p2578_p12, %p2577_p11 }
  0x54   : > { %2364 = dma.hbm_to_vmem [thread:$0]  (!%p2823_p6), %s3161_s5, 4096, %s605_s7, [#allocation8], %s3160_s2, %s3160_s2, %s2667_s28  }
  0x55   : > { %p2573_p9 = pneg %p2572_p8 }
  0x57   : > { %p2580_p13 = pnand %p2579_p10, %p2573_p9 }
  0x59   : > { %2583 = shalt.err (!%p2580_p13)
}
  0x5a   : > { %2370 = dma.hbm_to_vmem [thread:$0]  (!%p2823_p6), %s3134_s15, 4096, %s649_s25, [#allocation11], %s3160_s2, %s3160_s2, %s2667_s28  }
  0x5b   : > { %s2670_s7 = smov [#allocation15]  }
  0x5c   : > { %s680_s30 = sshll.u32 %s2670_s7, 4  ;;  %s681_s30 = int_to_ptr.vmem [resolvable:$true] %s680_s30 }
  0x5d   : > { %s2595_s29 = scalar_lea.vmem %s681_s30, 2048  ;;  %p2603_p8 = scmp.lt.s32.totalorder %s681_s30, %s681_s30 }
  0x5e   : > { %p2596_p0 = scmp.ne.s32.totalorder %s681_s30, %s2595_s29  ;;  %p2604_p9 = scmp.lt.s32.totalorder %s2595_s29, %s2595_s29 }
  0x60   : > { %p2598_p1 = pnand %p2596_p0, %p2833_p7  ;;  %p2605_p11 = por %p2604_p9, %p2603_p8 }
  0x62   : > { %p2599_p5 = pneg %p2598_p1 }
  0x64   : > { %p2606_p12 = pnand %p2605_p11, %p2599_p5 }
  0x66   : > { %2609 = shalt.err (!%p2606_p12)
}
  0x67   : > { %2376 = dma.hbm_to_vmem [thread:$0]  (!%p2823_p6), %s3138_s19, 2048, %s681_s30, [#allocation14], %s3160_s2, %s3160_s2, %s2667_s28  }
  0x68   : > { %729 = sbr.rel (%p2813_p4) target bundleno = 1959 (0x7a7), region = 112 }
  0x6d   : > { %2639 = dma.done.wait (%p2377_p3), [#allocation5], 128  }
  0x6e   : > { %2641 = vsyncadd (%p2377_p3), [#allocation5], 4294967168 }
  0x6f   : > { %2643 = dma.done.wait (%p2377_p3), [#allocation8], 4224  }
  0x70   : > { %2645 = vsyncadd (%p2377_p3), [#allocation8], 4294963072 }
  0x71   : > { %2647 = dma.done.wait (%p2377_p3), [#allocation11], 6144  }
  0x72   : > { %2649 = vsyncadd (%p2377_p3), [#allocation11], 4294961152 }
  0x73   : > { %2651 = dma.done.wait (%p2377_p3), [#allocation14], 4096  }
  0x74   : > { %2653 = vsyncadd (%p2377_p3), [#allocation14], 4294963200  ;;  %s1992_s22 = sshll.u32 %s2807_s1, 1  ;;  %p832_p4 = scmp.lt.s32.totalorder %s2807_s1, 3 }
  0x75   : > { %p821_p6 = scmp.lt.s32.totalorder %s1992_s22, 7  ;;  %s3162_s2 = sld [smem:[#allocation24_spill]] }
  0x76   : > { %s2933_s6 = scalar_select %p832_p4, %s2807_s1, 3 }
  0x77   : > { %s3169_s22 = smov (!%p821_p6, %s1992_s22), 7  ;;  %s3163_s7 = sld [smem:[#allocation22_spill]] }
  0x78   : > { %s1993_s0 = sshll.u32 %s3169_s22, 3  ;;  %s3164_s25 = sld [smem:[#allocation23_spill]] }
  0x7a   : > { %838 = sbr.rel (%p1976_p2) target bundleno = 129 (0x81), region = 144 }
  0x7b   : > { %s834_s5 = scalar_lea.vmem %s3162_s2, %s2933_s6 }
  0x7d   : > { %s824_s30 = scalar_lea.vmem %s3163_s7, %s1993_s0 }
  0x7e   : > { %s830_s12 = scalar_lea.vmem %s3164_s25, %s1993_s0 }
  0x7f   : > { %v2671_v1 = vmov 0.0  }
  0x80   : > { %839 = vst [vmem:[#allocation2] sm:$0xff] %v2671_v1  ;;  %840 = vst [vmem:[#allocation2 + $0x8] sm:$0xff] %v2671_v1 }
  0x81 PF: > { %v857_v2 = vld [vmem:[%s830_s12] sm:$0xff]  ;;  %v2672_v4 = vmov 0   ;;  %s3165_s28 = sld [smem:[#allocation25_spill]]  ;;  %v858_v6 = vld [vmem:[%s830_s12 + $0x8] sm:$0xff]  ;;  %v1100_v10 = vld [vmem:[#allocation9 + $0xf0] sm:$0xff]  ;;  %v841_v32 = vlaneseq  ;;  %vm872_vm0 = vcmask 64512  }
  0x82   : > { %v843_v3 = vld [vmem:[%s824_s30] sm:$0xff]  ;;  %2418 = vset.pattern.permute.xlu1 %v2672_v4  ;;  %2417 = vset.pattern.permute.xlu0 %v2672_v4  ;;  %v844_v7 = vld [vmem:[%s824_s30 + $0x8] sm:$0xff]  ;;  %v1084_v11 = vld [vmem:[#allocation9 + $0x70] sm:$0xff]  ;;  %v2673_v36 = vmov 0.0   ;;  %vm1424_vm11 = vcmask 130048   ;;  %p2014_p2 = scmp.ne.s32.totalorder %s2807_s1, 3 }
  0x83   : > { %860 = vperm.xlu1 %2418, %v857_v2   ;;  %846 = vperm.xlu0 %2417, %v843_v3   ;;  %v1101_v8 = vld [vmem:[#allocation9 + $0xf8] sm:$0xff]  ;;  %v1099_v12 = vld [vmem:[#allocation9 + $0xe8] sm:$0xff]  ;;  %v1098_v14 = vld [vmem:[#allocation9 + $0xe0] sm:$0xff]  ;;  %v842_v33 = vand.u32 127, %v841_v32  ;;  %s3167_s30 = sld [smem:[#allocation26_spill]] (!%p2014_p2) }
  0x84   : > { %v1085_v9 = vld [vmem:[#allocation9 + $0x78] sm:$0xff]  ;;  %2030 = vmatprep.subr.mxu0 %v1101_v8  ;;  %v1083_v13 = vld [vmem:[#allocation9 + $0x68] sm:$0xff]  ;;  %v1082_v15 = vld [vmem:[#allocation9 + $0x60] sm:$0xff] }
  0x85   : > { %2031 = vmatpush3.msra.mxu0 %v1085_v9  ;;  %v1097_v16 = vld [vmem:[#allocation9 + $0xd8] sm:$0xff]  ;;  %v1096_v18 = vld [vmem:[#allocation9 + $0xd0] sm:$0xff]  ;;  %v1095_v20 = vld [vmem:[#allocation9 + $0xc8] sm:$0xff]  ;;  %vm1035_vm5 = vcmp.lt.s32.totalorder %v842_v33, 3 }
  0x86   : > { %2032 = vmatprep.subr.mxu0 %v1100_v10  ;;  %v1081_v17 = vld [vmem:[#allocation9 + $0x58] sm:$0xff]  ;;  %v1080_v19 = vld [vmem:[#allocation9 + $0x50] sm:$0xff]  ;;  %v1079_v21 = vld [vmem:[#allocation9 + $0x48] sm:$0xff]  ;;  %v2005_v54 = vsel %vm1035_vm5, 1.0, %v2673_v36 }
  0x87   : > { %v2950_v5 = vld [vmem:[%s3165_s28] sm:$0xff]  ;;  %863 = vperm.xlu1 %2418, %v858_v6   ;;  %849 = vperm.xlu0 %2417, %v844_v7   ;;  %v1092_v26 = vld [vmem:[#allocation9 + $0xb0] sm:$0xff]  ;;  %v1091_v28 = vld [vmem:[#allocation9 + $0xa8] sm:$0xff] }
  0x88   : > { %2173 = vmatprep.subr.mxu1 %v2950_v5  ;;  %2033 = vmatpush3.msra.mxu0 %v1084_v11  ;;  %v1094_v22 = vld [vmem:[#allocation9 + $0xc0] sm:$0xff]  ;;  %v1093_v24 = vld [vmem:[#allocation9 + $0xb8] sm:$0xff]  ;;  %v1076_v27 = vld [vmem:[#allocation9 + $0x30] sm:$0xff] }
  0x89   : > { %2174 = vmatpush3.msra.mxu1 %v2950_v5  ;;  %2034 = vmatprep.subr.mxu0 %v1099_v12  ;;  %v1078_v23 = vld [vmem:[#allocation9 + $0x40] sm:$0xff]  ;;  %v1077_v25 = vld [vmem:[#allocation9 + $0x38] sm:$0xff]  ;;  %v1075_v29 = vld [vmem:[#allocation9 + $0x28] sm:$0xff] }
  0x8a   : > { %2178 = vmatprep.subr.mxu1 %v2950_v5  ;;  %2035 = vmatpush3.msra.mxu0 %v1083_v13  ;;  %v1090_v30 = vld [vmem:[#allocation9 + $0xa0] sm:$0xff]  ;;  %v1089_v43 = vld [vmem:[#allocation9 + $0x98] sm:$0xff]  ;;  %v1088_v45 = vld [vmem:[#allocation9 + $0x90] sm:$0xff] }
  0x8b   : > { %2036 = vmatprep.subr.mxu0 %v1098_v14  ;;  %v1074_v31 = vld [vmem:[#allocation9 + $0x20] sm:$0xff]  ;;  %v1073_v44 = vld [vmem:[#allocation9 + $0x18] sm:$0xff]  ;;  %v1072_v46 = vld [vmem:[#allocation9 + $0x10] sm:$0xff] }
  0x8c   : > { %2037 = vmatpush3.msra.mxu0 %v1082_v15  ;;  %v1087_v47 = vld [vmem:[#allocation9 + $0x88] sm:$0xff]  ;;  %v1086_v49 = vld [vmem:[#allocation9 + $0x80] sm:$0xff]  ;;  %v1212_v62 = vld [vmem:[%s3129_s10 + $0x78] sm:$0xff] }
  0x8d   : > { %2038 = vmatprep.subr.mxu0 %v1097_v16  ;;  %v1071_v48 = vld [vmem:[#allocation9 + $0x8] sm:$0xff]  ;;  %v1070_v50 = vld [vmem:[#allocation9] sm:$0xff]  ;;  %v1208_v2 = vld [vmem:[%s3129_s10 + $0x58] sm:$0xff] }
  0x8e   : > { %2039 = vmatpush3.msra.mxu0 %v1081_v17  ;;  %v1211_v63 = vld [vmem:[%s3129_s10 + $0x70] sm:$0xff]  ;;  %v1210_v0 = vld [vmem:[%s3129_s10 + $0x68] sm:$0xff]  ;;  %v1209_v1 = vld [vmem:[%s3129_s10 + $0x60] sm:$0xff] }
  0x8f   : > { %2040 = vmatprep.subr.mxu0 %v1096_v18  ;;  %v1207_v3 = vld [vmem:[%s3129_s10 + $0x50] sm:$0xff]  ;;  %v1206_v4 = vld [vmem:[%s3129_s10 + $0x48] sm:$0xff]  ;;  %v1204_v6 = vld [vmem:[%s3129_s10 + $0x38] sm:$0xff] }
  0x90   : > { %2041 = vmatpush3.msra.mxu0 %v1080_v19  ;;  %v1203_v7 = vld [vmem:[%s3129_s10 + $0x30] sm:$0xff]  ;;  %v1202_v8 = vld [vmem:[%s3129_s10 + $0x28] sm:$0xff]  ;;  %v1201_v9 = vld [vmem:[%s3129_s10 + $0x20] sm:$0xff] }
  0x91   : > { %2042 = vmatprep.subr.mxu0 %v1095_v20  ;;  %v1200_v10 = vld [vmem:[%s3129_s10 + $0x18] sm:$0xff]  ;;  %v1199_v11 = vld [vmem:[%s3129_s10 + $0x10] sm:$0xff]  ;;  %v1198_v12 = vld [vmem:[%s3129_s10 + $0x8] sm:$0xff] }
  0x92   : > { %2043 = vmatpush3.msra.mxu0 %v1079_v21  ;;  %v1197_v13 = vld [vmem:[%s3129_s10] sm:$0xff]  ;;  %v1311_v15 = vld [vmem:[#allocation10 + $0x70] sm:$0xff]  ;;  %v1310_v16 = vld [vmem:[#allocation10 + $0x68] sm:$0xff] }
  0x93   : > { %2044 = vmatprep.subr.mxu0 %v1094_v22  ;;  %v1312_v14 = vld [vmem:[#allocation10 + $0x78] sm:$0xff]  ;;  %v1309_v17 = vld [vmem:[#allocation10 + $0x60] sm:$0xff]  ;;  %v1307_v19 = vld [vmem:[#allocation10 + $0x50] sm:$0xff] }
  0x94   : > { %2045 = vmatpush3.msra.mxu0 %v1078_v23  ;;  %v1308_v18 = vld [vmem:[#allocation10 + $0x58] sm:$0xff]  ;;  %v1306_v20 = vld [vmem:[#allocation10 + $0x48] sm:$0xff]  ;;  %v1305_v21 = vld [vmem:[#allocation10 + $0x40] sm:$0xff] }
  0x95   : > { %2046 = vmatprep.subr.mxu0 %v1093_v24  ;;  %v1304_v22 = vld [vmem:[#allocation10 + $0x38] sm:$0xff]  ;;  %v1303_v23 = vld [vmem:[#allocation10 + $0x30] sm:$0xff]  ;;  %v1302_v24 = vld [vmem:[#allocation10 + $0x28] sm:$0xff] }
  0x96   : > { %2047 = vmatpush3.msra.mxu0 %v1077_v25  ;;  %v1301_v25 = vld [vmem:[#allocation10 + $0x20] sm:$0xff] }
  0x97   : > { %2048 = vmatprep.subr.mxu0 %v1092_v26 }
  0x98   : > { %2049 = vmatpush3.msra.mxu0 %v1076_v27 }
  0x99   : > { %2050 = vmatprep.subr.mxu0 %v1091_v28  ;;  %v2006_v28 = vld [vmem:[%s3127_s8] ss:$0 sm:$0xff] }
  0x9a   : > { %2051 = vmatpush3.msra.mxu0 %v1075_v29 }
  0x9b   : > { %2052 = vmatprep.subr.mxu0 %v1090_v30 }
  0x9c   : > { %2053 = vmatpush3.msra.mxu0 %v1074_v31 }
  0x9d   : > { %2054 = vmatprep.subr.mxu0 %v1089_v43 }
  0x9e   : > { %2055 = vmatpush3.msra.mxu0 %v1073_v44 }
  0x9f   : > { %2056 = vmatprep.subr.mxu0 %v1088_v45 }
  0xa0   : > { %2057 = vmatpush3.msra.mxu0 %v1072_v46  ;;  %v1300_v46 = vld [vmem:[#allocation10 + $0x18] sm:$0xff] }
  0xa1   : > { %2058 = vmatprep.subr.mxu0 %v1087_v47  ;;  %v1299_v47 = vld [vmem:[#allocation10 + $0x10] sm:$0xff] }
  0xa2   : > { %2059 = vmatpush3.msra.mxu0 %v1071_v48  ;;  %v1298_v48 = vld [vmem:[#allocation10 + $0x8] sm:$0xff] }
  0xa3   : > { %2060 = vmatprep.subr.mxu0 %v1086_v49  ;;  %v1297_v49 = vld [vmem:[#allocation10] sm:$0xff] }
  0xa4   : > { %2061 = vmatpush3.msra.mxu0 %v1070_v50  ;;  %v2008_v50 = vld [vmem:[%s3130_s11] ss:$0 sm:$0xff] }
  0xa5   : > { %2218 = vmatprep.subr.mxu0 %v1312_v14 }
  0xfe   : > { %v861_v34 = vpop.permute.xlu1 %860  ;;  %v847_v35 = vpop.permute.xlu0 %846 }
  0xff   : > { %vm851_vm1 = vcmp.eq.s32.totalorder %v847_v35, %v842_v33  ;;  %vm865_vm2 = vcmp.eq.s32.totalorder %v861_v34, %v842_v33  ;;  %v2007_v35 = vld [vmem:[%s3128_s9] ss:$0 sm:$0xff] }
 0x100   : > { %v1997_v37 = vsel %vm851_vm1, 1.0, %v2673_v36  ;;  %v1999_v40 = vsel %vm865_vm2, 1.0, %v2673_v36 }
 0x101   : > { %2175 = vmatprep.mubr.msk.f32.mxu1 %vm872_vm0, %v1997_v37 }
 0x102   : > { %v864_v38 = vpop.permute.xlu1 %863  ;;  %v850_v39 = vpop.permute.xlu0 %849 }
 0x103   : > { %vm852_vm3 = vcmp.eq.s32.totalorder %v850_v39, %v842_v33  ;;  %vm866_vm4 = vcmp.eq.s32.totalorder %v864_v38, %v842_v33 }
 0x104   : > { %v1998_v41 = vsel %vm852_vm3, 1.0, %v2673_v36  ;;  %v2000_v42 = vsel %vm866_vm4, 1.0, %v2673_v36 }
 0x105   : > { %2176 = vmatmul.mubr.msk.f32.vlgmr.msra.gmra.mxu1 %vm872_vm0, %v1998_v41 }
 0x106   : > { %2179 = vmatpush3.msra.mxu1 %v2950_v5  ;;  %2180 = vmatprep.mubr.msk.f32.mxu1 %vm872_vm0, %v1999_v40  ;;  %v1205_v5 = vld [vmem:[%s3129_s10 + $0x40] sm:$0xff] }
 0x107   : > { %2183 = vmatprep.subr.mxu1 %v1212_v62 }
 0x109   : > { %2181 = vmatmul.mubr.msk.f32.vlgmr.msra.gmra.mxu1 %vm872_vm0, %v2000_v42 }
 0x10a   : > { %2184 = vmatpush3.msra.mxu1 %v1212_v62 }
 0x10b   : > { %2185 = vmatprep.subr.mxu1 %v1211_v63 }
 0x10c   : > { %2186 = vmatpush3.msra.mxu1 %v1211_v63  ;;  %v2010_v63 = vld [vmem:[%s3133_s14] ss:$0 sm:$0xff] }
 0x10d   : > { %2187 = vmatprep.subr.mxu1 %v1210_v0 }
 0x10e   : > { %2188 = vmatpush3.msra.mxu1 %v1210_v0 }
 0x10f   : > { %2189 = vmatprep.subr.mxu1 %v1209_v1 }
 0x110   : > { %2190 = vmatpush3.msra.mxu1 %v1209_v1 }
 0x111   : > { %2191 = vmatprep.subr.mxu1 %v1208_v2 }
 0x112   : > { %2192 = vmatpush3.msra.mxu1 %v1208_v2 }
 0x113   : > { %2193 = vmatprep.subr.mxu1 %v1207_v3 }
 0x114   : > { %2194 = vmatpush3.msra.mxu1 %v1207_v3 }
 0x115   : > { %2195 = vmatprep.subr.mxu1 %v1206_v4 }
 0x116   : > { %2196 = vmatpush3.msra.mxu1 %v1206_v4 }
 0x117   : > { %2197 = vmatprep.subr.mxu1 %v1205_v5 }
 0x118   : > { %2198 = vmatpush3.msra.mxu1 %v1205_v5 }
 0x119   : > { %2199 = vmatprep.subr.mxu1 %v1204_v6 }
 0x11a   : > { %2200 = vmatpush3.msra.mxu1 %v1204_v6 }
 0x11b   : > { %2201 = vmatprep.subr.mxu1 %v1203_v7 }
 0x11c   : > { %2202 = vmatpush3.msra.mxu1 %v1203_v7 }
 0x11d   : > { %2203 = vmatprep.subr.mxu1 %v1202_v8 }
 0x11e   : > { %2204 = vmatpush3.msra.mxu1 %v1202_v8 }
 0x11f   : > { %2205 = vmatprep.subr.mxu1 %v1201_v9 }
 0x120   : > { %2206 = vmatpush3.msra.mxu1 %v1201_v9 }
 0x121   : > { %2207 = vmatprep.subr.mxu1 %v1200_v10 }
 0x122   : > { %2208 = vmatpush3.msra.mxu1 %v1200_v10 }
 0x123   : > { %2209 = vmatprep.subr.mxu1 %v1199_v11 }
 0x124   : > { %2210 = vmatpush3.msra.mxu1 %v1199_v11 }
 0x125   : > { %2211 = vmatprep.subr.mxu1 %v1198_v12 }
 0x126   : > { %2212 = vmatpush3.msra.mxu1 %v1198_v12 }
 0x127   : > { %2213 = vmatprep.subr.mxu1 %v1197_v13 }
 0x128   : > { %2214 = vmatpush3.msra.mxu1 %v1197_v13 }
 0x1c5   : > { %v2177_v51 = vpop.f32.mrf.mxu1 }
 0x1c7   : > { %v945_v52 = vpop.f32.mrf.mxu1 }
 0x1c9   : > { %v2182_v53 = vpop.f32.mrf.mxu1 }
 0x1ca   : > { %v1039_v55 = vsub.f32 %v2177_v51, %v2182_v53 }
 0x1cb   : > { %v1026_v56 = vpop.f32.mrf.mxu1 }
 0x1cc   : > { %v1038_v57 = vsub.f32 %v945_v52, %v1026_v56  ;;  %1175 = vmatprep.mubr.f32.mxu0 %v1026_v56  ;;  %v2966_v58 = vmul.f32 %v2005_v54, %v1039_v55 }
 0x1cd   : > { %1176 = vmatmul.mubr.f32.vlgmr.msra.gmra.mxu0 %v945_v52 }
 0x1ce   : > { %1180 = vmatprep.mubr.f32.mxu0 %v2182_v53  ;;  %v1043_v59 = vmul.f32 %v2966_v58, %v2966_v58  ;;  %v2970_v60 = vmul.f32 %v2005_v54, %v1038_v57  ;;  %2219 = vmatpush3.msra.mxu0 %v1312_v14  ;;  %v2009_v57 = vld [vmem:[%s3132_s13] ss:$0 sm:$0xff] }
 0x1cf   : > { %2220 = vmatprep.subr.mxu0 %v1311_v15 }
 0x1d0   : > { %1046 = vadd.xlane.f32.xlu1 %v1043_v59  ;;  %v1042_v61 = vmul.f32 %v2970_v60, %v2970_v60  ;;  %2221 = vmatpush3.msra.mxu0 %v1311_v15 }
 0x1d1   : > { %1181 = vmatmul.mubr.f32.gmra.mxu0 %v2177_v51  ;;  %2222 = vmatprep.subr.mxu0 %v1310_v16 }
 0x1d2   : > { %1044 = vadd.xlane.f32.xlu0 %v1042_v61  ;;  %2223 = vmatpush3.msra.mxu0 %v1310_v16 }
 0x1d3   : > { %2224 = vmatprep.subr.mxu0 %v1309_v17 }
 0x1d4   : > { %2225 = vmatpush3.msra.mxu0 %v1309_v17 }
 0x1d5   : > { %2226 = vmatprep.subr.mxu0 %v1308_v18 }
 0x1d6   : > { %2227 = vmatpush3.msra.mxu0 %v1308_v18 }
 0x1d7   : > { %2228 = vmatprep.subr.mxu0 %v1307_v19 }
 0x1d8   : > { %2229 = vmatpush3.msra.mxu0 %v1307_v19 }
 0x1d9   : > { %2230 = vmatprep.subr.mxu0 %v1306_v20 }
 0x1da   : > { %2231 = vmatpush3.msra.mxu0 %v1306_v20 }
 0x1db   : > { %2232 = vmatprep.subr.mxu0 %v1305_v21 }
 0x1dc   : > { %2233 = vmatpush3.msra.mxu0 %v1305_v21  ;;  %v1413_v21 = vshrl.u32 %v841_v32, 7  ;;  %v1422_v32 = vld [vmem:[#allocation2] sm:$0xff] }
 0x1dd   : > { %2234 = vmatprep.subr.mxu0 %v1304_v22 }
 0x1de   : > { %2235 = vmatpush3.msra.mxu0 %v1304_v22 }
 0x1df   : > { %2236 = vmatprep.subr.mxu0 %v1303_v23 }
 0x1e0   : > { %2237 = vmatpush3.msra.mxu0 %v1303_v23 }
 0x1e1   : > { %2238 = vmatprep.subr.mxu0 %v1302_v24 }
 0x1e2   : > { %2239 = vmatpush3.msra.mxu0 %v1302_v24  ;;  %v2011_v24 = vld [vmem:[%s834_s5] ss:$0 sm:$0xff] }
 0x1e3   : > { %2240 = vmatprep.subr.mxu0 %v1301_v25  ;;  %vm1419_vm10 = vcmp.eq.s32.totalorder %v2011_v24, %v1413_v21 }
 0x1e4   : > { %2241 = vmatpush3.msra.mxu0 %v1301_v25 }
 0x1e5   : > { %2242 = vmatprep.subr.mxu0 %v1300_v46 }
 0x1e6   : > { %2243 = vmatpush3.msra.mxu0 %v1300_v46 }
 0x1e7   : > { %2244 = vmatprep.subr.mxu0 %v1299_v47 }
 0x1e8   : > { %2245 = vmatpush3.msra.mxu0 %v1299_v47 }
 0x1e9   : > { %2246 = vmatprep.subr.mxu0 %v1298_v48 }
 0x1ea   : > { %2247 = vmatpush3.msra.mxu0 %v1298_v48 }
 0x1eb   : > { %2248 = vmatprep.subr.mxu0 %v1297_v49 }
 0x1ec   : > { %2249 = vmatpush3.msra.mxu0 %v1297_v49 }
 0x259   : > { %v1047_v33 = vpop.xlane.xlu1 %1046 }
 0x25a   : > { %v1110_v39 = vmul.f32 %v2006_v28, %v1047_v33  ;;  %v1049_v5 = vadd.f32 1e-08, %v1047_v33 }
 0x25b   : > { %v1045_v26 = vpop.xlane.xlu0 %1044 }
 0x25c   : > { %v1109_v30 = vmul.f32 %v2006_v28, %v1045_v26  ;;  %2419 = vrsqrt.f32 %v1049_v5  ;;  %v1048_v6 = vadd.f32 1e-08, %v1045_v26  ;;  %vm1059_vm6 = vcmp.eq.f32.partialorder %v1049_v5, inf }
 0x25d   : > { %v1062_v12 = vand.u32 2147483648, %v1049_v5  ;;  %vm1061_vm7 = vcmp.eq.f32.partialorder %v1049_v5, 0.0 }
 0x25e   : > { %2421 = vrsqrt.f32 %v1048_v6  ;;  %vm1052_vm8 = vcmp.eq.f32.partialorder %v1048_v6, inf  ;;  %v1055_v15 = vand.u32 2147483648, %v1048_v6  ;;  %vm1054_vm9 = vcmp.eq.f32.partialorder %v1048_v6, 0.0 }
 0x269   : > { %v2420_v7 = vpop.eup %2419 }
 0x26a   : > { %v1058_v8 = vmul.f32 %v2420_v7, %v1049_v5 }
 0x26b   : > { %v2422_v9 = vpop.eup %2421 }
 0x26c   : > { %v1060_v10 = vsel %vm1059_vm6, %v1049_v5, %v1058_v8  ;;  %v1051_v11 = vmul.f32 %v2422_v9, %v1048_v6 }
 0x26d   : > { %v1063_v13 = vsel %vm1061_vm7, %v1062_v12, %v1060_v10 }
 0x26e   : > { %v1053_v14 = vsel %vm1052_vm8, %v1048_v6, %v1051_v11  ;;  %v1065_v16 = vadd.f32 1.0, %v1063_v13 }
 0x26f   : > { %v1056_v17 = vsel %vm1054_vm9, %v1055_v15, %v1053_v14 }
 0x270   : > { %2423 = vrcp.f32 %v1065_v16  ;;  %v1064_v18 = vadd.f32 1.0, %v1056_v17 }
 0x272   : > { %2425 = vrcp.f32 %v1064_v18 }
 0x27d   : > { %v2424_v19 = vpop.eup %2423 }
 0x27e   : > { %v1069_v20 = vmul.f32 %v2424_v19, %v2966_v58 }
 0x27f   : > { %v2426_v22 = vpop.eup %2425 }
 0x280   : > { %v1067_v26 = vmul.f32 %v2426_v22, %v2970_v60 }
 0x28d   : > { %v2062_v27 = vpop.f32.mrf.mxu0 }
 0x28f   : > { %v2063_v29 = vpop.f32.mrf.mxu0 }
 0x290   : > { %v2064_v31 = vadd.f32 %v2063_v29, %v2062_v27  ;;  %v2012_v29 = vsel %vm1419_vm10, 1.0, %v2673_v36 }
 0x291   : > { %v2065_v34 = vpop.f32.mrf.mxu0 }
 0x292   : > { %v1178_v37 = vadd.f32 %v2064_v31, %v1109_v30  ;;  %v1423_v30 = vld [vmem:[#allocation2 + $0x8] sm:$0xff] }
 0x293   : > { %v2066_v38 = vpop.f32.mrf.mxu0 }
 0x294   : > { %v2067_v40 = vadd.f32 %v2066_v38, %v2065_v34  ;;  %v1193_v41 = vadd.f32 %v2007_v35, %v1178_v37 }
 0x296   : > { %v1183_v42 = vadd.f32 %v2067_v40, %v1110_v39  ;;  %v1195_v43 = vmax.f32 %v1193_v41, 0.0 }
 0x298   : > { %v1194_v44 = vadd.f32 %v2007_v35, %v1183_v42  ;;  %2215 = vmatprep.mubr.f32.mxu1 %v1195_v43 }
 0x29a   : > { %v1196_v45 = vmax.f32 %v1194_v44, 0.0 }
 0x29c   : > { %2216 = vmatmul.mubr.f32.vlgmr.msra.gmra.mxu1 %v1196_v45 }
 0x29d   : > { %1492 = vmatprep.mubr.f32.mxu1 %v2673_v36 }
 0x35c   : > { %v2217_v51 = vpop.f32.mrf.mxu1 }
 0x35d   : > { %v1292_v52 = vadd.f32 %v2217_v51, %v2008_v50 }
 0x35e   : > { %v1286_v53 = vpop.f32.mrf.mxu1 }
 0x35f   : > { %v1287_v54 = vadd.f32 %v2008_v50, %v1286_v53  ;;  %v1296_v56 = vmax.f32 %v1292_v52, 0.0 }
 0x361   : > { %v1295_v55 = vmax.f32 %v1287_v54, 0.0 }
 0x363   : > { %2250 = vmatprep.mubr.f32.mxu0 %v1295_v55 }
 0x364   : > { %2251 = vmatmul.mubr.f32.vlgmr.msra.gmra.mxu0 %v1296_v56 }
 0x424   : > { %v2252_v59 = vpop.f32.mrf.mxu0 }
 0x425   : > { %v1392_v61 = vadd.f32 %v2252_v59, %v2009_v57 }
 0x426   : > { %v1386_v62 = vpop.f32.mrf.mxu0 }
 0x427   : > { %v1396_v0 = vmax.f32 %v1392_v61, 0.0  ;;  %v1387_v1 = vadd.f32 %v2009_v57, %v1386_v62 }
 0x429   : > { %v1395_v2 = vmax.f32 %v1387_v1, 0.0  ;;  %v1405_v3 = vmul.f32 %v2010_v63, %v1396_v0 }
 0x42b   : > { %1408 = vadd.xlane.f32.xlu0 %v1405_v3  ;;  %v1404_v4 = vmul.f32 %v2010_v63, %v1395_v2 }
 0x42f   : > { %1406 = vadd.xlane.f32.xlu0 %v1404_v4 }
 0x4b4   : > { %v1409_v23 = vpop.xlane.xlu0 %1408 }
 0x4b5   : > { %v1411_v25 = vmul.f32 %v1409_v23, %v1069_v20 }
 0x4b7   : > { %1456 = vmatprep.subr.mxu1 %v1411_v25 }
 0x4b8   : > { %1457 = vmatpush1.msra.mxu1 %v1296_v56  ;;  %v1407_v27 = vpop.xlane.xlu0 %1406 }
 0x4b9   : > { %v1410_v28 = vmul.f32 %v1407_v27, %v1067_v26 }
 0x4bb   : > { %1458 = vmatprep.subr.mxu1 %v1410_v28 }
 0x4bc   : > { %1459 = vmatpush1.msra.mxu1 %v1295_v55 }
 0x4bd   : > { %2013 = vmatmul.mubr.msk.f32.vlgmr.msra.gmra.mxu1 %vm1424_vm11, %v2012_v29 }
 0x57d   : > { %v1494_v58 = vpop.f32.mrf.mxu1 }
 0x57e   : > { %v1499_v31 = vadd.f32 %v1494_v58, %v1422_v32  ;;  %1506 = sbr.rel (%p2014_p2) target bundleno = 1944 (0x798), region = 148 }
 0x57f   : > { %v1496_v33 = vpop.f32.mrf.mxu1 }
 0x580   : > { %1501 = vst [vmem:[#allocation2] sm:$0xff] %v1499_v31  ;;  %v1500_v34 = vadd.f32 %v1496_v33, %v1423_v30 }
 0x582   : > { %1502 = vst [vmem:[#allocation2 + $0x8] sm:$0xff] %v1500_v34 }
 0x583   : > { %v1541_v60 = vld [vmem:[#allocation12 + $0xf8] sm:$0xff]  ;;  %v1540_v37 = vld [vmem:[#allocation12 + $0xf0] sm:$0xff]  ;;  %v2674_v38 = vmov 0.0   ;;  %v1539_v39 = vld [vmem:[#allocation12 + $0xe8] sm:$0xff]  ;;  %vm2675_vm12 = vmmov 0  }
 0x584   : > { %v1525_v35 = vld [vmem:[#allocation12 + $0x78] sm:$0xff]  ;;  %2104 = vmatprep.subr.mxu0 %v1541_v60  ;;  %v1524_v36 = vld [vmem:[#allocation12 + $0x70] sm:$0xff]  ;;  %2253 = vmatprep.subr.mxu1 %v2674_v38  ;;  %v1523_v40 = vld [vmem:[#allocation12 + $0x68] sm:$0xff] }
 0x585   : > { %2105 = vmatpush3.msra.mxu0 %v1525_v35  ;;  %2285 = vmatprep.mubr.msk.f32.mxu1 %vm2675_vm12, %v2674_v38  ;;  %v1538_v41 = vld [vmem:[#allocation12 + $0xe0] sm:$0xff]  ;;  %v1537_v43 = vld [vmem:[#allocation12 + $0xd8] sm:$0xff]  ;;  %v1536_v45 = vld [vmem:[#allocation12 + $0xd0] sm:$0xff] }
 0x586   : > { %2106 = vmatprep.subr.mxu0 %v1540_v37  ;;  %v1522_v42 = vld [vmem:[#allocation12 + $0x60] sm:$0xff]  ;;  %v1521_v44 = vld [vmem:[#allocation12 + $0x58] sm:$0xff]  ;;  %v1520_v46 = vld [vmem:[#allocation12 + $0x50] sm:$0xff] }
 0x587   : > { %2107 = vmatpush3.msra.mxu0 %v1524_v36  ;;  %v1535_v47 = vld [vmem:[#allocation12 + $0xc8] sm:$0xff]  ;;  %v1507_v48 = vld [vmem:[#allocation2] sm:$0xff]  ;;  %v1532_v54 = vld [vmem:[#allocation12 + $0xb0] sm:$0xff] }
 0x588   : > { %2108 = vmatprep.subr.mxu0 %v1539_v39  ;;  %v1519_v49 = vld [vmem:[#allocation12 + $0x48] sm:$0xff]  ;;  %1613 = vmatprep.mubr.f32.mxu0 %v1507_v48  ;;  %v1534_v50 = vld [vmem:[#allocation12 + $0xc0] sm:$0xff]  ;;  %v1533_v52 = vld [vmem:[#allocation12 + $0xb8] sm:$0xff] }
 0x589   : > { %2109 = vmatpush3.msra.mxu0 %v1523_v40  ;;  %v1518_v51 = vld [vmem:[#allocation12 + $0x40] sm:$0xff]  ;;  %v1517_v53 = vld [vmem:[#allocation12 + $0x38] sm:$0xff]  ;;  %v1516_v56 = vld [vmem:[#allocation12 + $0x30] sm:$0xff] }
 0x58a   : > { %2110 = vmatprep.subr.mxu0 %v1538_v41  ;;  %v1635_v55 = vld [vmem:[#allocation13 + $0x78] sm:$0xff]  ;;  %v1634_v57 = vld [vmem:[#allocation13 + $0x70] sm:$0xff]  ;;  %v1531_v59 = vld [vmem:[#allocation12 + $0xa8] sm:$0xff] }
 0x58b   : > { %2111 = vmatpush3.msra.mxu0 %v1522_v42  ;;  %2254 = vmatpush3.msra.mxu1 %v1635_v55  ;;  %v1633_v61 = vld [vmem:[#allocation13 + $0x68] sm:$0xff]  ;;  %v1530_v63 = vld [vmem:[#allocation12 + $0xa0] sm:$0xff]  ;;  %v1529_v2 = vld [vmem:[#allocation12 + $0x98] sm:$0xff] }
 0x58c   : > { %2112 = vmatprep.subr.mxu0 %v1537_v43  ;;  %2255 = vmatprep.subr.mxu1 %v2674_v38  ;;  %v1515_v62 = vld [vmem:[#allocation12 + $0x28] sm:$0xff]  ;;  %v1632_v0 = vld [vmem:[#allocation13 + $0x60] sm:$0xff]  ;;  %v1631_v3 = vld [vmem:[#allocation13 + $0x58] sm:$0xff] }
 0x58d   : > { %2113 = vmatpush3.msra.mxu0 %v1521_v44  ;;  %2256 = vmatpush3.msra.mxu1 %v1634_v57  ;;  %v1514_v1 = vld [vmem:[#allocation12 + $0x20] sm:$0xff]  ;;  %v1513_v4 = vld [vmem:[#allocation12 + $0x18] sm:$0xff]  ;;  %v1528_v5 = vld [vmem:[#allocation12 + $0x90] sm:$0xff] }
 0x58e   : > { %2114 = vmatprep.subr.mxu0 %v1536_v45  ;;  %2257 = vmatprep.subr.mxu1 %v2674_v38  ;;  %v1630_v6 = vld [vmem:[#allocation13 + $0x50] sm:$0xff]  ;;  %v1527_v8 = vld [vmem:[#allocation12 + $0x88] sm:$0xff]  ;;  %v1526_v11 = vld [vmem:[#allocation12 + $0x80] sm:$0xff] }
 0x58f   : > { %2115 = vmatpush3.msra.mxu0 %v1520_v46  ;;  %2258 = vmatpush3.msra.mxu1 %v1633_v61  ;;  %v1512_v7 = vld [vmem:[#allocation12 + $0x10] sm:$0xff]  ;;  %v1629_v9 = vld [vmem:[#allocation13 + $0x48] sm:$0xff]  ;;  %v1628_v12 = vld [vmem:[#allocation13 + $0x40] sm:$0xff] }
 0x590   : > { %2116 = vmatprep.subr.mxu0 %v1535_v47  ;;  %2259 = vmatprep.subr.mxu1 %v2674_v38  ;;  %v1511_v10 = vld [vmem:[#allocation12 + $0x8] sm:$0xff]  ;;  %v1510_v13 = vld [vmem:[#allocation12] sm:$0xff]  ;;  %v1729_v15 = vld [vmem:[#allocation15 + $0x78] sm:$0xff] }
 0x591   : > { %2117 = vmatpush3.msra.mxu0 %v1519_v49  ;;  %2260 = vmatpush3.msra.mxu1 %v1632_v0  ;;  %v3060_v14 = vld [vmem:[%s3167_s30] sm:$0xff]  ;;  %v1728_v17 = vld [vmem:[#allocation15 + $0x70] sm:$0xff]  ;;  %v1727_v19 = vld [vmem:[#allocation15 + $0x68] sm:$0xff] }
 0x592   : > { %2118 = vmatprep.subr.mxu0 %v1534_v50  ;;  %2261 = vmatprep.subr.mxu1 %v2674_v38  ;;  %v1627_v16 = vld [vmem:[#allocation13 + $0x38] sm:$0xff]  ;;  %v1626_v18 = vld [vmem:[#allocation13 + $0x30] sm:$0xff]  ;;  %v1625_v20 = vld [vmem:[#allocation13 + $0x28] sm:$0xff]  ;;  %v2676_v50 = vmov 0  }
 0x593   : > { %2119 = vmatpush3.msra.mxu0 %v1518_v51  ;;  %2262 = vmatpush3.msra.mxu1 %v1631_v3  ;;  %v1726_v21 = vld [vmem:[#allocation15 + $0x60] sm:$0xff]  ;;  %v1725_v22 = vld [vmem:[#allocation15 + $0x58] sm:$0xff]  ;;  %v1724_v23 = vld [vmem:[#allocation15 + $0x50] sm:$0xff] }
 0x594   : > { %2120 = vmatprep.subr.mxu0 %v1533_v52  ;;  %2263 = vmatprep.subr.mxu1 %v2674_v38  ;;  %v1723_v24 = vld [vmem:[#allocation15 + $0x48] sm:$0xff]  ;;  %v1722_v25 = vld [vmem:[#allocation15 + $0x40] sm:$0xff]  ;;  %v1721_v26 = vld [vmem:[#allocation15 + $0x38] sm:$0xff] }
 0x595   : > { %2121 = vmatpush3.msra.mxu0 %v1517_v53  ;;  %2264 = vmatpush3.msra.mxu1 %v1630_v6  ;;  %v1720_v27 = vld [vmem:[#allocation15 + $0x30] sm:$0xff]  ;;  %v1719_v28 = vld [vmem:[#allocation15 + $0x28] sm:$0xff]  ;;  %v1718_v29 = vld [vmem:[#allocation15 + $0x20] sm:$0xff] }
 0x596   : > { %2122 = vmatprep.subr.mxu0 %v1532_v54  ;;  %2265 = vmatprep.subr.mxu1 %v2674_v38  ;;  %v1717_v32 = vld [vmem:[#allocation15 + $0x18] sm:$0xff]  ;;  %v1716_v58 = vld [vmem:[#allocation15 + $0x10] sm:$0xff]  ;;  %v1715_v30 = vld [vmem:[#allocation15 + $0x8] sm:$0xff] }
 0x597   : > { %2123 = vmatpush3.msra.mxu0 %v1516_v56  ;;  %2266 = vmatpush3.msra.mxu1 %v1629_v9  ;;  %v1714_v31 = vld [vmem:[#allocation15] sm:$0xff]  ;;  %v1623_v34 = vld [vmem:[#allocation13 + $0x18] sm:$0xff]  ;;  %v1622_v60 = vld [vmem:[#allocation13 + $0x10] sm:$0xff] }
 0x598   : > { %2124 = vmatprep.subr.mxu0 %v1531_v59  ;;  %2267 = vmatprep.subr.mxu1 %v2674_v38  ;;  %v1624_v33 = vld [vmem:[#allocation13 + $0x20] sm:$0xff]  ;;  %v1621_v35 = vld [vmem:[#allocation13 + $0x8] sm:$0xff]  ;;  %v2015_v39 = vld [vmem:[%s3135_s16] ss:$0 sm:$0xff] }
 0x599   : > { %2125 = vmatpush3.msra.mxu0 %v1515_v62  ;;  %2268 = vmatpush3.msra.mxu1 %v1628_v12  ;;  %v1620_v37 = vld [vmem:[#allocation13] sm:$0xff]  ;;  %v2017_v44 = vld [vmem:[%s3139_s20] ss:$0 sm:$0xff]  ;;  %v2019_v51 = vld [vmem:[#allocation3] ss:$0 sm:$0xff] }
 0x59a   : > { %2126 = vmatprep.subr.mxu0 %v1530_v63  ;;  %2269 = vmatprep.subr.mxu1 %v2674_v38  ;;  %v2016_v54 = vld [vmem:[%s3137_s18] ss:$0 sm:$0xff]  ;;  %v1508_v61 = vld [vmem:[#allocation2 + $0x8] sm:$0xff]  ;;  %v1826_v62 = vld [vmem:[#allocation4] sm:$0xff] }
 0x59b   : > { %2127 = vmatpush3.msra.mxu0 %v1514_v1  ;;  %2270 = vmatpush3.msra.mxu1 %v1627_v16  ;;  %v1828_v63 = vld [vmem:[#allocation7] sm:$0xff]  ;;  %v1827_v0 = vadd.f32 %v1826_v62, %v1508_v61 }
 0x59c   : > { %2128 = vmatprep.subr.mxu0 %v1529_v2  ;;  %2271 = vmatprep.subr.mxu1 %v2674_v38 }
 0x59d   : > { %2129 = vmatpush3.msra.mxu0 %v1513_v4  ;;  %2272 = vmatpush3.msra.mxu1 %v1626_v18 }
 0x59e   : > { %2130 = vmatprep.subr.mxu0 %v1528_v5  ;;  %2273 = vmatprep.subr.mxu1 %v2674_v38 }
 0x59f   : > { %2131 = vmatpush3.msra.mxu0 %v1512_v7  ;;  %2274 = vmatpush3.msra.mxu1 %v1625_v20 }
 0x5a0   : > { %2132 = vmatprep.subr.mxu0 %v1527_v8  ;;  %2275 = vmatprep.subr.mxu1 %v2674_v38 }
 0x5a1   : > { %2133 = vmatpush3.msra.mxu0 %v1511_v10  ;;  %2276 = vmatpush3.msra.mxu1 %v1624_v33 }
 0x5a2   : > { %2134 = vmatprep.subr.mxu0 %v1526_v11  ;;  %2277 = vmatprep.subr.mxu1 %v2674_v38 }
 0x5a3   : > { %2135 = vmatpush3.msra.mxu0 %v1510_v13  ;;  %2278 = vmatpush3.msra.mxu1 %v1623_v34 }
 0x5a4   : > { %1614 = vmatmul.mubr.f32.vlgmr.msra.gmra.mxu0 %v3060_v14  ;;  %2288 = vmatprep.subr.mxu0 %v2674_v38 }
 0x5a5   : > { %2289 = vmatpush3.msra.mxu0 %v1729_v15  ;;  %2320 = vmatprep.mubr.msk.f32.mxu0 %vm2675_vm12, %v2674_v38 }
 0x5a6   : > { %2290 = vmatprep.subr.mxu0 %v2674_v38  ;;  %2279 = vmatprep.subr.mxu1 %v2674_v38 }
 0x5a7   : > { %2291 = vmatpush3.msra.mxu0 %v1728_v17  ;;  %2280 = vmatpush3.msra.mxu1 %v1622_v60 }
 0x5a8   : > { %2292 = vmatprep.subr.mxu0 %v2674_v38  ;;  %2281 = vmatprep.subr.mxu1 %v2674_v38 }
 0x5a9   : > { %2293 = vmatpush3.msra.mxu0 %v1727_v19  ;;  %2282 = vmatpush3.msra.mxu1 %v1621_v35 }
 0x5aa   : > { %2294 = vmatprep.subr.mxu0 %v2674_v38  ;;  %2283 = vmatprep.subr.mxu1 %v2674_v38 }
 0x5ab   : > { %2295 = vmatpush3.msra.mxu0 %v1726_v21  ;;  %2284 = vmatpush3.msra.mxu1 %v1620_v37 }
 0x5ac   : > { %2296 = vmatprep.subr.mxu0 %v2674_v38  ;;  %2427 = vset.pattern.permute.xlu0 %v2676_v50 }
 0x5ad   : > { %2297 = vmatpush3.msra.mxu0 %v1725_v22 }
 0x5ae   : > { %2298 = vmatprep.subr.mxu0 %v2674_v38 }
 0x5af   : > { %2299 = vmatpush3.msra.mxu0 %v1724_v23 }
 0x5b0   : > { %2300 = vmatprep.subr.mxu0 %v2674_v38 }
 0x5b1   : > { %2301 = vmatpush3.msra.mxu0 %v1723_v24 }
 0x5b2   : > { %2302 = vmatprep.subr.mxu0 %v2674_v38 }
 0x5b3   : > { %2303 = vmatpush3.msra.mxu0 %v1722_v25 }
 0x5b4   : > { %2304 = vmatprep.subr.mxu0 %v2674_v38 }
 0x5b5   : > { %2305 = vmatpush3.msra.mxu0 %v1721_v26 }
 0x5b6   : > { %2306 = vmatprep.subr.mxu0 %v2674_v38 }
 0x5b7   : > { %2307 = vmatpush3.msra.mxu0 %v1720_v27 }
 0x5b8   : > { %2308 = vmatprep.subr.mxu0 %v2674_v38 }
 0x5b9   : > { %2309 = vmatpush3.msra.mxu0 %v1719_v28 }
 0x5ba   : > { %2310 = vmatprep.subr.mxu0 %v2674_v38 }
 0x5bb   : > { %2311 = vmatpush3.msra.mxu0 %v1718_v29 }
 0x5bc   : > { %2312 = vmatprep.subr.mxu0 %v2674_v38 }
 0x5bd   : > { %2313 = vmatpush3.msra.mxu0 %v1717_v32 }
 0x5be   : > { %2314 = vmatprep.subr.mxu0 %v2674_v38 }
 0x5bf   : > { %2315 = vmatpush3.msra.mxu0 %v1716_v58 }
 0x5c0   : > { %2316 = vmatprep.subr.mxu0 %v2674_v38 }
 0x5c1   : > { %2317 = vmatpush3.msra.mxu0 %v1715_v30 }
 0x5c2   : > { %2318 = vmatprep.subr.mxu0 %v2674_v38  ;;  %v2018_v38 = vld [vmem:[%s3140_s21] ss:$0 sm:$0xff] }
 0x5c3   : > { %2319 = vmatpush3.msra.mxu0 %v1714_v31 }
 0x5c4   : > { %2321 = vmatmul.mubr.f32.vlgmr.msra.gmra.mxu0 %v3060_v14 }
 0x664   : > { %v2136_v36 = vpop.f32.mrf.mxu0 }
 0x666   : > { %v2137_v40 = vpop.f32.mrf.mxu0 }
 0x667   : > { %v2138_v41 = vadd.f32 %v2137_v40, %v2136_v36 }
 0x669   : > { %v1616_v42 = vadd.f32 %v2138_v41, %v2015_v39 }
 0x66b   : > { %v1619_v43 = vmax.f32 %v1616_v42, 0.0 }
 0x66d   : > { %2286 = vmatmul.mubr.f32.vlgmr.msra.gmra.mxu1 %v1619_v43 }
 0x684   : > { %v1803_v45 = vpop.f32.mrf.mxu0 }
 0x685   : > { %v1804_v46 = vadd.f32 %v2017_v44, %v1803_v45 }
 0x686   : > { %v2322_v47 = vpop.f32.mrf.mxu0 }
 0x687   : > { %v1807_v48 = vmax.f32 %v1804_v46, 0.0 }
 0x689   : > { %v1815_v49 = vmul.f32 %v2018_v38, %v1807_v48 }
 0x68b   : > { %1816 = vadd.xlane.f32.xlu0 %v1815_v49 }
 0x714   : > { %v1817_v52 = vpop.xlane.xlu0 %1816 }
 0x715   : > { %v1825_v53 = vadd.f32 %v2019_v51, %v1817_v52 }
 0x717   : > { %1831 = vperm.xlu0 %2427, %v1825_v53  }
 0x72d   : > { %v1709_v55 = vpop.f32.mrf.mxu1 }
 0x72e   : > { %v1710_v56 = vadd.f32 %v2016_v54, %v1709_v55 }
 0x72f   : > { %v2287_v57 = vpop.f32.mrf.mxu1 }
 0x730   : > { %v1713_v59 = vadd.f32 %v1710_v56, %v3060_v14 }
 0x732   : > { %1836 = vst [vmem:[#allocation16] sm:$0xff] %v1713_v59 }
 0x792   : > { %v1832_v1 = vpop.permute.xlu0 %1831 }
 0x793   : > { %v1834_v2 = vmul.f32 %v1832_v1, %v1828_v63 }
 0x795   : > { %v1835_v3 = vadd.f32 %v1834_v2, %v1827_v0 }
 0x797   : > { %1837 = vst [vmem:[#allocation16 + $0x8] sm:$0xff] %v1835_v3 }
 0x798 PF: > { %p2391_p3 = scmp.eq.s32.totalorder %s2807_s1, 3  ;;  %s2677_s0 = smov [#allocation16]  }
 0x799   : > { %s1845_s27 = sshll.u32 %s2677_s0, 4  ;;  %s1846_s27 = int_to_ptr.vmem [resolvable:$true] %s1845_s27 }
 0x79a   : > { %s2610_s4 = scalar_lea.vmem %s1846_s27, 256  ;;  %p2617_p0 = scmp.lt.s32.totalorder %s1846_s27, %s1846_s27 }
 0x79b   : > { %p2611_p7 = scmp.ne.s32.totalorder %s1846_s27, %s2610_s4  ;;  %p2618_p1 = scmp.lt.s32.totalorder %s2610_s4, %s2610_s4 }
 0x79d   : > { %p2612_p10 = pnand %p2611_p7, %p2391_p3  ;;  %p2619_p5 = por %p2618_p1, %p2617_p0 }
 0x79f   : > { %p2613_p13 = pneg %p2612_p10 }
 0x7a1   : > { %p2620_p8 = pnand %p2619_p5, %p2613_p13 }
 0x7a3   : > { %2623 = shalt.err (!%p2620_p8)
}
 0x7a4   : > { %2352 = dma.vmem_to_hbm [thread:$0]  (%p2391_p3), %s1846_s27, 256, %s3142_s23, [#allocation6]  }
 0x7a5   : > { %2655 = dma.done.wait (%p2391_p3), [#allocation6], 256  }
 0x7a6   : > { %2657 = vsyncadd (%p2391_p3), [#allocation6], 4294967040 }
 0x7a7 PF: > { %s40_s24 = sadd.s32 1, %s2660_s24  }
 0x7a8   : > { %p37_p9 = scmp.ge.s32.totalorder %s40_s24, 6  }
 0x7aa   :  { %39 = sbr.rel (!%p37_p9) target bundleno = 15 (0xf), region = 182 }
 0x7af   :  { %1858 = vsyncpa [#allocation5], 1 }
 0x7b0   :  { %1860 = vsyncpa [#allocation5 + $0x1], 1 }
 0x7b1   :  { %1861 = vsyncpa [#allocation8], 1 }
 0x7b2   :  { %1862 = vsyncpa [#allocation11], 1 }
 0x7b3   :  { %1863 = vsyncpa [#allocation14], 1 }
 0x7b4   :  { %1864 = vsyncpa [#allocation6], 1 }
 0x7b5   :  { %1866 = vsyncpa [#allocation6 + $0x1], 1 }

// kernel: tpu_custom_call.1
= control target key start
LH: loop header
LB: loop body
LE: loop exit
PB: predicated region body
PF: predicated region fallthrough
CT: control target
= control target key end

     0   :  { %s3119_s0 = inlined_call_operand.vmem [shape: s32[64,1], index: 0, kind: input, shape index: {}]   ;;  %s3120_s1 = inlined_call_operand.vmem [shape: s32[64,1], index: 1, kind: input, shape index: {}]   ;;  %s3121_s2 = inlined_call_operand.vmem [shape: s32[4,1,16], index: 2, kind: input, shape index: {}]   ;;  %s3122_s3 = inlined_call_operand.vmem [shape: f32[8,128], index: 3, kind: input, shape index: {}]   ;;  %s3123_s4 = inlined_call_operand.vmem [shape: f32[8,128], index: 4, kind: input, shape index: {}]   ;;  %s3124_s5 = inlined_call_operand.hbm [shape: f32[8,128], index: 5, kind: input, shape index: {}]   ;;  %s3125_s6 = inlined_call_operand.hbm [shape: f32[8,128], index: 6, kind: input, shape index: {}]   ;;  %s3126_s7 = inlined_call_operand.hbm [shape: f32[256,128], index: 7, kind: input, shape index: {}]   ;;  %s3127_s8 = inlined_call_operand.vmem [shape: f32[1,128], index: 8, kind: input, shape index: {}]   ;;  %s3128_s9 = inlined_call_operand.vmem [shape: f32[1,128], index: 9, kind: input, shape index: {}]   ;;  %s3129_s10 = inlined_call_operand.vmem [shape: f32[128,128], index: 10, kind: input, shape index: {}]   ;;  %s3130_s11 = inlined_call_operand.vmem [shape: f32[1,128], index: 11, kind: input, shape index: {}]   ;;  %s3131_s12 = inlined_call_operand.hbm [shape: f32[128,128], index: 12, kind: input, shape index: {}]   ;;  %s3132_s13 = inlined_call_operand.vmem [shape: f32[1,128], index: 13, kind: input, shape index: {}]   ;;  %s3133_s14 = inlined_call_operand.vmem [shape: f32[1,128], index: 14, kind: input, shape index: {}]   ;;  %s3134_s15 = inlined_call_operand.hbm [shape: f32[256,128], index: 15, kind: input, shape index: {}]   ;;  %s3135_s16 = inlined_call_operand.vmem [shape: f32[1,128], index: 16, kind: input, shape index: {}]   ;;  %s3136_s17 = inlined_call_operand.hbm [shape: f32[128,128], index: 17, kind: input, shape index: {}]   ;;  %s3137_s18 = inlined_call_operand.vmem [shape: f32[1,128], index: 18, kind: input, shape index: {}]   ;;  %s3138_s19 = inlined_call_operand.hbm [shape: f32[128,128], index: 19, kind: input, shape index: {}]   ;;  %s3139_s20 = inlined_call_operand.vmem [shape: f32[1,128], index: 20, kind: input, shape index: {}]   ;;  %s3140_s21 = inlined_call_operand.vmem [shape: f32[1,128], index: 21, kind: input, shape index: {}]   ;;  %s3141_s22 = inlined_call_operand.<no memory space> [shape: f32[1,1], index: 22, kind: input, shape index: {}]   ;;  %s3142_s23 = inlined_call_operand.hbm [shape: f32[8,256], index: 23, kind: output, shape index: {}]  }
   0x1   :  { %3145 = sst [smem:[#allocation22_spill]] %s3119_s0  ;;  %v28_v0 = vstv %s3141_s22 }
   0x2   :  { %3146 = sst [smem:[#allocation23_spill]] %s3120_s1  ;;  %29 = vst [vmem:[#allocation3] sm:$0x1] %v28_v0 }
   0x3   :  { %3147 = sst [smem:[#allocation24_spill]] %s3121_s2 }
   0x4   :  { %3148 = sst [smem:[#allocation25_spill]] %s3122_s3 }
   0x5   :  { %3149 = sst [smem:[#allocation26_spill]] %s3123_s4 }
   0x6   :  { %3150 = sst [smem:[#allocation27_spill]] %s3124_s5 }
   0x7   :  { %3151 = sst [smem:[#allocation28_spill]] %s3125_s6 }
   0x8   :  { %3152 = sst [smem:[#allocation29_spill]] %s3126_s7 }
   0x9   :  { %3153 = sst [smem:[#allocation30_spill]] %s3131_s12 }
   0xa   :  { %30 = vsyncpa [#allocation5], 0 }
   0xb   :  { %31 = vsyncpa [#allocation8], 0 }
   0xc   :  { %32 = vsyncpa [#allocation11], 0 }
   0xd   :  { %33 = vsyncpa [#allocation14], 0 }
   0xe   :  { %34 = vsyncpa [#allocation6], 0  ;;  %s2801_s24 = smov 0  }
   0xf LB: > { %s2662_s25 = smov [#allocation7]   ;;  %s2807_s1 = sadd.s32 4294967295, %s2660_s24   ;;  %s2660_s24 = sphi %s2801_s24, %s40_s24  }
  0x10   : > { %s594_s5 = sshll.u32 %s2662_s25, 4  ;;  %p1975_p0 = scmp.ge.s32.totalorder %s2660_s24, 1  ;;  %s595_s5 = int_to_ptr.vmem [resolvable:$true] %s594_s5 }
  0x11   : > { %p564_p1 = scmp.lt.s32.totalorder %s2660_s24, 5  ;;  %p1976_p2 = scmp.ne.s32.totalorder %s2807_s1, 0 }
  0x12   : > { %p2377_p3 = scmp.eq.s32.totalorder %s2807_s1, 0  ;;  %s2663_s26 = smov [#allocation10]  }
  0x13   : > { %p2813_p4 = pnand %p1975_p0, %p564_p1  ;;  %s629_s2 = sshll.u32 %s2663_s26, 4  ;;  %s2819_s2 = int_to_ptr.vmem [resolvable:$true] %s629_s2 }
  0x14   : > { %s2664_s27 = smov [#allocation13]   ;;  %s2665_s28 = smov [#allocation4]  }
  0x15   : > { %p2355_p5 = pneg %p2813_p4  ;;  %s664_s7 = sshll.u32 %s2664_s27, 4  ;;  %s2827_s7 = int_to_ptr.vmem [resolvable:$true] %s664_s7 }
  0x16   : > { %s2829_s29 = sshll.u32 %s2665_s28, 4  ;;  %s2439_s0 = scalar_lea.vmem %s595_s5, 128  ;;  %s584_s29 = int_to_ptr.vmem [resolvable:$true] %s2829_s29 }
  0x17   : > { %p2823_p6 = pnand %p2377_p3, %p2355_p5  ;;  %p2440_p8 = scmp.ne.s32.totalorder %s595_s5, %s2439_s0 }
  0x18   : > { %p2447_p11 = scmp.lt.s32.totalorder %s595_s5, %s595_s5  ;;  %p2448_p12 = scmp.lt.s32.totalorder %s2439_s0, %s2439_s0 }
  0x19   : > { %p2833_p7 = pneg %p2823_p6 }
  0x1a   : > { %p2449_p13 = por %p2448_p12, %p2447_p11 }
  0x1b   : > { %p2442_p9 = pnand %p2440_p8, %p2833_p7 }
  0x1d   : > { %p2443_p10 = pneg %p2442_p9 }
  0x1f   : > { %p2450_p0 = pnand %p2449_p13, %p2443_p10 }
  0x21   : > { %2453 = shalt.err (!%p2450_p0)
}
  0x22   : > { %s3157_s25 = sld [smem:[#allocation28_spill]]  ;;  %s2465_s26 = scalar_lea.vmem %s2819_s2, 2048 }
  0x23   : > { %p2466_p1 = scmp.ne.s32.totalorder %s2819_s2, %s2465_s26  ;;  %p2473_p9 = scmp.lt.s32.totalorder %s2819_s2, %s2819_s2 }
  0x24   : > { %p2474_p11 = scmp.lt.s32.totalorder %s2465_s26, %s2465_s26 }
  0x25   : > { %p2468_p5 = pnand %p2466_p1, %p2833_p7 }
  0x26   : > { %p2475_p10 = por %p2474_p11, %p2473_p9 }
  0x27   : > { %p2469_p8 = pneg %p2468_p5 }
  0x28   : > { %2361 = dma.hbm_to_vmem [thread:$0]  (!%p2823_p6), %s3157_s25, 128, %s595_s5, [#allocation8]  }
  0x29   : > { %p2476_p12 = pnand %p2475_p10, %p2469_p8 }
  0x2b   : > { %2479 = shalt.err (!%p2476_p12)
}
  0x2c   : > { %s3143_s27 = smov 128   ;;  %s2667_s28 = smov 8  }
  0x2d   : > { %s3158_s12 = sld [smem:[#allocation30_spill]]  ;;  %s2491_s4 = scalar_lea.vmem %s2827_s7, 2048 }
  0x2e   : > { %p2492_p13 = scmp.ne.s32.totalorder %s2827_s7, %s2491_s4  ;;  %p2499_p5 = scmp.lt.s32.totalorder %s2827_s7, %s2827_s7 }
  0x2f   : > { %p2500_p8 = scmp.lt.s32.totalorder %s2491_s4, %s2491_s4 }
  0x30   : > { %p2494_p0 = pnand %p2492_p13, %p2833_p7 }
  0x31   : > { %p2501_p9 = por %p2500_p8, %p2499_p5 }
  0x32   : > { %p2495_p1 = pneg %p2494_p0 }
  0x33   : > { %2367 = dma.hbm_to_vmem [thread:$0]  (!%p2823_p6), %s3158_s12, 2048, %s2819_s2, [#allocation11], %s3143_s27, %s3143_s27, %s2667_s28  }
  0x34   : > { %p2502_p11 = pnand %p2501_p9, %p2495_p1 }
  0x36   : > { %2505 = shalt.err (!%p2502_p11)
}
  0x37   : > { %2373 = dma.hbm_to_vmem [thread:$0]  (!%p2823_p6), %s3136_s17, 2048, %s2827_s7, [#allocation14], %s3143_s27, %s3143_s27, %s2667_s28  }
  0x38   : > { %s2517_s2 = scalar_lea.vmem %s584_s29, 128  ;;  %p2525_p0 = scmp.lt.s32.totalorder %s584_s29, %s584_s29 }
  0x39   : > { %p2518_p10 = scmp.ne.s32.totalorder %s584_s29, %s2517_s2  ;;  %p2526_p1 = scmp.lt.s32.totalorder %s2517_s2, %s2517_s2 }
  0x3b   : > { %p2520_p12 = pnand %p2518_p10, %p2833_p7  ;;  %p2527_p5 = por %p2526_p1, %p2525_p0 }
  0x3d   : > { %p2521_p13 = pneg %p2520_p12 }
  0x3f   : > { %p2528_p8 = pnand %p2527_p5, %p2521_p13 }
  0x41   : > { %2531 = shalt.err (!%p2528_p8)
}
  0x42   : > { %s3159_s0 = sld [smem:[#allocation27_spill]]  ;;  %s2668_s4 = smov [#allocation9]  }
  0x43   : > { %s604_s7 = sshll.u32 %s2668_s4, 4  ;;  %s2669_s30 = smov [#allocation12]   ;;  %s605_s7 = int_to_ptr.vmem [resolvable:$true] %s604_s7 }
  0x44   : > { %s648_s25 = sshll.u32 %s2669_s30, 4  ;;  %s2543_s27 = scalar_lea.vmem %s605_s7, 4096  ;;  %s649_s25 = int_to_ptr.vmem [resolvable:$true] %s648_s25 }
  0x45   : > { %p2544_p9 = scmp.ne.s32.totalorder %s605_s7, %s2543_s27  ;;  %p2551_p12 = scmp.lt.s32.totalorder %s605_s7, %s605_s7 }
  0x46   : > { %p2552_p13 = scmp.lt.s32.totalorder %s2543_s27, %s2543_s27 }
  0x47   : > { %p2546_p11 = pnand %p2544_p9, %p2833_p7 }
  0x48   : > { %2358 = dma.hbm_to_vmem [thread:$0]  (!%p2823_p6), %s3159_s0, 128, %s584_s29, [#allocation5]  }
  0x49   : > { %p2547_p10 = pneg %p2546_p11  ;;  %p2553_p0 = por %p2552_p13, %p2551_p12 }
  0x4b   : > { %p2554_p1 = pnand %p2553_p0, %p2547_p10 }
  0x4d   : > { %2557 = shalt.err (!%p2554_p1)
}
  0x4e   : > { %s3160_s2 = smov 128   ;;  %s3161_s5 = sld [smem:[#allocation29_spill]] }
  0x4f   : > { %s2569_s0 = scalar_lea.vmem %s649_s25, 4096  ;;  %p2577_p11 = scmp.lt.s32.totalorder %s649_s25, %s649_s25 }
  0x50   : > { %p2570_p5 = scmp.ne.s32.totalorder %s649_s25, %s2569_s0  ;;  %p2578_p12 = scmp.lt.s32.totalorder %s2569_s0, %s2569_s0 }
  0x52   : > { %p2572_p8 = pnand %p2570_p5, %p2833_p7  ;;  %p2579_p10 = por %p2578_p12, %p2577_p11 }
  0x54   : > { %2364 = dma.hbm_to_vmem [thread:$0]  (!%p2823_p6), %s3161_s5, 4096, %s605_s7, [#allocation8], %s3160_s2, %s3160_s2, %s2667_s28  }
  0x55   : > { %p2573_p9 = pneg %p2572_p8 }
  0x57   : > { %p2580_p13 = pnand %p2579_p10, %p2573_p9 }
  0x59   : > { %2583 = shalt.err (!%p2580_p13)
}
  0x5a   : > { %2370 = dma.hbm_to_vmem [thread:$0]  (!%p2823_p6), %s3134_s15, 4096, %s649_s25, [#allocation11], %s3160_s2, %s3160_s2, %s2667_s28  }
  0x5b   : > { %s2670_s7 = smov [#allocation15]  }
  0x5c   : > { %s680_s30 = sshll.u32 %s2670_s7, 4  ;;  %s681_s30 = int_to_ptr.vmem [resolvable:$true] %s680_s30 }
  0x5d   : > { %s2595_s29 = scalar_lea.vmem %s681_s30, 2048  ;;  %p2603_p8 = scmp.lt.s32.totalorder %s681_s30, %s681_s30 }
  0x5e   : > { %p2596_p0 = scmp.ne.s32.totalorder %s681_s30, %s2595_s29  ;;  %p2604_p9 = scmp.lt.s32.totalorder %s2595_s29, %s2595_s29 }
  0x60   : > { %p2598_p1 = pnand %p2596_p0, %p2833_p7  ;;  %p2605_p11 = por %p2604_p9, %p2603_p8 }
  0x62   : > { %p2599_p5 = pneg %p2598_p1 }
  0x64   : > { %p2606_p12 = pnand %p2605_p11, %p2599_p5 }
  0x66   : > { %2609 = shalt.err (!%p2606_p12)
}
  0x67   : > { %2376 = dma.hbm_to_vmem [thread:$0]  (!%p2823_p6), %s3138_s19, 2048, %s681_s30, [#allocation14], %s3160_s2, %s3160_s2, %s2667_s28  }
  0x68   : > { %729 = sbr.rel (%p2813_p4) target bundleno = 1959 (0x7a7), region = 112 }
  0x6d   : > { %2639 = dma.done.wait (%p2377_p3), [#allocation5], 128  }
  0x6e   : > { %2641 = vsyncadd (%p2377_p3), [#allocation5], 4294967168 }
  0x6f   : > { %2643 = dma.done.wait (%p2377_p3), [#allocation8], 4224  }
  0x70   : > { %2645 = vsyncadd (%p2377_p3), [#allocation8], 4294963072 }
  0x71   : > { %2647 = dma.done.wait (%p2377_p3), [#allocation11], 6144  }
  0x72   : > { %2649 = vsyncadd (%p2377_p3), [#allocation11], 4294961152 }
  0x73   : > { %2651 = dma.done.wait (%p2377_p3), [#allocation14], 4096  }
  0x74   : > { %2653 = vsyncadd (%p2377_p3), [#allocation14], 4294963200  ;;  %s1992_s22 = sshll.u32 %s2807_s1, 1  ;;  %p832_p4 = scmp.lt.s32.totalorder %s2807_s1, 3 }
  0x75   : > { %p821_p6 = scmp.lt.s32.totalorder %s1992_s22, 7  ;;  %s3162_s2 = sld [smem:[#allocation24_spill]] }
  0x76   : > { %s2933_s6 = scalar_select %p832_p4, %s2807_s1, 3 }
  0x77   : > { %s3169_s22 = smov (!%p821_p6, %s1992_s22), 7  ;;  %s3163_s7 = sld [smem:[#allocation22_spill]] }
  0x78   : > { %s1993_s0 = sshll.u32 %s3169_s22, 3  ;;  %s3164_s25 = sld [smem:[#allocation23_spill]] }
  0x7a   : > { %838 = sbr.rel (%p1976_p2) target bundleno = 129 (0x81), region = 144 }
  0x7b   : > { %s834_s5 = scalar_lea.vmem %s3162_s2, %s2933_s6 }
  0x7d   : > { %s824_s30 = scalar_lea.vmem %s3163_s7, %s1993_s0 }
  0x7e   : > { %s830_s12 = scalar_lea.vmem %s3164_s25, %s1993_s0 }
  0x7f   : > { %v2671_v1 = vmov 0.0  }
  0x80   : > { %839 = vst [vmem:[#allocation2] sm:$0xff] %v2671_v1  ;;  %840 = vst [vmem:[#allocation2 + $0x8] sm:$0xff] %v2671_v1 }
  0x81 PF: > { %v857_v2 = vld [vmem:[%s830_s12] sm:$0xff]  ;;  %v2672_v4 = vmov 0   ;;  %s3165_s28 = sld [smem:[#allocation25_spill]]  ;;  %v858_v6 = vld [vmem:[%s830_s12 + $0x8] sm:$0xff]  ;;  %v1100_v10 = vld [vmem:[#allocation9 + $0xf0] sm:$0xff]  ;;  %v841_v32 = vlaneseq  ;;  %vm872_vm0 = vcmask 64512  }
  0x82   : > { %v843_v3 = vld [vmem:[%s824_s30] sm:$0xff]  ;;  %2418 = vset.pattern.permute.xlu1 %v2672_v4  ;;  %2417 = vset.pattern.permute.xlu0 %v2672_v4  ;;  %v844_v7 = vld [vmem:[%s824_s30 + $0x8] sm:$0xff]  ;;  %v1084_v11 = vld [vmem:[#allocation9 + $0x70] sm:$0xff]  ;;  %v2673_v36 = vmov 0.0   ;;  %vm1424_vm11 = vcmask 130048   ;;  %p2014_p2 = scmp.ne.s32.totalorder %s2807_s1, 3 }
  0x83   : > { %860 = vperm.xlu1 %2418, %v857_v2   ;;  %846 = vperm.xlu0 %2417, %v843_v3   ;;  %v1101_v8 = vld [vmem:[#allocation9 + $0xf8] sm:$0xff]  ;;  %v1099_v12 = vld [vmem:[#allocation9 + $0xe8] sm:$0xff]  ;;  %v1098_v14 = vld [vmem:[#allocation9 + $0xe0] sm:$0xff]  ;;  %v842_v33 = vand.u32 127, %v841_v32  ;;  %s3167_s30 = sld [smem:[#allocation26_spill]] (!%p2014_p2) }
  0x84   : > { %v1085_v9 = vld [vmem:[#allocation9 + $0x78] sm:$0xff]  ;;  %2030 = vmatprep.subr.mxu0 %v1101_v8  ;;  %v1083_v13 = vld [vmem:[#allocation9 + $0x68] sm:$0xff]  ;;  %v1082_v15 = vld [vmem:[#allocation9 + $0x60] sm:$0xff] }
  0x85   : > { %2031 = vmatpush3.msra.mxu0 %v1085_v9  ;;  %v1097_v16 = vld [vmem:[#allocation9 + $0xd8] sm:$0xff]  ;;  %v1096_v18 = vld [vmem:[#allocation9 + $0xd0] sm:$0xff]  ;;  %v1095_v20 = vld [vmem:[#allocation9 + $0xc8] sm:$0xff]  ;;  %vm1035_vm5 = vcmp.lt.s32.totalorder %v842_v33, 3 }
  0x86   : > { %2032 = vmatprep.subr.mxu0 %v1100_v10  ;;  %v1081_v17 = vld [vmem:[#allocation9 + $0x58] sm:$0xff]  ;;  %v1080_v19 = vld [vmem:[#allocation9 + $0x50] sm:$0xff]  ;;  %v1079_v21 = vld [vmem:[#allocation9 + $0x48] sm:$0xff]  ;;  %v2005_v54 = vsel %vm1035_vm5, 1.0, %v2673_v36 }
  0x87   : > { %v2950_v5 = vld [vmem:[%s3165_s28] sm:$0xff]  ;;  %863 = vperm.xlu1 %2418, %v858_v6   ;;  %849 = vperm.xlu0 %2417, %v844_v7   ;;  %v1092_v26 = vld [vmem:[#allocation9 + $0xb0] sm:$0xff]  ;;  %v1091_v28 = vld [vmem:[#allocation9 + $0xa8] sm:$0xff] }
  0x88   : > { %2173 = vmatprep.subr.mxu1 %v2950_v5  ;;  %2033 = vmatpush3.msra.mxu0 %v1084_v11  ;;  %v1094_v22 = vld [vmem:[#allocation9 + $0xc0] sm:$0xff]  ;;  %v1093_v24 = vld [vmem:[#allocation9 + $0xb8] sm:$0xff]  ;;  %v1076_v27 = vld [vmem:[#allocation9 + $0x30] sm:$0xff] }
  0x89   : > { %2174 = vmatpush3.msra.mxu1 %v2950_v5  ;;  %2034 = vmatprep.subr.mxu0 %v1099_v12  ;;  %v1078_v23 = vld [vmem:[#allocation9 + $0x40] sm:$0xff]  ;;  %v1077_v25 = vld [vmem:[#allocation9 + $0x38] sm:$0xff]  ;;  %v1075_v29 = vld [vmem:[#allocation9 + $0x28] sm:$0xff] }
  0x8a   : > { %2178 = vmatprep.subr.mxu1 %v2950_v5  ;;  %2035 = vmatpush3.msra.mxu0 %v1083_v13  ;;  %v1090_v30 = vld [vmem:[#allocation9 + $0xa0] sm:$0xff]  ;;  %v1089_v43 = vld [vmem:[#allocation9 + $0x98] sm:$0xff]  ;;  %v1088_v45 = vld [vmem:[#allocation9 + $0x90] sm:$0xff] }
  0x8b   : > { %2036 = vmatprep.subr.mxu0 %v1098_v14  ;;  %v1074_v31 = vld [vmem:[#allocation9 + $0x20] sm:$0xff]  ;;  %v1073_v44 = vld [vmem:[#allocation9 + $0x18] sm:$0xff]  ;;  %v1072_v46 = vld [vmem:[#allocation9 + $0x10] sm:$0xff] }
  0x8c   : > { %2037 = vmatpush3.msra.mxu0 %v1082_v15  ;;  %v1087_v47 = vld [vmem:[#allocation9 + $0x88] sm:$0xff]  ;;  %v1086_v49 = vld [vmem:[#allocation9 + $0x80] sm:$0xff]  ;;  %v1212_v62 = vld [vmem:[%s3129_s10 + $0x78] sm:$0xff] }
  0x8d   : > { %2038 = vmatprep.subr.mxu0 %v1097_v16  ;;  %v1071_v48 = vld [vmem:[#allocation9 + $0x8] sm:$0xff]  ;;  %v1070_v50 = vld [vmem:[#allocation9] sm:$0xff]  ;;  %v1208_v2 = vld [vmem:[%s3129_s10 + $0x58] sm:$0xff] }
  0x8e   : > { %2039 = vmatpush3.msra.mxu0 %v1081_v17  ;;  %v1211_v63 = vld [vmem:[%s3129_s10 + $0x70] sm:$0xff]  ;;  %v1210_v0 = vld [vmem:[%s3129_s10 + $0x68] sm:$0xff]  ;;  %v1209_v1 = vld [vmem:[%s3129_s10 + $0x60] sm:$0xff] }
  0x8f   : > { %2040 = vmatprep.subr.mxu0 %v1096_v18  ;;  %v1207_v3 = vld [vmem:[%s3129_s10 + $0x50] sm:$0xff]  ;;  %v1206_v4 = vld [vmem:[%s3129_s10 + $0x48] sm:$0xff]  ;;  %v1204_v6 = vld [vmem:[%s3129_s10 + $0x38] sm:$0xff] }
  0x90   : > { %2041 = vmatpush3.msra.mxu0 %v1080_v19  ;;  %v1203_v7 = vld [vmem:[%s3129_s10 + $0x30] sm:$0xff]  ;;  %v1202_v8 = vld [vmem:[%s3129_s10 + $0x28] sm:$0xff]  ;;  %v1201_v9 = vld [vmem:[%s3129_s10 + $0x20] sm:$0xff] }
  0x91   : > { %2042 = vmatprep.subr.mxu0 %v1095_v20  ;;  %v1200_v10 = vld [vmem:[%s3129_s10 + $0x18] sm:$0xff]  ;;  %v1199_v11 = vld [vmem:[%s3129_s10 + $0x10] sm:$0xff]  ;;  %v1198_v12 = vld [vmem:[%s3129_s10 + $0x8] sm:$0xff] }
  0x92   : > { %2043 = vmatpush3.msra.mxu0 %v1079_v21  ;;  %v1197_v13 = vld [vmem:[%s3129_s10] sm:$0xff]  ;;  %v1311_v15 = vld [vmem:[#allocation10 + $0x70] sm:$0xff]  ;;  %v1310_v16 = vld [vmem:[#allocation10 + $0x68] sm:$0xff] }
  0x93   : > { %2044 = vmatprep.subr.mxu0 %v1094_v22  ;;  %v1312_v14 = vld [vmem:[#allocation10 + $0x78] sm:$0xff]  ;;  %v1309_v17 = vld [vmem:[#allocation10 + $0x60] sm:$0xff]  ;;  %v1307_v19 = vld [vmem:[#allocation10 + $0x50] sm:$0xff] }
  0x94   : > { %2045 = vmatpush3.msra.mxu0 %v1078_v23  ;;  %v1308_v18 = vld [vmem:[#allocation10 + $0x58] sm:$0xff]  ;;  %v1306_v20 = vld [vmem:[#allocation10 + $0x48] sm:$0xff]  ;;  %v1305_v21 = vld [vmem:[#allocation10 + $0x40] sm:$0xff] }
  0x95   : > { %2046 = vmatprep.subr.mxu0 %v1093_v24  ;;  %v1304_v22 = vld [vmem:[#allocation10 + $0x38] sm:$0xff]  ;;  %v1303_v23 = vld [vmem:[#allocation10 + $0x30] sm:$0xff]  ;;  %v1302_v24 = vld [vmem:[#allocation10 + $0x28] sm:$0xff] }
  0x96   : > { %2047 = vmatpush3.msra.mxu0 %v1077_v25  ;;  %v1301_v25 = vld [vmem:[#allocation10 + $0x20] sm:$0xff] }
  0x97   : > { %2048 = vmatprep.subr.mxu0 %v1092_v26 }
  0x98   : > { %2049 = vmatpush3.msra.mxu0 %v1076_v27 }
  0x99   : > { %2050 = vmatprep.subr.mxu0 %v1091_v28  ;;  %v2006_v28 = vld [vmem:[%s3127_s8] ss:$0 sm:$0xff] }
  0x9a   : > { %2051 = vmatpush3.msra.mxu0 %v1075_v29 }
  0x9b   : > { %2052 = vmatprep.subr.mxu0 %v1090_v30 }
  0x9c   : > { %2053 = vmatpush3.msra.mxu0 %v1074_v31 }
  0x9d   : > { %2054 = vmatprep.subr.mxu0 %v1089_v43 }
  0x9e   : > { %2055 = vmatpush3.msra.mxu0 %v1073_v44 }
  0x9f   : > { %2056 = vmatprep.subr.mxu0 %v1088_v45 }
  0xa0   : > { %2057 = vmatpush3.msra.mxu0 %v1072_v46  ;;  %v1300_v46 = vld [vmem:[#allocation10 + $0x18] sm:$0xff] }
  0xa1   : > { %2058 = vmatprep.subr.mxu0 %v1087_v47  ;;  %v1299_v47 = vld [vmem:[#allocation10 + $0x10] sm:$0xff] }
  0xa2   : > { %2059 = vmatpush3.msra.mxu0 %v1071_v48  ;;  %v1298_v48 = vld [vmem:[#allocation10 + $0x8] sm:$0xff] }
  0xa3   : > { %2060 = vmatprep.subr.mxu0 %v1086_v49  ;;  %v1297_v49 = vld [vmem:[#allocation10] sm:$0xff] }
  0xa4   : > { %2061 = vmatpush3.msra.mxu0 %v1070_v50  ;;  %v2008_v50 = vld [vmem:[%s3130_s11] ss:$0 sm:$0xff] }
  0xa5   : > { %2218 = vmatprep.subr.mxu0 %v1312_v14 }
  0xfe   : > { %v861_v34 = vpop.permute.xlu1 %860  ;;  %v847_v35 = vpop.permute.xlu0 %846 }
  0xff   : > { %vm851_vm1 = vcmp.eq.s32.totalorder %v847_v35, %v842_v33  ;;  %vm865_vm2 = vcmp.eq.s32.totalorder %v861_v34, %v842_v33  ;;  %v2007_v35 = vld [vmem:[%s3128_s9] ss:$0 sm:$0xff] }
 0x100   : > { %v1997_v37 = vsel %vm851_vm1, 1.0, %v2673_v36  ;;  %v1999_v40 = vsel %vm865_vm2, 1.0, %v2673_v36 }
 0x101   : > { %2175 = vmatprep.mubr.msk.f32.mxu1 %vm872_vm0, %v1997_v37 }
 0x102   : > { %v864_v38 = vpop.permute.xlu1 %863  ;;  %v850_v39 = vpop.permute.xlu0 %849 }
 0x103   : > { %vm852_vm3 = vcmp.eq.s32.totalorder %v850_v39, %v842_v33  ;;  %vm866_vm4 = vcmp.eq.s32.totalorder %v864_v38, %v842_v33 }
 0x104   : > { %v1998_v41 = vsel %vm852_vm3, 1.0, %v2673_v36  ;;  %v2000_v42 = vsel %vm866_vm4, 1.0, %v2673_v36 }
 0x105   : > { %2176 = vmatmul.mubr.msk.f32.vlgmr.msra.gmra.mxu1 %vm872_vm0, %v1998_v41 }
 0x106   : > { %2179 = vmatpush3.msra.mxu1 %v2950_v5  ;;  %2180 = vmatprep.mubr.msk.f32.mxu1 %vm872_vm0, %v1999_v40  ;;  %v1205_v5 = vld [vmem:[%s3129_s10 + $0x40] sm:$0xff] }
 0x107   : > { %2183 = vmatprep.subr.mxu1 %v1212_v62 }
 0x109   : > { %2181 = vmatmul.mubr.msk.f32.vlgmr.msra.gmra.mxu1 %vm872_vm0, %v2000_v42 }
 0x10a   : > { %2184 = vmatpush3.msra.mxu1 %v1212_v62 }
 0x10b   : > { %2185 = vmatprep.subr.mxu1 %v1211_v63 }
 0x10c   : > { %2186 = vmatpush3.msra.mxu1 %v1211_v63  ;;  %v2010_v63 = vld [vmem:[%s3133_s14] ss:$0 sm:$0xff] }
 0x10d   : > { %2187 = vmatprep.subr.mxu1 %v1210_v0 }
 0x10e   : > { %2188 = vmatpush3.msra.mxu1 %v1210_v0 }
 0x10f   : > { %2189 = vmatprep.subr.mxu1 %v1209_v1 }
 0x110   : > { %2190 = vmatpush3.msra.mxu1 %v1209_v1 }
 0x111   : > { %2191 = vmatprep.subr.mxu1 %v1208_v2 }
 0x112   : > { %2192 = vmatpush3.msra.mxu1 %v1208_v2 }
 0x113   : > { %2193 = vmatprep.subr.mxu1 %v1207_v3 }
 0x114   : > { %2194 = vmatpush3.msra.mxu1 %v1207_v3 }
 0x115   : > { %2195 = vmatprep.subr.mxu1 %v1206_v4 }
 0x116   : > { %2196 = vmatpush3.msra.mxu1 %v1206_v4 }
 0x117   : > { %2197 = vmatprep.subr.mxu1 %v1205_v5 }
 0x118   : > { %2198 = vmatpush3.msra.mxu1 %v1205_v5 }
 0x119   : > { %2199 = vmatprep.subr.mxu1 %v1204_v6 }
 0x11a   : > { %2200 = vmatpush3.msra.mxu1 %v1204_v6 }
 0x11b   : > { %2201 = vmatprep.subr.mxu1 %v1203_v7 }
 0x11c   : > { %2202 = vmatpush3.msra.mxu1 %v1203_v7 }
 0x11d   : > { %2203 = vmatprep.subr.mxu1 %v1202_v8 }
 0x11e   : > { %2204 = vmatpush3.msra.mxu1 %v1202_v8 }
 0x11f   : > { %2205 = vmatprep.subr.mxu1 %v1201_v9 }
 0x120   : > { %2206 = vmatpush3.msra.mxu1 %v1201_v9 }
 0x121   : > { %2207 = vmatprep.subr.mxu1 %v1200_v10 }
 0x122   : > { %2208 = vmatpush3.msra.mxu1 %v1200_v10 }
 0x123   : > { %2209 = vmatprep.subr.mxu1 %v1199_v11 }
 0x124   : > { %2210 = vmatpush3.msra.mxu1 %v1199_v11 }
 0x125   : > { %2211 = vmatprep.subr.mxu1 %v1198_v12 }
 0x126   : > { %2212 = vmatpush3.msra.mxu1 %v1198_v12 }
 0x127   : > { %2213 = vmatprep.subr.mxu1 %v1197_v13 }
 0x128   : > { %2214 = vmatpush3.msra.mxu1 %v1197_v13 }
 0x1c5   : > { %v2177_v51 = vpop.f32.mrf.mxu1 }
 0x1c7   : > { %v945_v52 = vpop.f32.mrf.mxu1 }
 0x1c9   : > { %v2182_v53 = vpop.f32.mrf.mxu1 }
 0x1ca   : > { %v1039_v55 = vsub.f32 %v2177_v51, %v2182_v53 }
 0x1cb   : > { %v1026_v56 = vpop.f32.mrf.mxu1 }
 0x1cc   : > { %v1038_v57 = vsub.f32 %v945_v52, %v1026_v56  ;;  %1175 = vmatprep.mubr.f32.mxu0 %v1026_v56  ;;  %v2966_v58 = vmul.f32 %v2005_v54, %v1039_v55 }
 0x1cd   : > { %1176 = vmatmul.mubr.f32.vlgmr.msra.gmra.mxu0 %v945_v52 }
 0x1ce   : > { %1180 = vmatprep.mubr.f32.mxu0 %v2182_v53  ;;  %v1043_v59 = vmul.f32 %v2966_v58, %v2966_v58  ;;  %v2970_v60 = vmul.f32 %v2005_v54, %v1038_v57  ;;  %2219 = vmatpush3.msra.mxu0 %v1312_v14  ;;  %v2009_v57 = vld [vmem:[%s3132_s13] ss:$0 sm:$0xff] }
 0x1cf   : > { %2220 = vmatprep.subr.mxu0 %v1311_v15 }
 0x1d0   : > { %1046 = vadd.xlane.f32.xlu1 %v1043_v59  ;;  %v1042_v61 = vmul.f32 %v2970_v60, %v2970_v60  ;;  %2221 = vmatpush3.msra.mxu0 %v1311_v15 }
 0x1d1   : > { %1181 = vmatmul.mubr.f32.gmra.mxu0 %v2177_v51  ;;  %2222 = vmatprep.subr.mxu0 %v1310_v16 }
 0x1d2   : > { %1044 = vadd.xlane.f32.xlu0 %v1042_v61  ;;  %2223 = vmatpush3.msra.mxu0 %v1310_v16 }
 0x1d3   : > { %2224 = vmatprep.subr.mxu0 %v1309_v17 }
 0x1d4   : > { %2225 = vmatpush3.msra.mxu0 %v1309_v17 }
 0x1d5   : > { %2226 = vmatprep.subr.mxu0 %v1308_v18 }
 0x1d6   : > { %2227 = vmatpush3.msra.mxu0 %v1308_v18 }
 0x1d7   : > { %2228 = vmatprep.subr.mxu0 %v1307_v19 }
 0x1d8   : > { %2229 = vmatpush3.msra.mxu0 %v1307_v19 }
 0x1d9   : > { %2230 = vmatprep.subr.mxu0 %v1306_v20 }
 0x1da   : > { %2231 = vmatpush3.msra.mxu0 %v1306_v20 }
 0x1db   : > { %2232 = vmatprep.subr.mxu0 %v1305_v21 }
 0x1dc   : > { %2233 = vmatpush3.msra.mxu0 %v1305_v21  ;;  %v1413_v21 = vshrl.u32 %v841_v32, 7  ;;  %v1422_v32 = vld [vmem:[#allocation2] sm:$0xff] }
 0x1dd   : > { %2234 = vmatprep.subr.mxu0 %v1304_v22 }
 0x1de   : > { %2235 = vmatpush3.msra.mxu0 %v1304_v22 }
 0x1df   : > { %2236 = vmatprep.subr.mxu0 %v1303_v23 }
 0x1e0   : > { %2237 = vmatpush3.msra.mxu0 %v1303_v23 }
 0x1e1   : > { %2238 = vmatprep.subr.mxu0 %v1302_v24 }
 0x1e2   : > { %2239 = vmatpush3.msra.mxu0 %v1302_v24  ;;  %v2011_v24 = vld [vmem:[%s834_s5] ss:$0 sm:$0xff] }
 0x1e3   : > { %2240 = vmatprep.subr.mxu0 %v1301_v25  ;;  %vm1419_vm10 = vcmp.eq.s32.totalorder %v2011_v24, %v1413_v21 }
 0x1e4   : > { %2241 = vmatpush3.msra.mxu0 %v1301_v25 }
 0x1e5   : > { %2242 = vmatprep.subr.mxu0 %v1300_v46 }
 0x1e6   : > { %2243 = vmatpush3.msra.mxu0 %v1300_v46 }
 0x1e7   : > { %2244 = vmatprep.subr.mxu0 %v1299_v47 }
 0x1e8   : > { %2245 = vmatpush3.msra.mxu0 %v1299_v47 }
 0x1e9   : > { %2246 = vmatprep.subr.mxu0 %v1298_v48 }
 0x1ea   : > { %2247 = vmatpush3.msra.mxu0 %v1298_v48 }
 0x1eb   : > { %2248 = vmatprep.subr.mxu0 %v1297_v49 }
 0x1ec   : > { %2249 = vmatpush3.msra.mxu0 %v1297_v49 }
 0x259   : > { %v1047_v33 = vpop.xlane.xlu1 %1046 }
 0x25a   : > { %v1110_v39 = vmul.f32 %v2006_v28, %v1047_v33  ;;  %v1049_v5 = vadd.f32 1e-08, %v1047_v33 }
 0x25b   : > { %v1045_v26 = vpop.xlane.xlu0 %1044 }
 0x25c   : > { %v1109_v30 = vmul.f32 %v2006_v28, %v1045_v26  ;;  %2419 = vrsqrt.f32 %v1049_v5  ;;  %v1048_v6 = vadd.f32 1e-08, %v1045_v26  ;;  %vm1059_vm6 = vcmp.eq.f32.partialorder %v1049_v5, inf }
 0x25d   : > { %v1062_v12 = vand.u32 2147483648, %v1049_v5  ;;  %vm1061_vm7 = vcmp.eq.f32.partialorder %v1049_v5, 0.0 }
 0x25e   : > { %2421 = vrsqrt.f32 %v1048_v6  ;;  %vm1052_vm8 = vcmp.eq.f32.partialorder %v1048_v6, inf  ;;  %v1055_v15 = vand.u32 2147483648, %v1048_v6  ;;  %vm1054_vm9 = vcmp.eq.f32.partialorder %v1048_v6, 0.0 }
 0x269   : > { %v2420_v7 = vpop.eup %2419 }
 0x26a   : > { %v1058_v8 = vmul.f32 %v2420_v7, %v1049_v5 }
 0x26b   : > { %v2422_v9 = vpop.eup %2421 }
 0x26c   : > { %v1060_v10 = vsel %vm1059_vm6, %v1049_v5, %v1058_v8  ;;  %v1051_v11 = vmul.f32 %v2422_v9, %v1048_v6 }
 0x26d   : > { %v1063_v13 = vsel %vm1061_vm7, %v1062_v12, %v1060_v10 }
 0x26e   : > { %v1053_v14 = vsel %vm1052_vm8, %v1048_v6, %v1051_v11  ;;  %v1065_v16 = vadd.f32 1.0, %v1063_v13 }
 0x26f   : > { %v1056_v17 = vsel %vm1054_vm9, %v1055_v15, %v1053_v14 }
 0x270   : > { %2423 = vrcp.f32 %v1065_v16  ;;  %v1064_v18 = vadd.f32 1.0, %v1056_v17 }
 0x272   : > { %2425 = vrcp.f32 %v1064_v18 }
 0x27d   : > { %v2424_v19 = vpop.eup %2423 }
 0x27e   : > { %v1069_v20 = vmul.f32 %v2424_v19, %v2966_v58 }
 0x27f   : > { %v2426_v22 = vpop.eup %2425 }
 0x280   : > { %v1067_v26 = vmul.f32 %v2426_v22, %v2970_v60 }
 0x28d   : > { %v2062_v27 = vpop.f32.mrf.mxu0 }
 0x28f   : > { %v2063_v29 = vpop.f32.mrf.mxu0 }
 0x290   : > { %v2064_v31 = vadd.f32 %v2063_v29, %v2062_v27  ;;  %v2012_v29 = vsel %vm1419_vm10, 1.0, %v2673_v36 }
 0x291   : > { %v2065_v34 = vpop.f32.mrf.mxu0 }
 0x292   : > { %v1178_v37 = vadd.f32 %v2064_v31, %v1109_v30  ;;  %v1423_v30 = vld [vmem:[#allocation2 + $0x8] sm:$0xff] }
 0x293   : > { %v2066_v38 = vpop.f32.mrf.mxu0 }
 0x294   : > { %v2067_v40 = vadd.f32 %v2066_v38, %v2065_v34  ;;  %v1193_v41 = vadd.f32 %v2007_v35, %v1178_v37 }
 0x296   : > { %v1183_v42 = vadd.f32 %v2067_v40, %v1110_v39  ;;  %v1195_v43 = vmax.f32 %v1193_v41, 0.0 }
 0x298   : > { %v1194_v44 = vadd.f32 %v2007_v35, %v1183_v42  ;;  %2215 = vmatprep.mubr.f32.mxu1 %v1195_v43 }
 0x29a   : > { %v1196_v45 = vmax.f32 %v1194_v44, 0.0 }
 0x29c   : > { %2216 = vmatmul.mubr.f32.vlgmr.msra.gmra.mxu1 %v1196_v45 }
 0x29d   : > { %1492 = vmatprep.mubr.f32.mxu1 %v2673_v36 }
 0x35c   : > { %v2217_v51 = vpop.f32.mrf.mxu1 }
 0x35d   : > { %v1292_v52 = vadd.f32 %v2217_v51, %v2008_v50 }
 0x35e   : > { %v1286_v53 = vpop.f32.mrf.mxu1 }
 0x35f   : > { %v1287_v54 = vadd.f32 %v2008_v50, %v1286_v53  ;;  %v1296_v56 = vmax.f32 %v1292_v52, 0.0 }
 0x361   : > { %v1295_v55 = vmax.f32 %v1287_v54, 0.0 }
 0x363   : > { %2250 = vmatprep.mubr.f32.mxu0 %v1295_v55 }
 0x364   : > { %2251 = vmatmul.mubr.f32.vlgmr.msra.gmra.mxu0 %v1296_v56 }
 0x424   : > { %v2252_v59 = vpop.f32.mrf.mxu0 }
 0x425   : > { %v1392_v61 = vadd.f32 %v2252_v59, %v2009_v57 }
 0x426   : > { %v1386_v62 = vpop.f32.mrf.mxu0 }
 0x427   : > { %v1396_v0 = vmax.f32 %v1392_v61, 0.0  ;;  %v1387_v1 = vadd.f32 %v2009_v57, %v1386_v62 }
 0x429   : > { %v1395_v2 = vmax.f32 %v1387_v1, 0.0  ;;  %v1405_v3 = vmul.f32 %v2010_v63, %v1396_v0 }
 0x42b   : > { %1408 = vadd.xlane.f32.xlu0 %v1405_v3  ;;  %v1404_v4 = vmul.f32 %v2010_v63, %v1395_v2 }
 0x42f   : > { %1406 = vadd.xlane.f32.xlu0 %v1404_v4 }
 0x4b4   : > { %v1409_v23 = vpop.xlane.xlu0 %1408 }
 0x4b5   : > { %v1411_v25 = vmul.f32 %v1409_v23, %v1069_v20 }
 0x4b7   : > { %1456 = vmatprep.subr.mxu1 %v1411_v25 }
 0x4b8   : > { %1457 = vmatpush1.msra.mxu1 %v1296_v56  ;;  %v1407_v27 = vpop.xlane.xlu0 %1406 }
 0x4b9   : > { %v1410_v28 = vmul.f32 %v1407_v27, %v1067_v26 }
 0x4bb   : > { %1458 = vmatprep.subr.mxu1 %v1410_v28 }
 0x4bc   : > { %1459 = vmatpush1.msra.mxu1 %v1295_v55 }
 0x4bd   : > { %2013 = vmatmul.mubr.msk.f32.vlgmr.msra.gmra.mxu1 %vm1424_vm11, %v2012_v29 }
 0x57d   : > { %v1494_v58 = vpop.f32.mrf.mxu1 }
 0x57e   : > { %v1499_v31 = vadd.f32 %v1494_v58, %v1422_v32  ;;  %1506 = sbr.rel (%p2014_p2) target bundleno = 1944 (0x798), region = 148 }
 0x57f   : > { %v1496_v33 = vpop.f32.mrf.mxu1 }
 0x580   : > { %1501 = vst [vmem:[#allocation2] sm:$0xff] %v1499_v31  ;;  %v1500_v34 = vadd.f32 %v1496_v33, %v1423_v30 }
 0x582   : > { %1502 = vst [vmem:[#allocation2 + $0x8] sm:$0xff] %v1500_v34 }
 0x583   : > { %v1541_v60 = vld [vmem:[#allocation12 + $0xf8] sm:$0xff]  ;;  %v1540_v37 = vld [vmem:[#allocation12 + $0xf0] sm:$0xff]  ;;  %v2674_v38 = vmov 0.0   ;;  %v1539_v39 = vld [vmem:[#allocation12 + $0xe8] sm:$0xff]  ;;  %vm2675_vm12 = vmmov 0  }
 0x584   : > { %v1525_v35 = vld [vmem:[#allocation12 + $0x78] sm:$0xff]  ;;  %2104 = vmatprep.subr.mxu0 %v1541_v60  ;;  %v1524_v36 = vld [vmem:[#allocation12 + $0x70] sm:$0xff]  ;;  %2253 = vmatprep.subr.mxu1 %v2674_v38  ;;  %v1523_v40 = vld [vmem:[#allocation12 + $0x68] sm:$0xff] }
 0x585   : > { %2105 = vmatpush3.msra.mxu0 %v1525_v35  ;;  %2285 = vmatprep.mubr.msk.f32.mxu1 %vm2675_vm12, %v2674_v38  ;;  %v1538_v41 = vld [vmem:[#allocation12 + $0xe0] sm:$0xff]  ;;  %v1537_v43 = vld [vmem:[#allocation12 + $0xd8] sm:$0xff]  ;;  %v1536_v45 = vld [vmem:[#allocation12 + $0xd0] sm:$0xff] }
 0x586   : > { %2106 = vmatprep.subr.mxu0 %v1540_v37  ;;  %v1522_v42 = vld [vmem:[#allocation12 + $0x60] sm:$0xff]  ;;  %v1521_v44 = vld [vmem:[#allocation12 + $0x58] sm:$0xff]  ;;  %v1520_v46 = vld [vmem:[#allocation12 + $0x50] sm:$0xff] }
 0x587   : > { %2107 = vmatpush3.msra.mxu0 %v1524_v36  ;;  %v1535_v47 = vld [vmem:[#allocation12 + $0xc8] sm:$0xff]  ;;  %v1507_v48 = vld [vmem:[#allocation2] sm:$0xff]  ;;  %v1532_v54 = vld [vmem:[#allocation12 + $0xb0] sm:$0xff] }
 0x588   : > { %2108 = vmatprep.subr.mxu0 %v1539_v39  ;;  %v1519_v49 = vld [vmem:[#allocation12 + $0x48] sm:$0xff]  ;;  %1613 = vmatprep.mubr.f32.mxu0 %v1507_v48  ;;  %v1534_v50 = vld [vmem:[#allocation12 + $0xc0] sm:$0xff]  ;;  %v1533_v52 = vld [vmem:[#allocation12 + $0xb8] sm:$0xff] }
 0x589   : > { %2109 = vmatpush3.msra.mxu0 %v1523_v40  ;;  %v1518_v51 = vld [vmem:[#allocation12 + $0x40] sm:$0xff]  ;;  %v1517_v53 = vld [vmem:[#allocation12 + $0x38] sm:$0xff]  ;;  %v1516_v56 = vld [vmem:[#allocation12 + $0x30] sm:$0xff] }
 0x58a   : > { %2110 = vmatprep.subr.mxu0 %v1538_v41  ;;  %v1635_v55 = vld [vmem:[#allocation13 + $0x78] sm:$0xff]  ;;  %v1634_v57 = vld [vmem:[#allocation13 + $0x70] sm:$0xff]  ;;  %v1531_v59 = vld [vmem:[#allocation12 + $0xa8] sm:$0xff] }
 0x58b   : > { %2111 = vmatpush3.msra.mxu0 %v1522_v42  ;;  %2254 = vmatpush3.msra.mxu1 %v1635_v55  ;;  %v1633_v61 = vld [vmem:[#allocation13 + $0x68] sm:$0xff]  ;;  %v1530_v63 = vld [vmem:[#allocation12 + $0xa0] sm:$0xff]  ;;  %v1529_v2 = vld [vmem:[#allocation12 + $0x98] sm:$0xff] }
 0x58c   : > { %2112 = vmatprep.subr.mxu0 %v1537_v43  ;;  %2255 = vmatprep.subr.mxu1 %v2674_v38  ;;  %v1515_v62 = vld [vmem:[#allocation12 + $0x28] sm:$0xff]  ;;  %v1632_v0 = vld [vmem:[#allocation13 + $0x60] sm:$0xff]  ;;  %v1631_v3 = vld [vmem:[#allocation13 + $0x58] sm:$0xff] }
 0x58d   : > { %2113 = vmatpush3.msra.mxu0 %v1521_v44  ;;  %2256 = vmatpush3.msra.mxu1 %v1634_v57  ;;  %v1514_v1 = vld [vmem:[#allocation12 + $0x20] sm:$0xff]  ;;  %v1513_v4 = vld [vmem:[#allocation12 + $0x18] sm:$0xff]  ;;  %v1528_v5 = vld [vmem:[#allocation12 + $0x90] sm:$0xff] }
 0x58e   : > { %2114 = vmatprep.subr.mxu0 %v1536_v45  ;;  %2257 = vmatprep.subr.mxu1 %v2674_v38  ;;  %v1630_v6 = vld [vmem:[#allocation13 + $0x50] sm:$0xff]  ;;  %v1527_v8 = vld [vmem:[#allocation12 + $0x88] sm:$0xff]  ;;  %v1526_v11 = vld [vmem:[#allocation12 + $0x80] sm:$0xff] }
 0x58f   : > { %2115 = vmatpush3.msra.mxu0 %v1520_v46  ;;  %2258 = vmatpush3.msra.mxu1 %v1633_v61  ;;  %v1512_v7 = vld [vmem:[#allocation12 + $0x10] sm:$0xff]  ;;  %v1629_v9 = vld [vmem:[#allocation13 + $0x48] sm:$0xff]  ;;  %v1628_v12 = vld [vmem:[#allocation13 + $0x40] sm:$0xff] }
 0x590   : > { %2116 = vmatprep.subr.mxu0 %v1535_v47  ;;  %2259 = vmatprep.subr.mxu1 %v2674_v38  ;;  %v1511_v10 = vld [vmem:[#allocation12 + $0x8] sm:$0xff]  ;;  %v1510_v13 = vld [vmem:[#allocation12] sm:$0xff]  ;;  %v1729_v15 = vld [vmem:[#allocation15 + $0x78] sm:$0xff] }
 0x591   : > { %2117 = vmatpush3.msra.mxu0 %v1519_v49  ;;  %2260 = vmatpush3.msra.mxu1 %v1632_v0  ;;  %v3060_v14 = vld [vmem:[%s3167_s30] sm:$0xff]  ;;  %v1728_v17 = vld [vmem:[#allocation15 + $0x70] sm:$0xff]  ;;  %v1727_v19 = vld [vmem:[#allocation15 + $0x68] sm:$0xff] }
 0x592   : > { %2118 = vmatprep.subr.mxu0 %v1534_v50  ;;  %2261 = vmatprep.subr.mxu1 %v2674_v38  ;;  %v1627_v16 = vld [vmem:[#allocation13 + $0x38] sm:$0xff]  ;;  %v1626_v18 = vld [vmem:[#allocation13 + $0x30] sm:$0xff]  ;;  %v1625_v20 = vld [vmem:[#allocation13 + $0x28] sm:$0xff]  ;;  %v2676_v50 = vmov 0  }
 0x593   : > { %2119 = vmatpush3.msra.mxu0 %v1518_v51  ;;  %2262 = vmatpush3.msra.mxu1 %v1631_v3  ;;  %v1726_v21 = vld [vmem:[#allocation15 + $0x60] sm:$0xff]  ;;  %v1725_v22 = vld [vmem:[#allocation15 + $0x58] sm:$0xff]  ;;  %v1724_v23 = vld [vmem:[#allocation15 + $0x50] sm:$0xff] }
 0x594   : > { %2120 = vmatprep.subr.mxu0 %v1533_v52  ;;  %2263 = vmatprep.subr.mxu1 %v2674_v38  ;;  %v1723_v24 = vld [vmem:[#allocation15 + $0x48] sm:$0xff]  ;;  %v1722_v25 = vld [vmem:[#allocation15 + $0x40] sm:$0xff]  ;;  %v1721_v26 = vld [vmem:[#allocation15 + $0x38] sm:$0xff] }
 0x595   : > { %2121 = vmatpush3.msra.mxu0 %v1517_v53  ;;  %2264 = vmatpush3.msra.mxu1 %v1630_v6  ;;  %v1720_v27 = vld [vmem:[#allocation15 + $0x30] sm:$0xff]  ;;  %v1719_v28 = vld [vmem:[#allocation15 + $0x28] sm:$0xff]  ;;  %v1718_v29 = vld [vmem:[#allocation15 + $0x20] sm:$0xff] }
 0x596   : > { %2122 = vmatprep.subr.mxu0 %v1532_v54  ;;  %2265 = vmatprep.subr.mxu1 %v2674_v38  ;;  %v1717_v32 = vld [vmem:[#allocation15 + $0x18] sm:$0xff]  ;;  %v1716_v58 = vld [vmem:[#allocation15 + $0x10] sm:$0xff]  ;;  %v1715_v30 = vld [vmem:[#allocation15 + $0x8] sm:$0xff] }
 0x597   : > { %2123 = vmatpush3.msra.mxu0 %v1516_v56  ;;  %2266 = vmatpush3.msra.mxu1 %v1629_v9  ;;  %v1714_v31 = vld [vmem:[#allocation15] sm:$0xff]  ;;  %v1623_v34 = vld [vmem:[#allocation13 + $0x18] sm:$0xff]  ;;  %v1622_v60 = vld [vmem:[#allocation13 + $0x10] sm:$0xff] }
 0x598   : > { %2124 = vmatprep.subr.mxu0 %v1531_v59  ;;  %2267 = vmatprep.subr.mxu1 %v2674_v38  ;;  %v1624_v33 = vld [vmem:[#allocation13 + $0x20] sm:$0xff]  ;;  %v1621_v35 = vld [vmem:[#allocation13 + $0x8] sm:$0xff]  ;;  %v2015_v39 = vld [vmem:[%s3135_s16] ss:$0 sm:$0xff] }
 0x599   : > { %2125 = vmatpush3.msra.mxu0 %v1515_v62  ;;  %2268 = vmatpush3.msra.mxu1 %v1628_v12  ;;  %v1620_v37 = vld [vmem:[#allocation13] sm:$0xff]  ;;  %v2017_v44 = vld [vmem:[%s3139_s20] ss:$0 sm:$0xff]  ;;  %v2019_v51 = vld [vmem:[#allocation3] ss:$0 sm:$0xff] }
 0x59a   : > { %2126 = vmatprep.subr.mxu0 %v1530_v63  ;;  %2269 = vmatprep.subr.mxu1 %v2674_v38  ;;  %v2016_v54 = vld [vmem:[%s3137_s18] ss:$0 sm:$0xff]  ;;  %v1508_v61 = vld [vmem:[#allocation2 + $0x8] sm:$0xff]  ;;  %v1826_v62 = vld [vmem:[#allocation4] sm:$0xff] }
 0x59b   : > { %2127 = vmatpush3.msra.mxu0 %v1514_v1  ;;  %2270 = vmatpush3.msra.mxu1 %v1627_v16  ;;  %v1828_v63 = vld [vmem:[#allocation7] sm:$0xff]  ;;  %v1827_v0 = vadd.f32 %v1826_v62, %v1508_v61 }
 0x59c   : > { %2128 = vmatprep.subr.mxu0 %v1529_v2  ;;  %2271 = vmatprep.subr.mxu1 %v2674_v38 }
 0x59d   : > { %2129 = vmatpush3.msra.mxu0 %v1513_v4  ;;  %2272 = vmatpush3.msra.mxu1 %v1626_v18 }
 0x59e   : > { %2130 = vmatprep.subr.mxu0 %v1528_v5  ;;  %2273 = vmatprep.subr.mxu1 %v2674_v38 }
 0x59f   : > { %2131 = vmatpush3.msra.mxu0 %v1512_v7  ;;  %2274 = vmatpush3.msra.mxu1 %v1625_v20 }
 0x5a0   : > { %2132 = vmatprep.subr.mxu0 %v1527_v8  ;;  %2275 = vmatprep.subr.mxu1 %v2674_v38 }
 0x5a1   : > { %2133 = vmatpush3.msra.mxu0 %v1511_v10  ;;  %2276 = vmatpush3.msra.mxu1 %v1624_v33 }
 0x5a2   : > { %2134 = vmatprep.subr.mxu0 %v1526_v11  ;;  %2277 = vmatprep.subr.mxu1 %v2674_v38 }
 0x5a3   : > { %2135 = vmatpush3.msra.mxu0 %v1510_v13  ;;  %2278 = vmatpush3.msra.mxu1 %v1623_v34 }
 0x5a4   : > { %1614 = vmatmul.mubr.f32.vlgmr.msra.gmra.mxu0 %v3060_v14  ;;  %2288 = vmatprep.subr.mxu0 %v2674_v38 }
 0x5a5   : > { %2289 = vmatpush3.msra.mxu0 %v1729_v15  ;;  %2320 = vmatprep.mubr.msk.f32.mxu0 %vm2675_vm12, %v2674_v38 }
 0x5a6   : > { %2290 = vmatprep.subr.mxu0 %v2674_v38  ;;  %2279 = vmatprep.subr.mxu1 %v2674_v38 }
 0x5a7   : > { %2291 = vmatpush3.msra.mxu0 %v1728_v17  ;;  %2280 = vmatpush3.msra.mxu1 %v1622_v60 }
 0x5a8   : > { %2292 = vmatprep.subr.mxu0 %v2674_v38  ;;  %2281 = vmatprep.subr.mxu1 %v2674_v38 }
 0x5a9   : > { %2293 = vmatpush3.msra.mxu0 %v1727_v19  ;;  %2282 = vmatpush3.msra.mxu1 %v1621_v35 }
 0x5aa   : > { %2294 = vmatprep.subr.mxu0 %v2674_v38  ;;  %2283 = vmatprep.subr.mxu1 %v2674_v38 }
 0x5ab   : > { %2295 = vmatpush3.msra.mxu0 %v1726_v21  ;;  %2284 = vmatpush3.msra.mxu1 %v1620_v37 }
 0x5ac   : > { %2296 = vmatprep.subr.mxu0 %v2674_v38  ;;  %2427 = vset.pattern.permute.xlu0 %v2676_v50 }
 0x5ad   : > { %2297 = vmatpush3.msra.mxu0 %v1725_v22 }
 0x5ae   : > { %2298 = vmatprep.subr.mxu0 %v2674_v38 }
 0x5af   : > { %2299 = vmatpush3.msra.mxu0 %v1724_v23 }
 0x5b0   : > { %2300 = vmatprep.subr.mxu0 %v2674_v38 }
 0x5b1   : > { %2301 = vmatpush3.msra.mxu0 %v1723_v24 }
 0x5b2   : > { %2302 = vmatprep.subr.mxu0 %v2674_v38 }
 0x5b3   : > { %2303 = vmatpush3.msra.mxu0 %v1722_v25 }
 0x5b4   : > { %2304 = vmatprep.subr.mxu0 %v2674_v38 }
 0x5b5   : > { %2305 = vmatpush3.msra.mxu0 %v1721_v26 }
 0x5b6   : > { %2306 = vmatprep.subr.mxu0 %v2674_v38 }
 0x5b7   : > { %2307 = vmatpush3.msra.mxu0 %v1720_v27 }
 0x5b8   : > { %2308 = vmatprep.subr.mxu0 %v2674_v38 }
 0x5b9   : > { %2309 = vmatpush3.msra.mxu0 %v1719_v28 }
 0x5ba   : > { %2310 = vmatprep.subr.mxu0 %v2674_v38 }
 0x5bb   : > { %2311 = vmatpush3.msra.mxu0 %v1718_v29 }
 0x5bc   : > { %2312 = vmatprep.subr.mxu0 %v2674_v38 }
 0x5bd   : > { %2313 = vmatpush3.msra.mxu0 %v1717_v32 }
 0x5be   : > { %2314 = vmatprep.subr.mxu0 %v2674_v38 }
 0x5bf   : > { %2315 = vmatpush3.msra.mxu0 %v1716_v58 }
 0x5c0   : > { %2316 = vmatprep.subr.mxu0 %v2674_v38 }
 0x5c1   : > { %2317 = vmatpush3.msra.mxu0 %v1715_v30 }
 0x5c2   : > { %2318 = vmatprep.subr.mxu0 %v2674_v38  ;;  %v2018_v38 = vld [vmem:[%s3140_s21] ss:$0 sm:$0xff] }
 0x5c3   : > { %2319 = vmatpush3.msra.mxu0 %v1714_v31 }
 0x5c4   : > { %2321 = vmatmul.mubr.f32.vlgmr.msra.gmra.mxu0 %v3060_v14 }
 0x664   : > { %v2136_v36 = vpop.f32.mrf.mxu0 }
 0x666   : > { %v2137_v40 = vpop.f32.mrf.mxu0 }
 0x667   : > { %v2138_v41 = vadd.f32 %v2137_v40, %v2136_v36 }
 0x669   : > { %v1616_v42 = vadd.f32 %v2138_v41, %v2015_v39 }
 0x66b   : > { %v1619_v43 = vmax.f32 %v1616_v42, 0.0 }
 0x66d   : > { %2286 = vmatmul.mubr.f32.vlgmr.msra.gmra.mxu1 %v1619_v43 }
 0x684   : > { %v1803_v45 = vpop.f32.mrf.mxu0 }
 0x685   : > { %v1804_v46 = vadd.f32 %v2017_v44, %v1803_v45 }
 0x686   : > { %v2322_v47 = vpop.f32.mrf.mxu0 }
 0x687   : > { %v1807_v48 = vmax.f32 %v1804_v46, 0.0 }
 0x689   : > { %v1815_v49 = vmul.f32 %v2018_v38, %v1807_v48 }
 0x68b   : > { %1816 = vadd.xlane.f32.xlu0 %v1815_v49 }
 0x714   : > { %v1817_v52 = vpop.xlane.xlu0 %1816 }
 0x715   : > { %v1825_v53 = vadd.f32 %v2019_v51, %v1817_v52 }
 0x717   : > { %1831 = vperm.xlu0 %2427, %v1825_v53  }
 0x72d   : > { %v1709_v55 = vpop.f32.mrf.mxu1 }
 0x72e   : > { %v1710_v56 = vadd.f32 %v2016_v54, %v1709_v55 }
 0x72f   : > { %v2287_v57 = vpop.f32.mrf.mxu1 }
 0x730   : > { %v1713_v59 = vadd.f32 %v1710_v56, %v3060_v14 }
 0x732   : > { %1836 = vst [vmem:[#allocation16] sm:$0xff] %v1713_v59 }
 0x792   : > { %v1832_v1 = vpop.permute.xlu0 %1831 }
 0x793   : > { %v1834_v2 = vmul.f32 %v1832_v1, %v1828_v63 }
 0x795   : > { %v1835_v3 = vadd.f32 %v1834_v2, %v1827_v0 }
 0x797   : > { %1837 = vst [vmem:[#allocation16 + $0x8] sm:$0xff] %v1835_v3 }
 0x798 PF: > { %p2391_p3 = scmp.eq.s32.totalorder %s2807_s1, 3  ;;  %s2677_s0 = smov [#allocation16]  }
 0x799   : > { %s1845_s27 = sshll.u32 %s2677_s0, 4  ;;  %s1846_s27 = int_to_ptr.vmem [resolvable:$true] %s1845_s27 }
 0x79a   : > { %s2610_s4 = scalar_lea.vmem %s1846_s27, 256  ;;  %p2617_p0 = scmp.lt.s32.totalorder %s1846_s27, %s1846_s27 }
 0x79b   : > { %p2611_p7 = scmp.ne.s32.totalorder %s1846_s27, %s2610_s4  ;;  %p2618_p1 = scmp.lt.s32.totalorder %s2610_s4, %s2610_s4 }
 0x79d   : > { %p2612_p10 = pnand %p2611_p7, %p2391_p3  ;;  %p2619_p5 = por %p2618_p1, %p2617_p0 }
 0x79f   : > { %p2613_p13 = pneg %p2612_p10 }
 0x7a1   : > { %p2620_p8 = pnand %p2619_p5, %p2613_p13 }
 0x7a3   : > { %2623 = shalt.err (!%p2620_p8)
}
 0x7a4   : > { %2352 = dma.vmem_to_hbm [thread:$0]  (%p2391_p3), %s1846_s27, 256, %s3142_s23, [#allocation6]  }
 0x7a5   : > { %2655 = dma.done.wait (%p2391_p3), [#allocation6], 256  }
 0x7a6   : > { %2657 = vsyncadd (%p2391_p3), [#allocation6], 4294967040 }
 0x7a7 PF: > { %s40_s24 = sadd.s32 1, %s2660_s24  }
 0x7a8   : > { %p37_p9 = scmp.ge.s32.totalorder %s40_s24, 6  }
 0x7aa   :  { %39 = sbr.rel (!%p37_p9) target bundleno = 15 (0xf), region = 182 }
 0x7af   :  { %1858 = vsyncpa [#allocation5], 1 }
 0x7b0   :  { %1860 = vsyncpa [#allocation5 + $0x1], 1 }
 0x7b1   :  { %1861 = vsyncpa [#allocation8], 1 }
 0x7b2   :  { %1862 = vsyncpa [#allocation11], 1 }
 0x7b3   :  { %1863 = vsyncpa [#allocation14], 1 }
 0x7b4   :  { %1864 = vsyncpa [#allocation6], 1 }
 0x7b5   :  { %1866 = vsyncpa [#allocation6 + $0x1], 1 }

</bundles_post_ra>
